<compile_context>
chip_gen: v7x
topology: tpu7x:2x2x1
jax: 0.10.0
libtpu: 0.0.40
codegen_flags: <defaults>
</compile_context>

<pallas_src>
import math

import jax
import jax.numpy as jnp
import numpy as np
from jax.experimental import pallas as pl
from jax.experimental.pallas import tpu as pltpu

K = 7     # conv kernel size
P = 3     # padding
CIN = 4   # pooled-stack channels fed to the conv


def spatial_attention_kernel(w_ref, b_ref, t1_ref, t2_ref, out_ref, pad_ref):
    # w_ref   : (CIN*K*K,)          SMEM  fused conv weights (w1 - w2), OIHW-flat
    # b_ref   : (1,)                SMEM  fused bias (b1 - b2)
    # t1_ref  : (1, C, H, W)        VMEM  one batch image, native NCHW block, native dtype
    # t2_ref  : (1, C, H, W)        VMEM
    # out_ref : (1, H, W)           VMEM  sigmoid(a1 - a2) == softmax(...)[0] for this image
    # pad_ref : (CIN, H+2P, W+2P)   VMEM  scratch: zero-padded pooled stack
    _, C, H, W = t1_ref.shape
    Hp, Wp = H + 2 * P, W + 2 * P

    # Channel pooling (mean + max over C); accumulate in f32 regardless of input dtype.
    def chan_pool(ref):
        x = ref[0].astype(jnp.float32)             # (C, H, W)
        return jnp.mean(x, axis=0), jnp.max(x, axis=0)

    t1_avg, t1_max = chan_pool(t1_ref)
    t2_avg, t2_max = chan_pool(t2_ref)

    # Rebuild the whole padded scratch every step with full-width stores only
    # (no masked 3-lane halo stores; full rewrite keeps it megacore-safe).
    zrow = jnp.zeros((P, Wp), jnp.float32)
    zcol = jnp.zeros((H, P), jnp.float32)
    for c, pooled in enumerate((t1_avg, t1_max, t2_avg, t2_max)):
        pad_ref[c, 0:P, :] = zrow
        pad_ref[c, P + H:Hp, :] = zrow
        pad_ref[c, P:P + H, :] = jnp.concatenate([zcol, pooled, zcol], axis=1)

    # Fused difference conv: acc = conv7x7(sp, w1 - w2).
    # One lane-aligned (H, Wp) row-slab load per (c, ky); the 7 kx windows are
    # in-register lane shifts of that slab; 4 independent per-channel accumulators.
    # (MXU deliberately unused: a single output channel would run it at <1% util.)
    accs = []
    for c in range(CIN):
        acc_c = jnp.zeros((H, W), jnp.float32)
        for ky in range(K):
            slab = pad_ref[c, ky:ky + H, :]        # (H, Wp) single load per (c, ky)
            for kx in range(K):
                w = w_ref[(c * K + ky) * K + kx]
                acc_c = acc_c + w * slab[:, kx:kx + W]
        accs.append(acc_c)
    acc = (accs[0] + accs[1]) + (accs[2] + accs[3]) + b_ref[0]

    # softmax over the size-2 stack == sigmoid of the difference (stable form).
    e = jnp.exp(-jnp.abs(acc))
    pos = 1.0 / (1.0 + e)
    out0 = jnp.where(acc >= 0.0, pos, 1.0 - pos)
    out_ref[0] = out0.astype(out_ref.dtype)


def spatial_attention(t1, t2, w1, b1, w2, b2):
    """t1, t2: (B, C, H, W) NCHW inputs (any float dtype). Returns (2, B, 1, H, W) f32."""
    B, C, H, W = t1.shape
    Hp, Wp = H + 2 * P, W + 2 * P

    # softmax over a 2-stack depends only on the difference of the two logits,
    # so pre-fuse the two 7x7 convolutions into one difference conv.
    w_diff = (w1 - w2).reshape(-1).astype(jnp.float32)     # (CIN*K*K,), OIHW order
    b_diff = (b1 - b2).reshape(-1).astype(jnp.float32)     # (1,)

    # VMEM budget: 2 inputs x 2 pipeline buffers x block + double-buffered output
    # + padded scratch + headroom, clamped to v7x's 64 MiB physical VMEM.
    in_bytes = 2 * 2 * C * H * W * jnp.dtype(t1.dtype).itemsize
    out_bytes = 2 * H * W * 4
    scratch_bytes = CIN * Hp * Wp * 4
    vmem_limit = int(min(max(in_bytes + out_bytes + scratch_bytes + (8 << 20),
                             32 << 20), 64 << 20))

    a0 = pl.pallas_call(
        spatial_attention_kernel,
        out_shape=jax.ShapeDtypeStruct((B, H, W), jnp.float32),
        grid_spec=pltpu.PrefetchScalarGridSpec(
            num_scalar_prefetch=0,
            grid=(B,),
            in_specs=[
                pl.BlockSpec(memory_space=pltpu.MemorySpace.SMEM),     # fused weights
                pl.BlockSpec(memory_space=pltpu.MemorySpace.SMEM),     # fused bias
                pl.BlockSpec((1, C, H, W), lambda b: (b, 0, 0, 0)),    # t1 (native dtype)
                pl.BlockSpec((1, C, H, W), lambda b: (b, 0, 0, 0)),    # t2 (native dtype)
            ],
            out_specs=pl.BlockSpec((1, H, W), lambda b: (b, 0, 0)),
            scratch_shapes=[pltpu.VMEM((CIN, Hp, Wp), jnp.float32)],
        ),
        compiler_params=pltpu.CompilerParams(
            dimension_semantics=("parallel",),
            vmem_limit_bytes=vmem_limit),
    )(w_diff, b_diff, t1, t2)

    # Second softmax map is the complement; materialise it outside the kernel
    # (halves the kernel's output HBM writeback).
    out = jnp.stack([a0, 1.0 - a0], axis=0)
    return out.reshape(2, B, 1, H, W)           # metadata-only reshape to torch layout


def reference(t1, t2, w1, b1, w2, b2):
    t1 = t1.astype(jnp.float32)
    t2 = t2.astype(jnp.float32)
    t1_avg = jnp.mean(t1, axis=1, keepdims=True)
    t1_max = jnp.max(t1, axis=1, keepdims=True)
    t2_avg = jnp.mean(t2, axis=1, keepdims=True)
    t2_max = jnp.max(t2, axis=1, keepdims=True)
    sp = jnp.concatenate([t1_avg, t1_max, t2_avg, t2_max], axis=1)

    def conv(x, w, b):
        y = jax.lax.conv_general_dilated(
            x, w.astype(jnp.float32), window_strides=(1, 1),
            padding=((P, P), (P, P)),
            dimension_numbers=("NCHW", "OIHW", "NCHW"),
            precision=jax.lax.Precision.HIGHEST)
        return y + b.reshape(1, -1, 1, 1)

    a1 = conv(sp, w1, b1)
    a2 = conv(sp, w2, b2)
    st = jnp.stack([a1, a2], axis=0)
    return jax.nn.softmax(st, axis=0)


if __name__ == "__main__":
    B, C, H, W = 2, 4, 16, 16
    key = jax.random.PRNGKey(0)
    k1, k2, k3, k4, k5, k6 = jax.random.split(key, 6)

    t1 = jax.random.normal(k1, (B, C, H, W), jnp.float32)
    t2 = jax.random.normal(k2, (B, C, H, W), jnp.float32)

    # Deterministic parameter init (PyTorch-default-like uniform ranges).
    fan_in = CIN * K * K
    bound = 1.0 / math.sqrt(fan_in)
    w1 = jax.random.uniform(k3, (1, CIN, K, K), jnp.float32, -bound, bound)
    w2 = jax.random.uniform(k4, (1, CIN, K, K), jnp.float32, -bound, bound)
    b1 = jax.random.uniform(k5, (1,), jnp.float32, -bound, bound)
    b2 = jax.random.uniform(k6, (1,), jnp.float32, -bound, bound)

    out = spatial_attention(t1, t2, w1, b1, w2, b2)
    out = jax.block_until_ready(out)

    ref = reference(t1, t2, w1, b1, w2, b2)
    assert out.shape == (2, B, 1, H, W), out.shape
    np.testing.assert_allclose(np.asarray(out), np.asarray(ref),
                               rtol=1e-4, atol=1e-5)
    print("KERNEL_OK")
</pallas_src>

<mosaic_0001>
module attributes {stable_mosaic.version = 11 : i64} {
  func.func @spatial_attention_kernel(%arg0: i32, %arg1: memref<196xf32, #tpu.memory_space<smem>>, %arg2: memref<1xf32, #tpu.memory_space<smem>>, %arg3: memref<1x4x16x16xf32, #tpu.memory_space<vmem>>, %arg4: memref<1x4x16x16xf32, #tpu.memory_space<vmem>>, %arg5: memref<1x16x16xf32, #tpu.memory_space<vmem>>, %arg6: memref<4x22x22xf32, #tpu.memory_space<vmem>>) attributes {dimension_semantics = [#tpu.dimension_semantics<parallel>], iteration_bounds = array<i64: 2>, scalar_prefetch = 0 : i64, scratch_operands = 1 : i64, tpu.core_type = #tpu.core_type<tc>, window_params = [{transform_indices = @transform_0, window_bounds = array<i64: 196>}, {transform_indices = @transform_1, window_bounds = array<i64: 1>}, {transform_indices = @transform_2, window_bounds = array<i64: 1, 4, 16, 16>}, {transform_indices = @transform_3, window_bounds = array<i64: 1, 4, 16, 16>}, {transform_indices = @transform_4, window_bounds = array<i64: 1, 16, 16>}]} {
    %c0 = arith.constant 0 : index
    %c0_0 = arith.constant 0 : index
    %c0_1 = arith.constant 0 : index
    %c0_2 = arith.constant 0 : index
    %0 = vector.load %arg3[%c0, %c0_0, %c0_1, %c0_2] : memref<1x4x16x16xf32, #tpu.memory_space<vmem>>, vector<1x4x16x16xf32>
    %1 = vector.shape_cast %0 : vector<1x4x16x16xf32> to vector<4x16x16xf32>
    %cst = arith.constant dense<0.000000e+00> : vector<16x16xf32>
    %2 = vector.multi_reduction <add>, %1, %cst [0] : vector<4x16x16xf32> to vector<16x16xf32>
    %cst_3 = arith.constant 4.000000e+00 : f32
    %3 = vector.broadcast %cst_3 : f32 to vector<16x16xf32>
    %4 = arith.divf %2, %3 : vector<16x16xf32>
    %cst_4 = arith.constant dense<0xFF800000> : vector<16x16xf32>
    %5 = vector.multi_reduction <maximumf>, %1, %cst_4 [0] : vector<4x16x16xf32> to vector<16x16xf32>
    %c0_5 = arith.constant 0 : index
    %c0_6 = arith.constant 0 : index
    %c0_7 = arith.constant 0 : index
    %c0_8 = arith.constant 0 : index
    %6 = vector.load %arg4[%c0_5, %c0_6, %c0_7, %c0_8] : memref<1x4x16x16xf32, #tpu.memory_space<vmem>>, vector<1x4x16x16xf32>
    %7 = vector.shape_cast %6 : vector<1x4x16x16xf32> to vector<4x16x16xf32>
    %cst_9 = arith.constant dense<0.000000e+00> : vector<16x16xf32>
    %8 = vector.multi_reduction <add>, %7, %cst_9 [0] : vector<4x16x16xf32> to vector<16x16xf32>
    %cst_10 = arith.constant 4.000000e+00 : f32
    %9 = vector.broadcast %cst_10 : f32 to vector<16x16xf32>
    %10 = arith.divf %8, %9 : vector<16x16xf32>
    %cst_11 = arith.constant dense<0xFF800000> : vector<16x16xf32>
    %11 = vector.multi_reduction <maximumf>, %7, %cst_11 [0] : vector<4x16x16xf32> to vector<16x16xf32>
    %cst_12 = arith.constant 0.000000e+00 : f32
    %12 = vector.broadcast %cst_12 : f32 to vector<3x22xf32>
    %cst_13 = arith.constant 0.000000e+00 : f32
    %13 = vector.broadcast %cst_13 : f32 to vector<16x3xf32>
    %c0_14 = arith.constant 0 : index
    %c0_15 = arith.constant 0 : index
    %c0_16 = arith.constant 0 : index
    %14 = vector.load %arg6[%c0_14, %c0_15, %c0_16] : memref<4x22x22xf32, #tpu.memory_space<vmem>>, vector<1x3x22xf32>
    %15 = vector.shape_cast %14 : vector<1x3x22xf32> to vector<3x22xf32>
    %16 = vector.shape_cast %12 : vector<3x22xf32> to vector<1x3x22xf32>
    tpu.vector_store %arg6[%c0_14, %c0_15, %c0_16], %16 {strides = array<i32>} : memref<4x22x22xf32, #tpu.memory_space<vmem>>, vector<1x3x22xf32>,
    %c0_17 = arith.constant 0 : index
    %c19 = arith.constant 19 : index
    %c0_18 = arith.constant 0 : index
    %17 = vector.load %arg6[%c0_17, %c19, %c0_18] : memref<4x22x22xf32, #tpu.memory_space<vmem>>, vector<1x3x22xf32>
    %18 = vector.shape_cast %17 : vector<1x3x22xf32> to vector<3x22xf32>
    %19 = vector.shape_cast %12 : vector<3x22xf32> to vector<1x3x22xf32>
    tpu.vector_store %arg6[%c0_17, %c19, %c0_18], %19 {strides = array<i32>} : memref<4x22x22xf32, #tpu.memory_space<vmem>>, vector<1x3x22xf32>,
    %20 = tpu.concatenate %13, %4, %13 in 1 : vector<16x3xf32>, vector<16x16xf32>, vector<16x3xf32> -> vector<16x22xf32>
    %c0_19 = arith.constant 0 : index
    %c3 = arith.constant 3 : index
    %c0_20 = arith.constant 0 : index
    %21 = vector.load %arg6[%c0_19, %c3, %c0_20] : memref<4x22x22xf32, #tpu.memory_space<vmem>>, vector<1x16x22xf32>
    %22 = vector.shape_cast %21 : vector<1x16x22xf32> to vector<16x22xf32>
    %23 = vector.shape_cast %20 : vector<16x22xf32> to vector<1x16x22xf32>
    tpu.vector_store %arg6[%c0_19, %c3, %c0_20], %23 {strides = array<i32>} : memref<4x22x22xf32, #tpu.memory_space<vmem>>, vector<1x16x22xf32>,
    %c1 = arith.constant 1 : index
    %c0_21 = arith.constant 0 : index
    %c0_22 = arith.constant 0 : index
    %24 = vector.load %arg6[%c1, %c0_21, %c0_22] : memref<4x22x22xf32, #tpu.memory_space<vmem>>, vector<1x3x22xf32>
    %25 = vector.shape_cast %24 : vector<1x3x22xf32> to vector<3x22xf32>
    %26 = vector.shape_cast %12 : vector<3x22xf32> to vector<1x3x22xf32>
    tpu.vector_store %arg6[%c1, %c0_21, %c0_22], %26 {strides = array<i32>} : memref<4x22x22xf32, #tpu.memory_space<vmem>>, vector<1x3x22xf32>,
    %c1_23 = arith.constant 1 : index
    %c19_24 = arith.constant 19 : index
    %c0_25 = arith.constant 0 : index
    %27 = vector.load %arg6[%c1_23, %c19_24, %c0_25] : memref<4x22x22xf32, #tpu.memory_space<vmem>>, vector<1x3x22xf32>
    %28 = vector.shape_cast %27 : vector<1x3x22xf32> to vector<3x22xf32>
    %29 = vector.shape_cast %12 : vector<3x22xf32> to vector<1x3x22xf32>
    tpu.vector_store %arg6[%c1_23, %c19_24, %c0_25], %29 {strides = array<i32>} : memref<4x22x22xf32, #tpu.memory_space<vmem>>, vector<1x3x22xf32>,
    %30 = tpu.concatenate %13, %5, %13 in 1 : vector<16x3xf32>, vector<16x16xf32>, vector<16x3xf32> -> vector<16x22xf32>
    %c1_26 = arith.constant 1 : index
    %c3_27 = arith.constant 3 : index
    %c0_28 = arith.constant 0 : index
    %31 = vector.load %arg6[%c1_26, %c3_27, %c0_28] : memref<4x22x22xf32, #tpu.memory_space<vmem>>, vector<1x16x22xf32>
    %32 = vector.shape_cast %31 : vector<1x16x22xf32> to vector<16x22xf32>
    %33 = vector.shape_cast %30 : vector<16x22xf32> to vector<1x16x22xf32>
    tpu.vector_store %arg6[%c1_26, %c3_27, %c0_28], %33 {strides = array<i32>} : memref<4x22x22xf32, #tpu.memory_space<vmem>>, vector<1x16x22xf32>,
    %c2 = arith.constant 2 : index
    %c0_29 = arith.constant 0 : index
    %c0_30 = arith.constant 0 : index
    %34 = vector.load %arg6[%c2, %c0_29, %c0_30] : memref<4x22x22xf32, #tpu.memory_space<vmem>>, vector<1x3x22xf32>
    %35 = vector.shape_cast %34 : vector<1x3x22xf32> to vector<3x22xf32>
    %36 = vector.shape_cast %12 : vector<3x22xf32> to vector<1x3x22xf32>
    tpu.vector_store %arg6[%c2, %c0_29, %c0_30], %36 {strides = array<i32>} : memref<4x22x22xf32, #tpu.memory_space<vmem>>, vector<1x3x22xf32>,
    %c2_31 = arith.constant 2 : index
    %c19_32 = arith.constant 19 : index
    %c0_33 = arith.constant 0 : index
    %37 = vector.load %arg6[%c2_31, %c19_32, %c0_33] : memref<4x22x22xf32, #tpu.memory_space<vmem>>, vector<1x3x22xf32>
    %38 = vector.shape_cast %37 : vector<1x3x22xf32> to vector<3x22xf32>
    %39 = vector.shape_cast %12 : vector<3x22xf32> to vector<1x3x22xf32>
    tpu.vector_store %arg6[%c2_31, %c19_32, %c0_33], %39 {strides = array<i32>} : memref<4x22x22xf32, #tpu.memory_space<vmem>>, vector<1x3x22xf32>,
    %40 = tpu.concatenate %13, %10, %13 in 1 : vector<16x3xf32>, vector<16x16xf32>, vector<16x3xf32> -> vector<16x22xf32>
    %c2_34 = arith.constant 2 : index
    %c3_35 = arith.constant 3 : index
    %c0_36 = arith.constant 0 : index
    %41 = vector.load %arg6[%c2_34, %c3_35, %c0_36] : memref<4x22x22xf32, #tpu.memory_space<vmem>>, vector<1x16x22xf32>
    %42 = vector.shape_cast %41 : vector<1x16x22xf32> to vector<16x22xf32>
    %43 = vector.shape_cast %40 : vector<16x22xf32> to vector<1x16x22xf32>
    tpu.vector_store %arg6[%c2_34, %c3_35, %c0_36], %43 {strides = array<i32>} : memref<4x22x22xf32, #tpu.memory_space<vmem>>, vector<1x16x22xf32>,
    %c3_37 = arith.constant 3 : index
    %c0_38 = arith.constant 0 : index
    %c0_39 = arith.constant 0 : index
    %44 = vector.load %arg6[%c3_37, %c0_38, %c0_39] : memref<4x22x22xf32, #tpu.memory_space<vmem>>, vector<1x3x22xf32>
    %45 = vector.shape_cast %44 : vector<1x3x22xf32> to vector<3x22xf32>
    %46 = vector.shape_cast %12 : vector<3x22xf32> to vector<1x3x22xf32>
    tpu.vector_store %arg6[%c3_37, %c0_38, %c0_39], %46 {strides = array<i32>} : memref<4x22x22xf32, #tpu.memory_space<vmem>>, vector<1x3x22xf32>,
    %c3_40 = arith.constant 3 : index
    %c19_41 = arith.constant 19 : index
    %c0_42 = arith.constant 0 : index
    %47 = vector.load %arg6[%c3_40, %c19_41, %c0_42] : memref<4x22x22xf32, #tpu.memory_space<vmem>>, vector<1x3x22xf32>
    %48 = vector.shape_cast %47 : vector<1x3x22xf32> to vector<3x22xf32>
    %49 = vector.shape_cast %12 : vector<3x22xf32> to vector<1x3x22xf32>
    tpu.vector_store %arg6[%c3_40, %c19_41, %c0_42], %49 {strides = array<i32>} : memref<4x22x22xf32, #tpu.memory_space<vmem>>, vector<1x3x22xf32>,
    %50 = tpu.concatenate %13, %11, %13 in 1 : vector<16x3xf32>, vector<16x16xf32>, vector<16x3xf32> -> vector<16x22xf32>
    %c3_43 = arith.constant 3 : index
    %c3_44 = arith.constant 3 : index
    %c0_45 = arith.constant 0 : index
    %51 = vector.load %arg6[%c3_43, %c3_44, %c0_45] : memref<4x22x22xf32, #tpu.memory_space<vmem>>, vector<1x16x22xf32>
    %52 = vector.shape_cast %51 : vector<1x16x22xf32> to vector<16x22xf32>
    %53 = vector.shape_cast %50 : vector<16x22xf32> to vector<1x16x22xf32>
    tpu.vector_store %arg6[%c3_43, %c3_44, %c0_45], %53 {strides = array<i32>} : memref<4x22x22xf32, #tpu.memory_space<vmem>>, vector<1x16x22xf32>,
    %cst_46 = arith.constant 0.000000e+00 : f32
    %54 = vector.broadcast %cst_46 : f32 to vector<16x16xf32>
    %c0_47 = arith.constant 0 : index
    %c0_48 = arith.constant 0 : index
    %c0_49 = arith.constant 0 : index
    %55 = vector.load %arg6[%c0_47, %c0_48, %c0_49] : memref<4x22x22xf32, #tpu.memory_space<vmem>>, vector<1x16x22xf32>
    %56 = vector.shape_cast %55 : vector<1x16x22xf32> to vector<16x22xf32>
    %c0_50 = arith.constant 0 : index
    %57 = memref.load %arg1[%c0_50] : memref<196xf32, #tpu.memory_space<smem>>
    %58 = vector.extract_strided_slice %56 {offsets = [0, 0], sizes = [16, 16], strides = [1, 1]} : vector<16x22xf32> to vector<16x16xf32>
    %59 = vector.broadcast %57 : f32 to vector<16x16xf32>
    %60 = arith.mulf %59, %58 : vector<16x16xf32>
    %61 = arith.addf %54, %60 : vector<16x16xf32>
    %c1_51 = arith.constant 1 : index
    %62 = memref.load %arg1[%c1_51] : memref<196xf32, #tpu.memory_space<smem>>
    %63 = vector.extract_strided_slice %56 {offsets = [0, 1], sizes = [16, 16], strides = [1, 1]} : vector<16x22xf32> to vector<16x16xf32>
    %64 = vector.broadcast %62 : f32 to vector<16x16xf32>
    %65 = arith.mulf %64, %63 : vector<16x16xf32>
    %66 = arith.addf %61, %65 : vector<16x16xf32>
    %c2_52 = arith.constant 2 : index
    %67 = memref.load %arg1[%c2_52] : memref<196xf32, #tpu.memory_space<smem>>
    %68 = vector.extract_strided_slice %56 {offsets = [0, 2], sizes = [16, 16], strides = [1, 1]} : vector<16x22xf32> to vector<16x16xf32>
    %69 = vector.broadcast %67 : f32 to vector<16x16xf32>
    %70 = arith.mulf %69, %68 : vector<16x16xf32>
    %71 = arith.addf %66, %70 : vector<16x16xf32>
    %c3_53 = arith.constant 3 : index
    %72 = memref.load %arg1[%c3_53] : memref<196xf32, #tpu.memory_space<smem>>
    %73 = vector.extract_strided_slice %56 {offsets = [0, 3], sizes = [16, 16], strides = [1, 1]} : vector<16x22xf32> to vector<16x16xf32>
    %74 = vector.broadcast %72 : f32 to vector<16x16xf32>
    %75 = arith.mulf %74, %73 : vector<16x16xf32>
    %76 = arith.addf %71, %75 : vector<16x16xf32>
    %c4 = arith.constant 4 : index
    %77 = memref.load %arg1[%c4] : memref<196xf32, #tpu.memory_space<smem>>
    %78 = vector.extract_strided_slice %56 {offsets = [0, 4], sizes = [16, 16], strides = [1, 1]} : vector<16x22xf32> to vector<16x16xf32>
    %79 = vector.broadcast %77 : f32 to vector<16x16xf32>
    %80 = arith.mulf %79, %78 : vector<16x16xf32>
    %81 = arith.addf %76, %80 : vector<16x16xf32>
    %c5 = arith.constant 5 : index
    %82 = memref.load %arg1[%c5] : memref<196xf32, #tpu.memory_space<smem>>
    %83 = vector.extract_strided_slice %56 {offsets = [0, 5], sizes = [16, 16], strides = [1, 1]} : vector<16x22xf32> to vector<16x16xf32>
    %84 = vector.broadcast %82 : f32 to vector<16x16xf32>
    %85 = arith.mulf %84, %83 : vector<16x16xf32>
    %86 = arith.addf %81, %85 : vector<16x16xf32>
    %c6 = arith.constant 6 : index
    %87 = memref.load %arg1[%c6] : memref<196xf32, #tpu.memory_space<smem>>
    %88 = vector.extract_strided_slice %56 {offsets = [0, 6], sizes = [16, 16], strides = [1, 1]} : vector<16x22xf32> to vector<16x16xf32>
    %89 = vector.broadcast %87 : f32 to vector<16x16xf32>
    %90 = arith.mulf %89, %88 : vector<16x16xf32>
    %91 = arith.addf %86, %90 : vector<16x16xf32>
    %c0_54 = arith.constant 0 : index
    %c1_55 = arith.constant 1 : index
    %c0_56 = arith.constant 0 : index
    %92 = vector.load %arg6[%c0_54, %c1_55, %c0_56] : memref<4x22x22xf32, #tpu.memory_space<vmem>>, vector<1x16x22xf32>
    %93 = vector.shape_cast %92 : vector<1x16x22xf32> to vector<16x22xf32>
    %c7 = arith.constant 7 : index
    %94 = memref.load %arg1[%c7] : memref<196xf32, #tpu.memory_space<smem>>
    %95 = vector.extract_strided_slice %93 {offsets = [0, 0], sizes = [16, 16], strides = [1, 1]} : vector<16x22xf32> to vector<16x16xf32>
    %96 = vector.broadcast %94 : f32 to vector<16x16xf32>
    %97 = arith.mulf %96, %95 : vector<16x16xf32>
    %98 = arith.addf %91, %97 : vector<16x16xf32>
    %c8 = arith.constant 8 : index
    %99 = memref.load %arg1[%c8] : memref<196xf32, #tpu.memory_space<smem>>
    %100 = vector.extract_strided_slice %93 {offsets = [0, 1], sizes = [16, 16], strides = [1, 1]} : vector<16x22xf32> to vector<16x16xf32>
    %101 = vector.broadcast %99 : f32 to vector<16x16xf32>
    %102 = arith.mulf %101, %100 : vector<16x16xf32>
    %103 = arith.addf %98, %102 : vector<16x16xf32>
    %c9 = arith.constant 9 : index
    %104 = memref.load %arg1[%c9] : memref<196xf32, #tpu.memory_space<smem>>
    %105 = vector.extract_strided_slice %93 {offsets = [0, 2], sizes = [16, 16], strides = [1, 1]} : vector<16x22xf32> to vector<16x16xf32>
    %106 = vector.broadcast %104 : f32 to vector<16x16xf32>
    %107 = arith.mulf %106, %105 : vector<16x16xf32>
    %108 = arith.addf %103, %107 : vector<16x16xf32>
    %c10 = arith.constant 10 : index
    %109 = memref.load %arg1[%c10] : memref<196xf32, #tpu.memory_space<smem>>
    %110 = vector.extract_strided_slice %93 {offsets = [0, 3], sizes = [16, 16], strides = [1, 1]} : vector<16x22xf32> to vector<16x16xf32>
    %111 = vector.broadcast %109 : f32 to vector<16x16xf32>
    %112 = arith.mulf %111, %110 : vector<16x16xf32>
    %113 = arith.addf %108, %112 : vector<16x16xf32>
    %c11 = arith.constant 11 : index
    %114 = memref.load %arg1[%c11] : memref<196xf32, #tpu.memory_space<smem>>
    %115 = vector.extract_strided_slice %93 {offsets = [0, 4], sizes = [16, 16], strides = [1, 1]} : vector<16x22xf32> to vector<16x16xf32>
    %116 = vector.broadcast %114 : f32 to vector<16x16xf32>
    %117 = arith.mulf %116, %115 : vector<16x16xf32>
    %118 = arith.addf %113, %117 : vector<16x16xf32>
    %c12 = arith.constant 12 : index
    %119 = memref.load %arg1[%c12] : memref<196xf32, #tpu.memory_space<smem>>
    %120 = vector.extract_strided_slice %93 {offsets = [0, 5], sizes = [16, 16], strides = [1, 1]} : vector<16x22xf32> to vector<16x16xf32>
    %121 = vector.broadcast %119 : f32 to vector<16x16xf32>
    %122 = arith.mulf %121, %120 : vector<16x16xf32>
    %123 = arith.addf %118, %122 : vector<16x16xf32>
    %c13 = arith.constant 13 : index
    %124 = memref.load %arg1[%c13] : memref<196xf32, #tpu.memory_space<smem>>
    %125 = vector.extract_strided_slice %93 {offsets = [0, 6], sizes = [16, 16], strides = [1, 1]} : vector<16x22xf32> to vector<16x16xf32>
    %126 = vector.broadcast %124 : f32 to vector<16x16xf32>
    %127 = arith.mulf %126, %125 : vector<16x16xf32>
    %128 = arith.addf %123, %127 : vector<16x16xf32>
    %c0_57 = arith.constant 0 : index
    %c2_58 = arith.constant 2 : index
    %c0_59 = arith.constant 0 : index
    %129 = vector.load %arg6[%c0_57, %c2_58, %c0_59] : memref<4x22x22xf32, #tpu.memory_space<vmem>>, vector<1x16x22xf32>
    %130 = vector.shape_cast %129 : vector<1x16x22xf32> to vector<16x22xf32>
    %c14 = arith.constant 14 : index
    %131 = memref.load %arg1[%c14] : memref<196xf32, #tpu.memory_space<smem>>
    %132 = vector.extract_strided_slice %130 {offsets = [0, 0], sizes = [16, 16], strides = [1, 1]} : vector<16x22xf32> to vector<16x16xf32>
    %133 = vector.broadcast %131 : f32 to vector<16x16xf32>
    %134 = arith.mulf %133, %132 : vector<16x16xf32>
    %135 = arith.addf %128, %134 : vector<16x16xf32>
    %c15 = arith.constant 15 : index
    %136 = memref.load %arg1[%c15] : memref<196xf32, #tpu.memory_space<smem>>
    %137 = vector.extract_strided_slice %130 {offsets = [0, 1], sizes = [16, 16], strides = [1, 1]} : vector<16x22xf32> to vector<16x16xf32>
    %138 = vector.broadcast %136 : f32 to vector<16x16xf32>
    %139 = arith.mulf %138, %137 : vector<16x16xf32>
    %140 = arith.addf %135, %139 : vector<16x16xf32>
    %c16 = arith.constant 16 : index
    %141 = memref.load %arg1[%c16] : memref<196xf32, #tpu.memory_space<smem>>
    %142 = vector.extract_strided_slice %130 {offsets = [0, 2], sizes = [16, 16], strides = [1, 1]} : vector<16x22xf32> to vector<16x16xf32>
    %143 = vector.broadcast %141 : f32 to vector<16x16xf32>
    %144 = arith.mulf %143, %142 : vector<16x16xf32>
    %145 = arith.addf %140, %144 : vector<16x16xf32>
    %c17 = arith.constant 17 : index
    %146 = memref.load %arg1[%c17] : memref<196xf32, #tpu.memory_space<smem>>
    %147 = vector.extract_strided_slice %130 {offsets = [0, 3], sizes = [16, 16], strides = [1, 1]} : vector<16x22xf32> to vector<16x16xf32>
    %148 = vector.broadcast %146 : f32 to vector<16x16xf32>
    %149 = arith.mulf %148, %147 : vector<16x16xf32>
    %150 = arith.addf %145, %149 : vector<16x16xf32>
    %c18 = arith.constant 18 : index
    %151 = memref.load %arg1[%c18] : memref<196xf32, #tpu.memory_space<smem>>
    %152 = vector.extract_strided_slice %130 {offsets = [0, 4], sizes = [16, 16], strides = [1, 1]} : vector<16x22xf32> to vector<16x16xf32>
    %153 = vector.broadcast %151 : f32 to vector<16x16xf32>
    %154 = arith.mulf %153, %152 : vector<16x16xf32>
    %155 = arith.addf %150, %154 : vector<16x16xf32>
    %c19_60 = arith.constant 19 : index
    %156 = memref.load %arg1[%c19_60] : memref<196xf32, #tpu.memory_space<smem>>
    %157 = vector.extract_strided_slice %130 {offsets = [0, 5], sizes = [16, 16], strides = [1, 1]} : vector<16x22xf32> to vector<16x16xf32>
    %158 = vector.broadcast %156 : f32 to vector<16x16xf32>
    %159 = arith.mulf %158, %157 : vector<16x16xf32>
    %160 = arith.addf %155, %159 : vector<16x16xf32>
    %c20 = arith.constant 20 : index
    %161 = memref.load %arg1[%c20] : memref<196xf32, #tpu.memory_space<smem>>
    %162 = vector.extract_strided_slice %130 {offsets = [0, 6], sizes = [16, 16], strides = [1, 1]} : vector<16x22xf32> to vector<16x16xf32>
    %163 = vector.broadcast %161 : f32 to vector<16x16xf32>
    %164 = arith.mulf %163, %162 : vector<16x16xf32>
    %165 = arith.addf %160, %164 : vector<16x16xf32>
    %c0_61 = arith.constant 0 : index
    %c3_62 = arith.constant 3 : index
    %c0_63 = arith.constant 0 : index
    %166 = vector.load %arg6[%c0_61, %c3_62, %c0_63] : memref<4x22x22xf32, #tpu.memory_space<vmem>>, vector<1x16x22xf32>
    %167 = vector.shape_cast %166 : vector<1x16x22xf32> to vector<16x22xf32>
    %c21 = arith.constant 21 : index
    %168 = memref.load %arg1[%c21] : memref<196xf32, #tpu.memory_space<smem>>
    %169 = vector.extract_strided_slice %167 {offsets = [0, 0], sizes = [16, 16], strides = [1, 1]} : vector<16x22xf32> to vector<16x16xf32>
    %170 = vector.broadcast %168 : f32 to vector<16x16xf32>
    %171 = arith.mulf %170, %169 : vector<16x16xf32>
    %172 = arith.addf %165, %171 : vector<16x16xf32>
    %c22 = arith.constant 22 : index
    %173 = memref.load %arg1[%c22] : memref<196xf32, #tpu.memory_space<smem>>
    %174 = vector.extract_strided_slice %167 {offsets = [0, 1], sizes = [16, 16], strides = [1, 1]} : vector<16x22xf32> to vector<16x16xf32>
    %175 = vector.broadcast %173 : f32 to vector<16x16xf32>
    %176 = arith.mulf %175, %174 : vector<16x16xf32>
    %177 = arith.addf %172, %176 : vector<16x16xf32>
    %c23 = arith.constant 23 : index
    %178 = memref.load %arg1[%c23] : memref<196xf32, #tpu.memory_space<smem>>
    %179 = vector.extract_strided_slice %167 {offsets = [0, 2], sizes = [16, 16], strides = [1, 1]} : vector<16x22xf32> to vector<16x16xf32>
    %180 = vector.broadcast %178 : f32 to vector<16x16xf32>
    %181 = arith.mulf %180, %179 : vector<16x16xf32>
    %182 = arith.addf %177, %181 : vector<16x16xf32>
    %c24 = arith.constant 24 : index
    %183 = memref.load %arg1[%c24] : memref<196xf32, #tpu.memory_space<smem>>
    %184 = vector.extract_strided_slice %167 {offsets = [0, 3], sizes = [16, 16], strides = [1, 1]} : vector<16x22xf32> to vector<16x16xf32>
    %185 = vector.broadcast %183 : f32 to vector<16x16xf32>
    %186 = arith.mulf %185, %184 : vector<16x16xf32>
    %187 = arith.addf %182, %186 : vector<16x16xf32>
    %c25 = arith.constant 25 : index
    %188 = memref.load %arg1[%c25] : memref<196xf32, #tpu.memory_space<smem>>
    %189 = vector.extract_strided_slice %167 {offsets = [0, 4], sizes = [16, 16], strides = [1, 1]} : vector<16x22xf32> to vector<16x16xf32>
    %190 = vector.broadcast %188 : f32 to vector<16x16xf32>
    %191 = arith.mulf %190, %189 : vector<16x16xf32>
    %192 = arith.addf %187, %191 : vector<16x16xf32>
    %c26 = arith.constant 26 : index
    %193 = memref.load %arg1[%c26] : memref<196xf32, #tpu.memory_space<smem>>
    %194 = vector.extract_strided_slice %167 {offsets = [0, 5], sizes = [16, 16], strides = [1, 1]} : vector<16x22xf32> to vector<16x16xf32>
    %195 = vector.broadcast %193 : f32 to vector<16x16xf32>
    %196 = arith.mulf %195, %194 : vector<16x16xf32>
    %197 = arith.addf %192, %196 : vector<16x16xf32>
    %c27 = arith.constant 27 : index
    %198 = memref.load %arg1[%c27] : memref<196xf32, #tpu.memory_space<smem>>
    %199 = vector.extract_strided_slice %167 {offsets = [0, 6], sizes = [16, 16], strides = [1, 1]} : vector<16x22xf32> to vector<16x16xf32>
    %200 = vector.broadcast %198 : f32 to vector<16x16xf32>
    %201 = arith.mulf %200, %199 : vector<16x16xf32>
    %202 = arith.addf %197, %201 : vector<16x16xf32>
    %c0_64 = arith.constant 0 : index
    %c4_65 = arith.constant 4 : index
    %c0_66 = arith.constant 0 : index
    %203 = vector.load %arg6[%c0_64, %c4_65, %c0_66] : memref<4x22x22xf32, #tpu.memory_space<vmem>>, vector<1x16x22xf32>
    %204 = vector.shape_cast %203 : vector<1x16x22xf32> to vector<16x22xf32>
    %c28 = arith.constant 28 : index
    %205 = memref.load %arg1[%c28] : memref<196xf32, #tpu.memory_space<smem>>
    %206 = vector.extract_strided_slice %204 {offsets = [0, 0], sizes = [16, 16], strides = [1, 1]} : vector<16x22xf32> to vector<16x16xf32>
    %207 = vector.broadcast %205 : f32 to vector<16x16xf32>
    %208 = arith.mulf %207, %206 : vector<16x16xf32>
    %209 = arith.addf %202, %208 : vector<16x16xf32>
    %c29 = arith.constant 29 : index
    %210 = memref.load %arg1[%c29] : memref<196xf32, #tpu.memory_space<smem>>
    %211 = vector.extract_strided_slice %204 {offsets = [0, 1], sizes = [16, 16], strides = [1, 1]} : vector<16x22xf32> to vector<16x16xf32>
    %212 = vector.broadcast %210 : f32 to vector<16x16xf32>
    %213 = arith.mulf %212, %211 : vector<16x16xf32>
    %214 = arith.addf %209, %213 : vector<16x16xf32>
    %c30 = arith.constant 30 : index
    %215 = memref.load %arg1[%c30] : memref<196xf32, #tpu.memory_space<smem>>
    %216 = vector.extract_strided_slice %204 {offsets = [0, 2], sizes = [16, 16], strides = [1, 1]} : vector<16x22xf32> to vector<16x16xf32>
    %217 = vector.broadcast %215 : f32 to vector<16x16xf32>
    %218 = arith.mulf %217, %216 : vector<16x16xf32>
    %219 = arith.addf %214, %218 : vector<16x16xf32>
    %c31 = arith.constant 31 : index
    %220 = memref.load %arg1[%c31] : memref<196xf32, #tpu.memory_space<smem>>
    %221 = vector.extract_strided_slice %204 {offsets = [0, 3], sizes = [16, 16], strides = [1, 1]} : vector<16x22xf32> to vector<16x16xf32>
    %222 = vector.broadcast %220 : f32 to vector<16x16xf32>
    %223 = arith.mulf %222, %221 : vector<16x16xf32>
    %224 = arith.addf %219, %223 : vector<16x16xf32>
    %c32 = arith.constant 32 : index
    %225 = memref.load %arg1[%c32] : memref<196xf32, #tpu.memory_space<smem>>
    %226 = vector.extract_strided_slice %204 {offsets = [0, 4], sizes = [16, 16], strides = [1, 1]} : vector<16x22xf32> to vector<16x16xf32>
    %227 = vector.broadcast %225 : f32 to vector<16x16xf32>
    %228 = arith.mulf %227, %226 : vector<16x16xf32>
    %229 = arith.addf %224, %228 : vector<16x16xf32>
    %c33 = arith.constant 33 : index
    %230 = memref.load %arg1[%c33] : memref<196xf32, #tpu.memory_space<smem>>
    %231 = vector.extract_strided_slice %204 {offsets = [0, 5], sizes = [16, 16], strides = [1, 1]} : vector<16x22xf32> to vector<16x16xf32>
    %232 = vector.broadcast %230 : f32 to vector<16x16xf32>
    %233 = arith.mulf %232, %231 : vector<16x16xf32>
    %234 = arith.addf %229, %233 : vector<16x16xf32>
    %c34 = arith.constant 34 : index
    %235 = memref.load %arg1[%c34] : memref<196xf32, #tpu.memory_space<smem>>
    %236 = vector.extract_strided_slice %204 {offsets = [0, 6], sizes = [16, 16], strides = [1, 1]} : vector<16x22xf32> to vector<16x16xf32>
    %237 = vector.broadcast %235 : f32 to vector<16x16xf32>
    %238 = arith.mulf %237, %236 : vector<16x16xf32>
    %239 = arith.addf %234, %238 : vector<16x16xf32>
    %c0_67 = arith.constant 0 : index
    %c5_68 = arith.constant 5 : index
    %c0_69 = arith.constant 0 : index
    %240 = vector.load %arg6[%c0_67, %c5_68, %c0_69] : memref<4x22x22xf32, #tpu.memory_space<vmem>>, vector<1x16x22xf32>
    %241 = vector.shape_cast %240 : vector<1x16x22xf32> to vector<16x22xf32>
    %c35 = arith.constant 35 : index
    %242 = memref.load %arg1[%c35] : memref<196xf32, #tpu.memory_space<smem>>
    %243 = vector.extract_strided_slice %241 {offsets = [0, 0], sizes = [16, 16], strides = [1, 1]} : vector<16x22xf32> to vector<16x16xf32>
    %244 = vector.broadcast %242 : f32 to vector<16x16xf32>
    %245 = arith.mulf %244, %243 : vector<16x16xf32>
    %246 = arith.addf %239, %245 : vector<16x16xf32>
    %c36 = arith.constant 36 : index
    %247 = memref.load %arg1[%c36] : memref<196xf32, #tpu.memory_space<smem>>
    %248 = vector.extract_strided_slice %241 {offsets = [0, 1], sizes = [16, 16], strides = [1, 1]} : vector<16x22xf32> to vector<16x16xf32>
    %249 = vector.broadcast %247 : f32 to vector<16x16xf32>
    %250 = arith.mulf %249, %248 : vector<16x16xf32>
    %251 = arith.addf %246, %250 : vector<16x16xf32>
    %c37 = arith.constant 37 : index
    %252 = memref.load %arg1[%c37] : memref<196xf32, #tpu.memory_space<smem>>
    %253 = vector.extract_strided_slice %241 {offsets = [0, 2], sizes = [16, 16], strides = [1, 1]} : vector<16x22xf32> to vector<16x16xf32>
    %254 = vector.broadcast %252 : f32 to vector<16x16xf32>
    %255 = arith.mulf %254, %253 : vector<16x16xf32>
    %256 = arith.addf %251, %255 : vector<16x16xf32>
    %c38 = arith.constant 38 : index
    %257 = memref.load %arg1[%c38] : memref<196xf32, #tpu.memory_space<smem>>
    %258 = vector.extract_strided_slice %241 {offsets = [0, 3], sizes = [16, 16], strides = [1, 1]} : vector<16x22xf32> to vector<16x16xf32>
    %259 = vector.broadcast %257 : f32 to vector<16x16xf32>
    %260 = arith.mulf %259, %258 : vector<16x16xf32>
    %261 = arith.addf %256, %260 : vector<16x16xf32>
    %c39 = arith.constant 39 : index
    %262 = memref.load %arg1[%c39] : memref<196xf32, #tpu.memory_space<smem>>
    %263 = vector.extract_strided_slice %241 {offsets = [0, 4], sizes = [16, 16], strides = [1, 1]} : vector<16x22xf32> to vector<16x16xf32>
    %264 = vector.broadcast %262 : f32 to vector<16x16xf32>
    %265 = arith.mulf %264, %263 : vector<16x16xf32>
    %266 = arith.addf %261, %265 : vector<16x16xf32>
    %c40 = arith.constant 40 : index
    %267 = memref.load %arg1[%c40] : memref<196xf32, #tpu.memory_space<smem>>
    %268 = vector.extract_strided_slice %241 {offsets = [0, 5], sizes = [16, 16], strides = [1, 1]} : vector<16x22xf32> to vector<16x16xf32>
    %269 = vector.broadcast %267 : f32 to vector<16x16xf32>
    %270 = arith.mulf %269, %268 : vector<16x16xf32>
    %271 = arith.addf %266, %270 : vector<16x16xf32>
    %c41 = arith.constant 41 : index
    %272 = memref.load %arg1[%c41] : memref<196xf32, #tpu.memory_space<smem>>
    %273 = vector.extract_strided_slice %241 {offsets = [0, 6], sizes = [16, 16], strides = [1, 1]} : vector<16x22xf32> to vector<16x16xf32>
    %274 = vector.broadcast %272 : f32 to vector<16x16xf32>
    %275 = arith.mulf %274, %273 : vector<16x16xf32>
    %276 = arith.addf %271, %275 : vector<16x16xf32>
    %c0_70 = arith.constant 0 : index
    %c6_71 = arith.constant 6 : index
    %c0_72 = arith.constant 0 : index
    %277 = vector.load %arg6[%c0_70, %c6_71, %c0_72] : memref<4x22x22xf32, #tpu.memory_space<vmem>>, vector<1x16x22xf32>
    %278 = vector.shape_cast %277 : vector<1x16x22xf32> to vector<16x22xf32>
    %c42 = arith.constant 42 : index
    %279 = memref.load %arg1[%c42] : memref<196xf32, #tpu.memory_space<smem>>
    %280 = vector.extract_strided_slice %278 {offsets = [0, 0], sizes = [16, 16], strides = [1, 1]} : vector<16x22xf32> to vector<16x16xf32>
    %281 = vector.broadcast %279 : f32 to vector<16x16xf32>
    %282 = arith.mulf %281, %280 : vector<16x16xf32>
    %283 = arith.addf %276, %282 : vector<16x16xf32>
    %c43 = arith.constant 43 : index
    %284 = memref.load %arg1[%c43] : memref<196xf32, #tpu.memory_space<smem>>
    %285 = vector.extract_strided_slice %278 {offsets = [0, 1], sizes = [16, 16], strides = [1, 1]} : vector<16x22xf32> to vector<16x16xf32>
    %286 = vector.broadcast %284 : f32 to vector<16x16xf32>
    %287 = arith.mulf %286, %285 : vector<16x16xf32>
    %288 = arith.addf %283, %287 : vector<16x16xf32>
    %c44 = arith.constant 44 : index
    %289 = memref.load %arg1[%c44] : memref<196xf32, #tpu.memory_space<smem>>
    %290 = vector.extract_strided_slice %278 {offsets = [0, 2], sizes = [16, 16], strides = [1, 1]} : vector<16x22xf32> to vector<16x16xf32>
    %291 = vector.broadcast %289 : f32 to vector<16x16xf32>
    %292 = arith.mulf %291, %290 : vector<16x16xf32>
    %293 = arith.addf %288, %292 : vector<16x16xf32>
    %c45 = arith.constant 45 : index
    %294 = memref.load %arg1[%c45] : memref<196xf32, #tpu.memory_space<smem>>
    %295 = vector.extract_strided_slice %278 {offsets = [0, 3], sizes = [16, 16], strides = [1, 1]} : vector<16x22xf32> to vector<16x16xf32>
    %296 = vector.broadcast %294 : f32 to vector<16x16xf32>
    %297 = arith.mulf %296, %295 : vector<16x16xf32>
    %298 = arith.addf %293, %297 : vector<16x16xf32>
    %c46 = arith.constant 46 : index
    %299 = memref.load %arg1[%c46] : memref<196xf32, #tpu.memory_space<smem>>
    %300 = vector.extract_strided_slice %278 {offsets = [0, 4], sizes = [16, 16], strides = [1, 1]} : vector<16x22xf32> to vector<16x16xf32>
    %301 = vector.broadcast %299 : f32 to vector<16x16xf32>
    %302 = arith.mulf %301, %300 : vector<16x16xf32>
    %303 = arith.addf %298, %302 : vector<16x16xf32>
    %c47 = arith.constant 47 : index
    %304 = memref.load %arg1[%c47] : memref<196xf32, #tpu.memory_space<smem>>
    %305 = vector.extract_strided_slice %278 {offsets = [0, 5], sizes = [16, 16], strides = [1, 1]} : vector<16x22xf32> to vector<16x16xf32>
    %306 = vector.broadcast %304 : f32 to vector<16x16xf32>
    %307 = arith.mulf %306, %305 : vector<16x16xf32>
    %308 = arith.addf %303, %307 : vector<16x16xf32>
    %c48 = arith.constant 48 : index
    %309 = memref.load %arg1[%c48] : memref<196xf32, #tpu.memory_space<smem>>
    %310 = vector.extract_strided_slice %278 {offsets = [0, 6], sizes = [16, 16], strides = [1, 1]} : vector<16x22xf32> to vector<16x16xf32>
    %311 = vector.broadcast %309 : f32 to vector<16x16xf32>
    %312 = arith.mulf %311, %310 : vector<16x16xf32>
    %313 = arith.addf %308, %312 : vector<16x16xf32>
    %cst_73 = arith.constant 0.000000e+00 : f32
    %314 = vector.broadcast %cst_73 : f32 to vector<16x16xf32>
    %c1_74 = arith.constant 1 : index
    %c0_75 = arith.constant 0 : index
    %c0_76 = arith.constant 0 : index
    %315 = vector.load %arg6[%c1_74, %c0_75, %c0_76] : memref<4x22x22xf32, #tpu.memory_space<vmem>>, vector<1x16x22xf32>
    %316 = vector.shape_cast %315 : vector<1x16x22xf32> to vector<16x22xf32>
    %c49 = arith.constant 49 : index
    %317 = memref.load %arg1[%c49] : memref<196xf32, #tpu.memory_space<smem>>
    %318 = vector.extract_strided_slice %316 {offsets = [0, 0], sizes = [16, 16], strides = [1, 1]} : vector<16x22xf32> to vector<16x16xf32>
    %319 = vector.broadcast %317 : f32 to vector<16x16xf32>
    %320 = arith.mulf %319, %318 : vector<16x16xf32>
    %321 = arith.addf %314, %320 : vector<16x16xf32>
    %c50 = arith.constant 50 : index
    %322 = memref.load %arg1[%c50] : memref<196xf32, #tpu.memory_space<smem>>
    %323 = vector.extract_strided_slice %316 {offsets = [0, 1], sizes = [16, 16], strides = [1, 1]} : vector<16x22xf32> to vector<16x16xf32>
    %324 = vector.broadcast %322 : f32 to vector<16x16xf32>
    %325 = arith.mulf %324, %323 : vector<16x16xf32>
    %326 = arith.addf %321, %325 : vector<16x16xf32>
    %c51 = arith.constant 51 : index
    %327 = memref.load %arg1[%c51] : memref<196xf32, #tpu.memory_space<smem>>
    %328 = vector.extract_strided_slice %316 {offsets = [0, 2], sizes = [16, 16], strides = [1, 1]} : vector<16x22xf32> to vector<16x16xf32>
    %329 = vector.broadcast %327 : f32 to vector<16x16xf32>
    %330 = arith.mulf %329, %328 : vector<16x16xf32>
    %331 = arith.addf %326, %330 : vector<16x16xf32>
    %c52 = arith.constant 52 : index
    %332 = memref.load %arg1[%c52] : memref<196xf32, #tpu.memory_space<smem>>
    %333 = vector.extract_strided_slice %316 {offsets = [0, 3], sizes = [16, 16], strides = [1, 1]} : vector<16x22xf32> to vector<16x16xf32>
    %334 = vector.broadcast %332 : f32 to vector<16x16xf32>
    %335 = arith.mulf %334, %333 : vector<16x16xf32>
    %336 = arith.addf %331, %335 : vector<16x16xf32>
    %c53 = arith.constant 53 : index
    %337 = memref.load %arg1[%c53] : memref<196xf32, #tpu.memory_space<smem>>
    %338 = vector.extract_strided_slice %316 {offsets = [0, 4], sizes = [16, 16], strides = [1, 1]} : vector<16x22xf32> to vector<16x16xf32>
    %339 = vector.broadcast %337 : f32 to vector<16x16xf32>
    %340 = arith.mulf %339, %338 : vector<16x16xf32>
    %341 = arith.addf %336, %340 : vector<16x16xf32>
    %c54 = arith.constant 54 : index
    %342 = memref.load %arg1[%c54] : memref<196xf32, #tpu.memory_space<smem>>
    %343 = vector.extract_strided_slice %316 {offsets = [0, 5], sizes = [16, 16], strides = [1, 1]} : vector<16x22xf32> to vector<16x16xf32>
    %344 = vector.broadcast %342 : f32 to vector<16x16xf32>
    %345 = arith.mulf %344, %343 : vector<16x16xf32>
    %346 = arith.addf %341, %345 : vector<16x16xf32>
    %c55 = arith.constant 55 : index
    %347 = memref.load %arg1[%c55] : memref<196xf32, #tpu.memory_space<smem>>
    %348 = vector.extract_strided_slice %316 {offsets = [0, 6], sizes = [16, 16], strides = [1, 1]} : vector<16x22xf32> to vector<16x16xf32>
    %349 = vector.broadcast %347 : f32 to vector<16x16xf32>
    %350 = arith.mulf %349, %348 : vector<16x16xf32>
    %351 = arith.addf %346, %350 : vector<16x16xf32>
    %c1_77 = arith.constant 1 : index
    %c1_78 = arith.constant 1 : index
    %c0_79 = arith.constant 0 : index
    %352 = vector.load %arg6[%c1_77, %c1_78, %c0_79] : memref<4x22x22xf32, #tpu.memory_space<vmem>>, vector<1x16x22xf32>
    %353 = vector.shape_cast %352 : vector<1x16x22xf32> to vector<16x22xf32>
    %c56 = arith.constant 56 : index
    %354 = memref.load %arg1[%c56] : memref<196xf32, #tpu.memory_space<smem>>
    %355 = vector.extract_strided_slice %353 {offsets = [0, 0], sizes = [16, 16], strides = [1, 1]} : vector<16x22xf32> to vector<16x16xf32>
    %356 = vector.broadcast %354 : f32 to vector<16x16xf32>
    %357 = arith.mulf %356, %355 : vector<16x16xf32>
    %358 = arith.addf %351, %357 : vector<16x16xf32>
    %c57 = arith.constant 57 : index
    %359 = memref.load %arg1[%c57] : memref<196xf32, #tpu.memory_space<smem>>
    %360 = vector.extract_strided_slice %353 {offsets = [0, 1], sizes = [16, 16], strides = [1, 1]} : vector<16x22xf32> to vector<16x16xf32>
    %361 = vector.broadcast %359 : f32 to vector<16x16xf32>
    %362 = arith.mulf %361, %360 : vector<16x16xf32>
    %363 = arith.addf %358, %362 : vector<16x16xf32>
    %c58 = arith.constant 58 : index
    %364 = memref.load %arg1[%c58] : memref<196xf32, #tpu.memory_space<smem>>
    %365 = vector.extract_strided_slice %353 {offsets = [0, 2], sizes = [16, 16], strides = [1, 1]} : vector<16x22xf32> to vector<16x16xf32>
    %366 = vector.broadcast %364 : f32 to vector<16x16xf32>
    %367 = arith.mulf %366, %365 : vector<16x16xf32>
    %368 = arith.addf %363, %367 : vector<16x16xf32>
    %c59 = arith.constant 59 : index
    %369 = memref.load %arg1[%c59] : memref<196xf32, #tpu.memory_space<smem>>
    %370 = vector.extract_strided_slice %353 {offsets = [0, 3], sizes = [16, 16], strides = [1, 1]} : vector<16x22xf32> to vector<16x16xf32>
    %371 = vector.broadcast %369 : f32 to vector<16x16xf32>
    %372 = arith.mulf %371, %370 : vector<16x16xf32>
    %373 = arith.addf %368, %372 : vector<16x16xf32>
    %c60 = arith.constant 60 : index
    %374 = memref.load %arg1[%c60] : memref<196xf32, #tpu.memory_space<smem>>
    %375 = vector.extract_strided_slice %353 {offsets = [0, 4], sizes = [16, 16], strides = [1, 1]} : vector<16x22xf32> to vector<16x16xf32>
    %376 = vector.broadcast %374 : f32 to vector<16x16xf32>
    %377 = arith.mulf %376, %375 : vector<16x16xf32>
    %378 = arith.addf %373, %377 : vector<16x16xf32>
    %c61 = arith.constant 61 : index
    %379 = memref.load %arg1[%c61] : memref<196xf32, #tpu.memory_space<smem>>
    %380 = vector.extract_strided_slice %353 {offsets = [0, 5], sizes = [16, 16], strides = [1, 1]} : vector<16x22xf32> to vector<16x16xf32>
    %381 = vector.broadcast %379 : f32 to vector<16x16xf32>
    %382 = arith.mulf %381, %380 : vector<16x16xf32>
    %383 = arith.addf %378, %382 : vector<16x16xf32>
    %c62 = arith.constant 62 : index
    %384 = memref.load %arg1[%c62] : memref<196xf32, #tpu.memory_space<smem>>
    %385 = vector.extract_strided_slice %353 {offsets = [0, 6], sizes = [16, 16], strides = [1, 1]} : vector<16x22xf32> to vector<16x16xf32>
    %386 = vector.broadcast %384 : f32 to vector<16x16xf32>
    %387 = arith.mulf %386, %385 : vector<16x16xf32>
    %388 = arith.addf %383, %387 : vector<16x16xf32>
    %c1_80 = arith.constant 1 : index
    %c2_81 = arith.constant 2 : index
    %c0_82 = arith.constant 0 : index
    %389 = vector.load %arg6[%c1_80, %c2_81, %c0_82] : memref<4x22x22xf32, #tpu.memory_space<vmem>>, vector<1x16x22xf32>
    %390 = vector.shape_cast %389 : vector<1x16x22xf32> to vector<16x22xf32>
    %c63 = arith.constant 63 : index
    %391 = memref.load %arg1[%c63] : memref<196xf32, #tpu.memory_space<smem>>
    %392 = vector.extract_strided_slice %390 {offsets = [0, 0], sizes = [16, 16], strides = [1, 1]} : vector<16x22xf32> to vector<16x16xf32>
    %393 = vector.broadcast %391 : f32 to vector<16x16xf32>
    %394 = arith.mulf %393, %392 : vector<16x16xf32>
    %395 = arith.addf %388, %394 : vector<16x16xf32>
    %c64 = arith.constant 64 : index
    %396 = memref.load %arg1[%c64] : memref<196xf32, #tpu.memory_space<smem>>
    %397 = vector.extract_strided_slice %390 {offsets = [0, 1], sizes = [16, 16], strides = [1, 1]} : vector<16x22xf32> to vector<16x16xf32>
    %398 = vector.broadcast %396 : f32 to vector<16x16xf32>
    %399 = arith.mulf %398, %397 : vector<16x16xf32>
    %400 = arith.addf %395, %399 : vector<16x16xf32>
    %c65 = arith.constant 65 : index
    %401 = memref.load %arg1[%c65] : memref<196xf32, #tpu.memory_space<smem>>
    %402 = vector.extract_strided_slice %390 {offsets = [0, 2], sizes = [16, 16], strides = [1, 1]} : vector<16x22xf32> to vector<16x16xf32>
    %403 = vector.broadcast %401 : f32 to vector<16x16xf32>
    %404 = arith.mulf %403, %402 : vector<16x16xf32>
    %405 = arith.addf %400, %404 : vector<16x16xf32>
    %c66 = arith.constant 66 : index
    %406 = memref.load %arg1[%c66] : memref<196xf32, #tpu.memory_space<smem>>
    %407 = vector.extract_strided_slice %390 {offsets = [0, 3], sizes = [16, 16], strides = [1, 1]} : vector<16x22xf32> to vector<16x16xf32>
    %408 = vector.broadcast %406 : f32 to vector<16x16xf32>
    %409 = arith.mulf %408, %407 : vector<16x16xf32>
    %410 = arith.addf %405, %409 : vector<16x16xf32>
    %c67 = arith.constant 67 : index
    %411 = memref.load %arg1[%c67] : memref<196xf32, #tpu.memory_space<smem>>
    %412 = vector.extract_strided_slice %390 {offsets = [0, 4], sizes = [16, 16], strides = [1, 1]} : vector<16x22xf32> to vector<16x16xf32>
    %413 = vector.broadcast %411 : f32 to vector<16x16xf32>
    %414 = arith.mulf %413, %412 : vector<16x16xf32>
    %415 = arith.addf %410, %414 : vector<16x16xf32>
    %c68 = arith.constant 68 : index
    %416 = memref.load %arg1[%c68] : memref<196xf32, #tpu.memory_space<smem>>
    %417 = vector.extract_strided_slice %390 {offsets = [0, 5], sizes = [16, 16], strides = [1, 1]} : vector<16x22xf32> to vector<16x16xf32>
    %418 = vector.broadcast %416 : f32 to vector<16x16xf32>
    %419 = arith.mulf %418, %417 : vector<16x16xf32>
    %420 = arith.addf %415, %419 : vector<16x16xf32>
    %c69 = arith.constant 69 : index
    %421 = memref.load %arg1[%c69] : memref<196xf32, #tpu.memory_space<smem>>
    %422 = vector.extract_strided_slice %390 {offsets = [0, 6], sizes = [16, 16], strides = [1, 1]} : vector<16x22xf32> to vector<16x16xf32>
    %423 = vector.broadcast %421 : f32 to vector<16x16xf32>
    %424 = arith.mulf %423, %422 : vector<16x16xf32>
    %425 = arith.addf %420, %424 : vector<16x16xf32>
    %c1_83 = arith.constant 1 : index
    %c3_84 = arith.constant 3 : index
    %c0_85 = arith.constant 0 : index
    %426 = vector.load %arg6[%c1_83, %c3_84, %c0_85] : memref<4x22x22xf32, #tpu.memory_space<vmem>>, vector<1x16x22xf32>
    %427 = vector.shape_cast %426 : vector<1x16x22xf32> to vector<16x22xf32>
    %c70 = arith.constant 70 : index
    %428 = memref.load %arg1[%c70] : memref<196xf32, #tpu.memory_space<smem>>
    %429 = vector.extract_strided_slice %427 {offsets = [0, 0], sizes = [16, 16], strides = [1, 1]} : vector<16x22xf32> to vector<16x16xf32>
    %430 = vector.broadcast %428 : f32 to vector<16x16xf32>
    %431 = arith.mulf %430, %429 : vector<16x16xf32>
    %432 = arith.addf %425, %431 : vector<16x16xf32>
    %c71 = arith.constant 71 : index
    %433 = memref.load %arg1[%c71] : memref<196xf32, #tpu.memory_space<smem>>
    %434 = vector.extract_strided_slice %427 {offsets = [0, 1], sizes = [16, 16], strides = [1, 1]} : vector<16x22xf32> to vector<16x16xf32>
    %435 = vector.broadcast %433 : f32 to vector<16x16xf32>
    %436 = arith.mulf %435, %434 : vector<16x16xf32>
    %437 = arith.addf %432, %436 : vector<16x16xf32>
    %c72 = arith.constant 72 : index
    %438 = memref.load %arg1[%c72] : memref<196xf32, #tpu.memory_space<smem>>
    %439 = vector.extract_strided_slice %427 {offsets = [0, 2], sizes = [16, 16], strides = [1, 1]} : vector<16x22xf32> to vector<16x16xf32>
    %440 = vector.broadcast %438 : f32 to vector<16x16xf32>
    %441 = arith.mulf %440, %439 : vector<16x16xf32>
    %442 = arith.addf %437, %441 : vector<16x16xf32>
    %c73 = arith.constant 73 : index
    %443 = memref.load %arg1[%c73] : memref<196xf32, #tpu.memory_space<smem>>
    %444 = vector.extract_strided_slice %427 {offsets = [0, 3], sizes = [16, 16], strides = [1, 1]} : vector<16x22xf32> to vector<16x16xf32>
    %445 = vector.broadcast %443 : f32 to vector<16x16xf32>
    %446 = arith.mulf %445, %444 : vector<16x16xf32>
    %447 = arith.addf %442, %446 : vector<16x16xf32>
    %c74 = arith.constant 74 : index
    %448 = memref.load %arg1[%c74] : memref<196xf32, #tpu.memory_space<smem>>
    %449 = vector.extract_strided_slice %427 {offsets = [0, 4], sizes = [16, 16], strides = [1, 1]} : vector<16x22xf32> to vector<16x16xf32>
    %450 = vector.broadcast %448 : f32 to vector<16x16xf32>
    %451 = arith.mulf %450, %449 : vector<16x16xf32>
    %452 = arith.addf %447, %451 : vector<16x16xf32>
    %c75 = arith.constant 75 : index
    %453 = memref.load %arg1[%c75] : memref<196xf32, #tpu.memory_space<smem>>
    %454 = vector.extract_strided_slice %427 {offsets = [0, 5], sizes = [16, 16], strides = [1, 1]} : vector<16x22xf32> to vector<16x16xf32>
    %455 = vector.broadcast %453 : f32 to vector<16x16xf32>
    %456 = arith.mulf %455, %454 : vector<16x16xf32>
    %457 = arith.addf %452, %456 : vector<16x16xf32>
    %c76 = arith.constant 76 : index
    %458 = memref.load %arg1[%c76] : memref<196xf32, #tpu.memory_space<smem>>
    %459 = vector.extract_strided_slice %427 {offsets = [0, 6], sizes = [16, 16], strides = [1, 1]} : vector<16x22xf32> to vector<16x16xf32>
    %460 = vector.broadcast %458 : f32 to vector<16x16xf32>
    %461 = arith.mulf %460, %459 : vector<16x16xf32>
    %462 = arith.addf %457, %461 : vector<16x16xf32>
    %c1_86 = arith.constant 1 : index
    %c4_87 = arith.constant 4 : index
    %c0_88 = arith.constant 0 : index
    %463 = vector.load %arg6[%c1_86, %c4_87, %c0_88] : memref<4x22x22xf32, #tpu.memory_space<vmem>>, vector<1x16x22xf32>
    %464 = vector.shape_cast %463 : vector<1x16x22xf32> to vector<16x22xf32>
    %c77 = arith.constant 77 : index
    %465 = memref.load %arg1[%c77] : memref<196xf32, #tpu.memory_space<smem>>
    %466 = vector.extract_strided_slice %464 {offsets = [0, 0], sizes = [16, 16], strides = [1, 1]} : vector<16x22xf32> to vector<16x16xf32>
    %467 = vector.broadcast %465 : f32 to vector<16x16xf32>
    %468 = arith.mulf %467, %466 : vector<16x16xf32>
    %469 = arith.addf %462, %468 : vector<16x16xf32>
    %c78 = arith.constant 78 : index
    %470 = memref.load %arg1[%c78] : memref<196xf32, #tpu.memory_space<smem>>
    %471 = vector.extract_strided_slice %464 {offsets = [0, 1], sizes = [16, 16], strides = [1, 1]} : vector<16x22xf32> to vector<16x16xf32>
    %472 = vector.broadcast %470 : f32 to vector<16x16xf32>
    %473 = arith.mulf %472, %471 : vector<16x16xf32>
    %474 = arith.addf %469, %473 : vector<16x16xf32>
    %c79 = arith.constant 79 : index
    %475 = memref.load %arg1[%c79] : memref<196xf32, #tpu.memory_space<smem>>
    %476 = vector.extract_strided_slice %464 {offsets = [0, 2], sizes = [16, 16], strides = [1, 1]} : vector<16x22xf32> to vector<16x16xf32>
    %477 = vector.broadcast %475 : f32 to vector<16x16xf32>
    %478 = arith.mulf %477, %476 : vector<16x16xf32>
    %479 = arith.addf %474, %478 : vector<16x16xf32>
    %c80 = arith.constant 80 : index
    %480 = memref.load %arg1[%c80] : memref<196xf32, #tpu.memory_space<smem>>
    %481 = vector.extract_strided_slice %464 {offsets = [0, 3], sizes = [16, 16], strides = [1, 1]} : vector<16x22xf32> to vector<16x16xf32>
    %482 = vector.broadcast %480 : f32 to vector<16x16xf32>
    %483 = arith.mulf %482, %481 : vector<16x16xf32>
    %484 = arith.addf %479, %483 : vector<16x16xf32>
    %c81 = arith.constant 81 : index
    %485 = memref.load %arg1[%c81] : memref<196xf32, #tpu.memory_space<smem>>
    %486 = vector.extract_strided_slice %464 {offsets = [0, 4], sizes = [16, 16], strides = [1, 1]} : vector<16x22xf32> to vector<16x16xf32>
    %487 = vector.broadcast %485 : f32 to vector<16x16xf32>
    %488 = arith.mulf %487, %486 : vector<16x16xf32>
    %489 = arith.addf %484, %488 : vector<16x16xf32>
    %c82 = arith.constant 82 : index
    %490 = memref.load %arg1[%c82] : memref<196xf32, #tpu.memory_space<smem>>
    %491 = vector.extract_strided_slice %464 {offsets = [0, 5], sizes = [16, 16], strides = [1, 1]} : vector<16x22xf32> to vector<16x16xf32>
    %492 = vector.broadcast %490 : f32 to vector<16x16xf32>
    %493 = arith.mulf %492, %491 : vector<16x16xf32>
    %494 = arith.addf %489, %493 : vector<16x16xf32>
    %c83 = arith.constant 83 : index
    %495 = memref.load %arg1[%c83] : memref<196xf32, #tpu.memory_space<smem>>
    %496 = vector.extract_strided_slice %464 {offsets = [0, 6], sizes = [16, 16], strides = [1, 1]} : vector<16x22xf32> to vector<16x16xf32>
    %497 = vector.broadcast %495 : f32 to vector<16x16xf32>
    %498 = arith.mulf %497, %496 : vector<16x16xf32>
    %499 = arith.addf %494, %498 : vector<16x16xf32>
    %c1_89 = arith.constant 1 : index
    %c5_90 = arith.constant 5 : index
    %c0_91 = arith.constant 0 : index
    %500 = vector.load %arg6[%c1_89, %c5_90, %c0_91] : memref<4x22x22xf32, #tpu.memory_space<vmem>>, vector<1x16x22xf32>
    %501 = vector.shape_cast %500 : vector<1x16x22xf32> to vector<16x22xf32>
    %c84 = arith.constant 84 : index
    %502 = memref.load %arg1[%c84] : memref<196xf32, #tpu.memory_space<smem>>
    %503 = vector.extract_strided_slice %501 {offsets = [0, 0], sizes = [16, 16], strides = [1, 1]} : vector<16x22xf32> to vector<16x16xf32>
    %504 = vector.broadcast %502 : f32 to vector<16x16xf32>
    %505 = arith.mulf %504, %503 : vector<16x16xf32>
    %506 = arith.addf %499, %505 : vector<16x16xf32>
    %c85 = arith.constant 85 : index
    %507 = memref.load %arg1[%c85] : memref<196xf32, #tpu.memory_space<smem>>
    %508 = vector.extract_strided_slice %501 {offsets = [0, 1], sizes = [16, 16], strides = [1, 1]} : vector<16x22xf32> to vector<16x16xf32>
    %509 = vector.broadcast %507 : f32 to vector<16x16xf32>
    %510 = arith.mulf %509, %508 : vector<16x16xf32>
    %511 = arith.addf %506, %510 : vector<16x16xf32>
    %c86 = arith.constant 86 : index
    %512 = memref.load %arg1[%c86] : memref<196xf32, #tpu.memory_space<smem>>
    %513 = vector.extract_strided_slice %501 {offsets = [0, 2], sizes = [16, 16], strides = [1, 1]} : vector<16x22xf32> to vector<16x16xf32>
    %514 = vector.broadcast %512 : f32 to vector<16x16xf32>
    %515 = arith.mulf %514, %513 : vector<16x16xf32>
    %516 = arith.addf %511, %515 : vector<16x16xf32>
    %c87 = arith.constant 87 : index
    %517 = memref.load %arg1[%c87] : memref<196xf32, #tpu.memory_space<smem>>
    %518 = vector.extract_strided_slice %501 {offsets = [0, 3], sizes = [16, 16], strides = [1, 1]} : vector<16x22xf32> to vector<16x16xf32>
    %519 = vector.broadcast %517 : f32 to vector<16x16xf32>
    %520 = arith.mulf %519, %518 : vector<16x16xf32>
    %521 = arith.addf %516, %520 : vector<16x16xf32>
    %c88 = arith.constant 88 : index
    %522 = memref.load %arg1[%c88] : memref<196xf32, #tpu.memory_space<smem>>
    %523 = vector.extract_strided_slice %501 {offsets = [0, 4], sizes = [16, 16], strides = [1, 1]} : vector<16x22xf32> to vector<16x16xf32>
    %524 = vector.broadcast %522 : f32 to vector<16x16xf32>
    %525 = arith.mulf %524, %523 : vector<16x16xf32>
    %526 = arith.addf %521, %525 : vector<16x16xf32>
    %c89 = arith.constant 89 : index
    %527 = memref.load %arg1[%c89] : memref<196xf32, #tpu.memory_space<smem>>
    %528 = vector.extract_strided_slice %501 {offsets = [0, 5], sizes = [16, 16], strides = [1, 1]} : vector<16x22xf32> to vector<16x16xf32>
    %529 = vector.broadcast %527 : f32 to vector<16x16xf32>
    %530 = arith.mulf %529, %528 : vector<16x16xf32>
    %531 = arith.addf %526, %530 : vector<16x16xf32>
    %c90 = arith.constant 90 : index
    %532 = memref.load %arg1[%c90] : memref<196xf32, #tpu.memory_space<smem>>
    %533 = vector.extract_strided_slice %501 {offsets = [0, 6], sizes = [16, 16], strides = [1, 1]} : vector<16x22xf32> to vector<16x16xf32>
    %534 = vector.broadcast %532 : f32 to vector<16x16xf32>
    %535 = arith.mulf %534, %533 : vector<16x16xf32>
    %536 = arith.addf %531, %535 : vector<16x16xf32>
    %c1_92 = arith.constant 1 : index
    %c6_93 = arith.constant 6 : index
    %c0_94 = arith.constant 0 : index
    %537 = vector.load %arg6[%c1_92, %c6_93, %c0_94] : memref<4x22x22xf32, #tpu.memory_space<vmem>>, vector<1x16x22xf32>
    %538 = vector.shape_cast %537 : vector<1x16x22xf32> to vector<16x22xf32>
    %c91 = arith.constant 91 : index
    %539 = memref.load %arg1[%c91] : memref<196xf32, #tpu.memory_space<smem>>
    %540 = vector.extract_strided_slice %538 {offsets = [0, 0], sizes = [16, 16], strides = [1, 1]} : vector<16x22xf32> to vector<16x16xf32>
    %541 = vector.broadcast %539 : f32 to vector<16x16xf32>
    %542 = arith.mulf %541, %540 : vector<16x16xf32>
    %543 = arith.addf %536, %542 : vector<16x16xf32>
    %c92 = arith.constant 92 : index
    %544 = memref.load %arg1[%c92] : memref<196xf32, #tpu.memory_space<smem>>
    %545 = vector.extract_strided_slice %538 {offsets = [0, 1], sizes = [16, 16], strides = [1, 1]} : vector<16x22xf32> to vector<16x16xf32>
    %546 = vector.broadcast %544 : f32 to vector<16x16xf32>
    %547 = arith.mulf %546, %545 : vector<16x16xf32>
    %548 = arith.addf %543, %547 : vector<16x16xf32>
    %c93 = arith.constant 93 : index
    %549 = memref.load %arg1[%c93] : memref<196xf32, #tpu.memory_space<smem>>
    %550 = vector.extract_strided_slice %538 {offsets = [0, 2], sizes = [16, 16], strides = [1, 1]} : vector<16x22xf32> to vector<16x16xf32>
    %551 = vector.broadcast %549 : f32 to vector<16x16xf32>
    %552 = arith.mulf %551, %550 : vector<16x16xf32>
    %553 = arith.addf %548, %552 : vector<16x16xf32>
    %c94 = arith.constant 94 : index
    %554 = memref.load %arg1[%c94] : memref<196xf32, #tpu.memory_space<smem>>
    %555 = vector.extract_strided_slice %538 {offsets = [0, 3], sizes = [16, 16], strides = [1, 1]} : vector<16x22xf32> to vector<16x16xf32>
    %556 = vector.broadcast %554 : f32 to vector<16x16xf32>
    %557 = arith.mulf %556, %555 : vector<16x16xf32>
    %558 = arith.addf %553, %557 : vector<16x16xf32>
    %c95 = arith.constant 95 : index
    %559 = memref.load %arg1[%c95] : memref<196xf32, #tpu.memory_space<smem>>
    %560 = vector.extract_strided_slice %538 {offsets = [0, 4], sizes = [16, 16], strides = [1, 1]} : vector<16x22xf32> to vector<16x16xf32>
    %561 = vector.broadcast %559 : f32 to vector<16x16xf32>
    %562 = arith.mulf %561, %560 : vector<16x16xf32>
    %563 = arith.addf %558, %562 : vector<16x16xf32>
    %c96 = arith.constant 96 : index
    %564 = memref.load %arg1[%c96] : memref<196xf32, #tpu.memory_space<smem>>
    %565 = vector.extract_strided_slice %538 {offsets = [0, 5], sizes = [16, 16], strides = [1, 1]} : vector<16x22xf32> to vector<16x16xf32>
    %566 = vector.broadcast %564 : f32 to vector<16x16xf32>
    %567 = arith.mulf %566, %565 : vector<16x16xf32>
    %568 = arith.addf %563, %567 : vector<16x16xf32>
    %c97 = arith.constant 97 : index
    %569 = memref.load %arg1[%c97] : memref<196xf32, #tpu.memory_space<smem>>
    %570 = vector.extract_strided_slice %538 {offsets = [0, 6], sizes = [16, 16], strides = [1, 1]} : vector<16x22xf32> to vector<16x16xf32>
    %571 = vector.broadcast %569 : f32 to vector<16x16xf32>
    %572 = arith.mulf %571, %570 : vector<16x16xf32>
    %573 = arith.addf %568, %572 : vector<16x16xf32>
    %cst_95 = arith.constant 0.000000e+00 : f32
    %574 = vector.broadcast %cst_95 : f32 to vector<16x16xf32>
    %c2_96 = arith.constant 2 : index
    %c0_97 = arith.constant 0 : index
    %c0_98 = arith.constant 0 : index
    %575 = vector.load %arg6[%c2_96, %c0_97, %c0_98] : memref<4x22x22xf32, #tpu.memory_space<vmem>>, vector<1x16x22xf32>
    %576 = vector.shape_cast %575 : vector<1x16x22xf32> to vector<16x22xf32>
    %c98 = arith.constant 98 : index
    %577 = memref.load %arg1[%c98] : memref<196xf32, #tpu.memory_space<smem>>
    %578 = vector.extract_strided_slice %576 {offsets = [0, 0], sizes = [16, 16], strides = [1, 1]} : vector<16x22xf32> to vector<16x16xf32>
    %579 = vector.broadcast %577 : f32 to vector<16x16xf32>
    %580 = arith.mulf %579, %578 : vector<16x16xf32>
    %581 = arith.addf %574, %580 : vector<16x16xf32>
    %c99 = arith.constant 99 : index
    %582 = memref.load %arg1[%c99] : memref<196xf32, #tpu.memory_space<smem>>
    %583 = vector.extract_strided_slice %576 {offsets = [0, 1], sizes = [16, 16], strides = [1, 1]} : vector<16x22xf32> to vector<16x16xf32>
    %584 = vector.broadcast %582 : f32 to vector<16x16xf32>
    %585 = arith.mulf %584, %583 : vector<16x16xf32>
    %586 = arith.addf %581, %585 : vector<16x16xf32>
    %c100 = arith.constant 100 : index
    %587 = memref.load %arg1[%c100] : memref<196xf32, #tpu.memory_space<smem>>
    %588 = vector.extract_strided_slice %576 {offsets = [0, 2], sizes = [16, 16], strides = [1, 1]} : vector<16x22xf32> to vector<16x16xf32>
    %589 = vector.broadcast %587 : f32 to vector<16x16xf32>
    %590 = arith.mulf %589, %588 : vector<16x16xf32>
    %591 = arith.addf %586, %590 : vector<16x16xf32>
    %c101 = arith.constant 101 : index
    %592 = memref.load %arg1[%c101] : memref<196xf32, #tpu.memory_space<smem>>
    %593 = vector.extract_strided_slice %576 {offsets = [0, 3], sizes = [16, 16], strides = [1, 1]} : vector<16x22xf32> to vector<16x16xf32>
    %594 = vector.broadcast %592 : f32 to vector<16x16xf32>
    %595 = arith.mulf %594, %593 : vector<16x16xf32>
    %596 = arith.addf %591, %595 : vector<16x16xf32>
    %c102 = arith.constant 102 : index
    %597 = memref.load %arg1[%c102] : memref<196xf32, #tpu.memory_space<smem>>
    %598 = vector.extract_strided_slice %576 {offsets = [0, 4], sizes = [16, 16], strides = [1, 1]} : vector<16x22xf32> to vector<16x16xf32>
    %599 = vector.broadcast %597 : f32 to vector<16x16xf32>
    %600 = arith.mulf %599, %598 : vector<16x16xf32>
    %601 = arith.addf %596, %600 : vector<16x16xf32>
    %c103 = arith.constant 103 : index
    %602 = memref.load %arg1[%c103] : memref<196xf32, #tpu.memory_space<smem>>
    %603 = vector.extract_strided_slice %576 {offsets = [0, 5], sizes = [16, 16], strides = [1, 1]} : vector<16x22xf32> to vector<16x16xf32>
    %604 = vector.broadcast %602 : f32 to vector<16x16xf32>
    %605 = arith.mulf %604, %603 : vector<16x16xf32>
    %606 = arith.addf %601, %605 : vector<16x16xf32>
    %c104 = arith.constant 104 : index
    %607 = memref.load %arg1[%c104] : memref<196xf32, #tpu.memory_space<smem>>
    %608 = vector.extract_strided_slice %576 {offsets = [0, 6], sizes = [16, 16], strides = [1, 1]} : vector<16x22xf32> to vector<16x16xf32>
    %609 = vector.broadcast %607 : f32 to vector<16x16xf32>
    %610 = arith.mulf %609, %608 : vector<16x16xf32>
    %611 = arith.addf %606, %610 : vector<16x16xf32>
    %c2_99 = arith.constant 2 : index
    %c1_100 = arith.constant 1 : index
    %c0_101 = arith.constant 0 : index
    %612 = vector.load %arg6[%c2_99, %c1_100, %c0_101] : memref<4x22x22xf32, #tpu.memory_space<vmem>>, vector<1x16x22xf32>
    %613 = vector.shape_cast %612 : vector<1x16x22xf32> to vector<16x22xf32>
    %c105 = arith.constant 105 : index
    %614 = memref.load %arg1[%c105] : memref<196xf32, #tpu.memory_space<smem>>
    %615 = vector.extract_strided_slice %613 {offsets = [0, 0], sizes = [16, 16], strides = [1, 1]} : vector<16x22xf32> to vector<16x16xf32>
    %616 = vector.broadcast %614 : f32 to vector<16x16xf32>
    %617 = arith.mulf %616, %615 : vector<16x16xf32>
    %618 = arith.addf %611, %617 : vector<16x16xf32>
    %c106 = arith.constant 106 : index
    %619 = memref.load %arg1[%c106] : memref<196xf32, #tpu.memory_space<smem>>
    %620 = vector.extract_strided_slice %613 {offsets = [0, 1], sizes = [16, 16], strides = [1, 1]} : vector<16x22xf32> to vector<16x16xf32>
    %621 = vector.broadcast %619 : f32 to vector<16x16xf32>
    %622 = arith.mulf %621, %620 : vector<16x16xf32>
    %623 = arith.addf %618, %622 : vector<16x16xf32>
    %c107 = arith.constant 107 : index
    %624 = memref.load %arg1[%c107] : memref<196xf32, #tpu.memory_space<smem>>
    %625 = vector.extract_strided_slice %613 {offsets = [0, 2], sizes = [16, 16], strides = [1, 1]} : vector<16x22xf32> to vector<16x16xf32>
    %626 = vector.broadcast %624 : f32 to vector<16x16xf32>
    %627 = arith.mulf %626, %625 : vector<16x16xf32>
    %628 = arith.addf %623, %627 : vector<16x16xf32>
    %c108 = arith.constant 108 : index
    %629 = memref.load %arg1[%c108] : memref<196xf32, #tpu.memory_space<smem>>
    %630 = vector.extract_strided_slice %613 {offsets = [0, 3], sizes = [16, 16], strides = [1, 1]} : vector<16x22xf32> to vector<16x16xf32>
    %631 = vector.broadcast %629 : f32 to vector<16x16xf32>
    %632 = arith.mulf %631, %630 : vector<16x16xf32>
    %633 = arith.addf %628, %632 : vector<16x16xf32>
    %c109 = arith.constant 109 : index
    %634 = memref.load %arg1[%c109] : memref<196xf32, #tpu.memory_space<smem>>
    %635 = vector.extract_strided_slice %613 {offsets = [0, 4], sizes = [16, 16], strides = [1, 1]} : vector<16x22xf32> to vector<16x16xf32>
    %636 = vector.broadcast %634 : f32 to vector<16x16xf32>
    %637 = arith.mulf %636, %635 : vector<16x16xf32>
    %638 = arith.addf %633, %637 : vector<16x16xf32>
    %c110 = arith.constant 110 : index
    %639 = memref.load %arg1[%c110] : memref<196xf32, #tpu.memory_space<smem>>
    %640 = vector.extract_strided_slice %613 {offsets = [0, 5], sizes = [16, 16], strides = [1, 1]} : vector<16x22xf32> to vector<16x16xf32>
    %641 = vector.broadcast %639 : f32 to vector<16x16xf32>
    %642 = arith.mulf %641, %640 : vector<16x16xf32>
    %643 = arith.addf %638, %642 : vector<16x16xf32>
    %c111 = arith.constant 111 : index
    %644 = memref.load %arg1[%c111] : memref<196xf32, #tpu.memory_space<smem>>
    %645 = vector.extract_strided_slice %613 {offsets = [0, 6], sizes = [16, 16], strides = [1, 1]} : vector<16x22xf32> to vector<16x16xf32>
    %646 = vector.broadcast %644 : f32 to vector<16x16xf32>
    %647 = arith.mulf %646, %645 : vector<16x16xf32>
    %648 = arith.addf %643, %647 : vector<16x16xf32>
    %c2_102 = arith.constant 2 : index
    %c2_103 = arith.constant 2 : index
    %c0_104 = arith.constant 0 : index
    %649 = vector.load %arg6[%c2_102, %c2_103, %c0_104] : memref<4x22x22xf32, #tpu.memory_space<vmem>>, vector<1x16x22xf32>
    %650 = vector.shape_cast %649 : vector<1x16x22xf32> to vector<16x22xf32>
    %c112 = arith.constant 112 : index
    %651 = memref.load %arg1[%c112] : memref<196xf32, #tpu.memory_space<smem>>
    %652 = vector.extract_strided_slice %650 {offsets = [0, 0], sizes = [16, 16], strides = [1, 1]} : vector<16x22xf32> to vector<16x16xf32>
    %653 = vector.broadcast %651 : f32 to vector<16x16xf32>
    %654 = arith.mulf %653, %652 : vector<16x16xf32>
    %655 = arith.addf %648, %654 : vector<16x16xf32>
    %c113 = arith.constant 113 : index
    %656 = memref.load %arg1[%c113] : memref<196xf32, #tpu.memory_space<smem>>
    %657 = vector.extract_strided_slice %650 {offsets = [0, 1], sizes = [16, 16], strides = [1, 1]} : vector<16x22xf32> to vector<16x16xf32>
    %658 = vector.broadcast %656 : f32 to vector<16x16xf32>
    %659 = arith.mulf %658, %657 : vector<16x16xf32>
    %660 = arith.addf %655, %659 : vector<16x16xf32>
    %c114 = arith.constant 114 : index
    %661 = memref.load %arg1[%c114] : memref<196xf32, #tpu.memory_space<smem>>
    %662 = vector.extract_strided_slice %650 {offsets = [0, 2], sizes = [16, 16], strides = [1, 1]} : vector<16x22xf32> to vector<16x16xf32>
    %663 = vector.broadcast %661 : f32 to vector<16x16xf32>
    %664 = arith.mulf %663, %662 : vector<16x16xf32>
    %665 = arith.addf %660, %664 : vector<16x16xf32>
    %c115 = arith.constant 115 : index
    %666 = memref.load %arg1[%c115] : memref<196xf32, #tpu.memory_space<smem>>
    %667 = vector.extract_strided_slice %650 {offsets = [0, 3], sizes = [16, 16], strides = [1, 1]} : vector<16x22xf32> to vector<16x16xf32>
    %668 = vector.broadcast %666 : f32 to vector<16x16xf32>
    %669 = arith.mulf %668, %667 : vector<16x16xf32>
    %670 = arith.addf %665, %669 : vector<16x16xf32>
    %c116 = arith.constant 116 : index
    %671 = memref.load %arg1[%c116] : memref<196xf32, #tpu.memory_space<smem>>
    %672 = vector.extract_strided_slice %650 {offsets = [0, 4], sizes = [16, 16], strides = [1, 1]} : vector<16x22xf32> to vector<16x16xf32>
    %673 = vector.broadcast %671 : f32 to vector<16x16xf32>
    %674 = arith.mulf %673, %672 : vector<16x16xf32>
    %675 = arith.addf %670, %674 : vector<16x16xf32>
    %c117 = arith.constant 117 : index
    %676 = memref.load %arg1[%c117] : memref<196xf32, #tpu.memory_space<smem>>
    %677 = vector.extract_strided_slice %650 {offsets = [0, 5], sizes = [16, 16], strides = [1, 1]} : vector<16x22xf32> to vector<16x16xf32>
    %678 = vector.broadcast %676 : f32 to vector<16x16xf32>
    %679 = arith.mulf %678, %677 : vector<16x16xf32>
    %680 = arith.addf %675, %679 : vector<16x16xf32>
    %c118 = arith.constant 118 : index
    %681 = memref.load %arg1[%c118] : memref<196xf32, #tpu.memory_space<smem>>
    %682 = vector.extract_strided_slice %650 {offsets = [0, 6], sizes = [16, 16], strides = [1, 1]} : vector<16x22xf32> to vector<16x16xf32>
    %683 = vector.broadcast %681 : f32 to vector<16x16xf32>
    %684 = arith.mulf %683, %682 : vector<16x16xf32>
    %685 = arith.addf %680, %684 : vector<16x16xf32>
    %c2_105 = arith.constant 2 : index
    %c3_106 = arith.constant 3 : index
    %c0_107 = arith.constant 0 : index
    %686 = vector.load %arg6[%c2_105, %c3_106, %c0_107] : memref<4x22x22xf32, #tpu.memory_space<vmem>>, vector<1x16x22xf32>
    %687 = vector.shape_cast %686 : vector<1x16x22xf32> to vector<16x22xf32>
    %c119 = arith.constant 119 : index
    %688 = memref.load %arg1[%c119] : memref<196xf32, #tpu.memory_space<smem>>
    %689 = vector.extract_strided_slice %687 {offsets = [0, 0], sizes = [16, 16], strides = [1, 1]} : vector<16x22xf32> to vector<16x16xf32>
    %690 = vector.broadcast %688 : f32 to vector<16x16xf32>
    %691 = arith.mulf %690, %689 : vector<16x16xf32>
    %692 = arith.addf %685, %691 : vector<16x16xf32>
    %c120 = arith.constant 120 : index
    %693 = memref.load %arg1[%c120] : memref<196xf32, #tpu.memory_space<smem>>
    %694 = vector.extract_strided_slice %687 {offsets = [0, 1], sizes = [16, 16], strides = [1, 1]} : vector<16x22xf32> to vector<16x16xf32>
    %695 = vector.broadcast %693 : f32 to vector<16x16xf32>
    %696 = arith.mulf %695, %694 : vector<16x16xf32>
    %697 = arith.addf %692, %696 : vector<16x16xf32>
    %c121 = arith.constant 121 : index
    %698 = memref.load %arg1[%c121] : memref<196xf32, #tpu.memory_space<smem>>
    %699 = vector.extract_strided_slice %687 {offsets = [0, 2], sizes = [16, 16], strides = [1, 1]} : vector<16x22xf32> to vector<16x16xf32>
    %700 = vector.broadcast %698 : f32 to vector<16x16xf32>
    %701 = arith.mulf %700, %699 : vector<16x16xf32>
    %702 = arith.addf %697, %701 : vector<16x16xf32>
    %c122 = arith.constant 122 : index
    %703 = memref.load %arg1[%c122] : memref<196xf32, #tpu.memory_space<smem>>
    %704 = vector.extract_strided_slice %687 {offsets = [0, 3], sizes = [16, 16], strides = [1, 1]} : vector<16x22xf32> to vector<16x16xf32>
    %705 = vector.broadcast %703 : f32 to vector<16x16xf32>
    %706 = arith.mulf %705, %704 : vector<16x16xf32>
    %707 = arith.addf %702, %706 : vector<16x16xf32>
    %c123 = arith.constant 123 : index
    %708 = memref.load %arg1[%c123] : memref<196xf32, #tpu.memory_space<smem>>
    %709 = vector.extract_strided_slice %687 {offsets = [0, 4], sizes = [16, 16], strides = [1, 1]} : vector<16x22xf32> to vector<16x16xf32>
    %710 = vector.broadcast %708 : f32 to vector<16x16xf32>
    %711 = arith.mulf %710, %709 : vector<16x16xf32>
    %712 = arith.addf %707, %711 : vector<16x16xf32>
    %c124 = arith.constant 124 : index
    %713 = memref.load %arg1[%c124] : memref<196xf32, #tpu.memory_space<smem>>
    %714 = vector.extract_strided_slice %687 {offsets = [0, 5], sizes = [16, 16], strides = [1, 1]} : vector<16x22xf32> to vector<16x16xf32>
    %715 = vector.broadcast %713 : f32 to vector<16x16xf32>
    %716 = arith.mulf %715, %714 : vector<16x16xf32>
    %717 = arith.addf %712, %716 : vector<16x16xf32>
    %c125 = arith.constant 125 : index
    %718 = memref.load %arg1[%c125] : memref<196xf32, #tpu.memory_space<smem>>
    %719 = vector.extract_strided_slice %687 {offsets = [0, 6], sizes = [16, 16], strides = [1, 1]} : vector<16x22xf32> to vector<16x16xf32>
    %720 = vector.broadcast %718 : f32 to vector<16x16xf32>
    %721 = arith.mulf %720, %719 : vector<16x16xf32>
    %722 = arith.addf %717, %721 : vector<16x16xf32>
    %c2_108 = arith.constant 2 : index
    %c4_109 = arith.constant 4 : index
    %c0_110 = arith.constant 0 : index
    %723 = vector.load %arg6[%c2_108, %c4_109, %c0_110] : memref<4x22x22xf32, #tpu.memory_space<vmem>>, vector<1x16x22xf32>
    %724 = vector.shape_cast %723 : vector<1x16x22xf32> to vector<16x22xf32>
    %c126 = arith.constant 126 : index
    %725 = memref.load %arg1[%c126] : memref<196xf32, #tpu.memory_space<smem>>
    %726 = vector.extract_strided_slice %724 {offsets = [0, 0], sizes = [16, 16], strides = [1, 1]} : vector<16x22xf32> to vector<16x16xf32>
    %727 = vector.broadcast %725 : f32 to vector<16x16xf32>
    %728 = arith.mulf %727, %726 : vector<16x16xf32>
    %729 = arith.addf %722, %728 : vector<16x16xf32>
    %c127 = arith.constant 127 : index
    %730 = memref.load %arg1[%c127] : memref<196xf32, #tpu.memory_space<smem>>
    %731 = vector.extract_strided_slice %724 {offsets = [0, 1], sizes = [16, 16], strides = [1, 1]} : vector<16x22xf32> to vector<16x16xf32>
    %732 = vector.broadcast %730 : f32 to vector<16x16xf32>
    %733 = arith.mulf %732, %731 : vector<16x16xf32>
    %734 = arith.addf %729, %733 : vector<16x16xf32>
    %c128 = arith.constant 128 : index
    %735 = memref.load %arg1[%c128] : memref<196xf32, #tpu.memory_space<smem>>
    %736 = vector.extract_strided_slice %724 {offsets = [0, 2], sizes = [16, 16], strides = [1, 1]} : vector<16x22xf32> to vector<16x16xf32>
    %737 = vector.broadcast %735 : f32 to vector<16x16xf32>
    %738 = arith.mulf %737, %736 : vector<16x16xf32>
    %739 = arith.addf %734, %738 : vector<16x16xf32>
    %c129 = arith.constant 129 : index
    %740 = memref.load %arg1[%c129] : memref<196xf32, #tpu.memory_space<smem>>
    %741 = vector.extract_strided_slice %724 {offsets = [0, 3], sizes = [16, 16], strides = [1, 1]} : vector<16x22xf32> to vector<16x16xf32>
    %742 = vector.broadcast %740 : f32 to vector<16x16xf32>
    %743 = arith.mulf %742, %741 : vector<16x16xf32>
    %744 = arith.addf %739, %743 : vector<16x16xf32>
    %c130 = arith.constant 130 : index
    %745 = memref.load %arg1[%c130] : memref<196xf32, #tpu.memory_space<smem>>
    %746 = vector.extract_strided_slice %724 {offsets = [0, 4], sizes = [16, 16], strides = [1, 1]} : vector<16x22xf32> to vector<16x16xf32>
    %747 = vector.broadcast %745 : f32 to vector<16x16xf32>
    %748 = arith.mulf %747, %746 : vector<16x16xf32>
    %749 = arith.addf %744, %748 : vector<16x16xf32>
    %c131 = arith.constant 131 : index
    %750 = memref.load %arg1[%c131] : memref<196xf32, #tpu.memory_space<smem>>
    %751 = vector.extract_strided_slice %724 {offsets = [0, 5], sizes = [16, 16], strides = [1, 1]} : vector<16x22xf32> to vector<16x16xf32>
    %752 = vector.broadcast %750 : f32 to vector<16x16xf32>
    %753 = arith.mulf %752, %751 : vector<16x16xf32>
    %754 = arith.addf %749, %753 : vector<16x16xf32>
    %c132 = arith.constant 132 : index
    %755 = memref.load %arg1[%c132] : memref<196xf32, #tpu.memory_space<smem>>
    %756 = vector.extract_strided_slice %724 {offsets = [0, 6], sizes = [16, 16], strides = [1, 1]} : vector<16x22xf32> to vector<16x16xf32>
    %757 = vector.broadcast %755 : f32 to vector<16x16xf32>
    %758 = arith.mulf %757, %756 : vector<16x16xf32>
    %759 = arith.addf %754, %758 : vector<16x16xf32>
    %c2_111 = arith.constant 2 : index
    %c5_112 = arith.constant 5 : index
    %c0_113 = arith.constant 0 : index
    %760 = vector.load %arg6[%c2_111, %c5_112, %c0_113] : memref<4x22x22xf32, #tpu.memory_space<vmem>>, vector<1x16x22xf32>
    %761 = vector.shape_cast %760 : vector<1x16x22xf32> to vector<16x22xf32>
    %c133 = arith.constant 133 : index
    %762 = memref.load %arg1[%c133] : memref<196xf32, #tpu.memory_space<smem>>
    %763 = vector.extract_strided_slice %761 {offsets = [0, 0], sizes = [16, 16], strides = [1, 1]} : vector<16x22xf32> to vector<16x16xf32>
    %764 = vector.broadcast %762 : f32 to vector<16x16xf32>
    %765 = arith.mulf %764, %763 : vector<16x16xf32>
    %766 = arith.addf %759, %765 : vector<16x16xf32>
    %c134 = arith.constant 134 : index
    %767 = memref.load %arg1[%c134] : memref<196xf32, #tpu.memory_space<smem>>
    %768 = vector.extract_strided_slice %761 {offsets = [0, 1], sizes = [16, 16], strides = [1, 1]} : vector<16x22xf32> to vector<16x16xf32>
    %769 = vector.broadcast %767 : f32 to vector<16x16xf32>
    %770 = arith.mulf %769, %768 : vector<16x16xf32>
    %771 = arith.addf %766, %770 : vector<16x16xf32>
    %c135 = arith.constant 135 : index
    %772 = memref.load %arg1[%c135] : memref<196xf32, #tpu.memory_space<smem>>
    %773 = vector.extract_strided_slice %761 {offsets = [0, 2], sizes = [16, 16], strides = [1, 1]} : vector<16x22xf32> to vector<16x16xf32>
    %774 = vector.broadcast %772 : f32 to vector<16x16xf32>
    %775 = arith.mulf %774, %773 : vector<16x16xf32>
    %776 = arith.addf %771, %775 : vector<16x16xf32>
    %c136 = arith.constant 136 : index
    %777 = memref.load %arg1[%c136] : memref<196xf32, #tpu.memory_space<smem>>
    %778 = vector.extract_strided_slice %761 {offsets = [0, 3], sizes = [16, 16], strides = [1, 1]} : vector<16x22xf32> to vector<16x16xf32>
    %779 = vector.broadcast %777 : f32 to vector<16x16xf32>
    %780 = arith.mulf %779, %778 : vector<16x16xf32>
    %781 = arith.addf %776, %780 : vector<16x16xf32>
    %c137 = arith.constant 137 : index
    %782 = memref.load %arg1[%c137] : memref<196xf32, #tpu.memory_space<smem>>
    %783 = vector.extract_strided_slice %761 {offsets = [0, 4], sizes = [16, 16], strides = [1, 1]} : vector<16x22xf32> to vector<16x16xf32>
    %784 = vector.broadcast %782 : f32 to vector<16x16xf32>
    %785 = arith.mulf %784, %783 : vector<16x16xf32>
    %786 = arith.addf %781, %785 : vector<16x16xf32>
    %c138 = arith.constant 138 : index
    %787 = memref.load %arg1[%c138] : memref<196xf32, #tpu.memory_space<smem>>
    %788 = vector.extract_strided_slice %761 {offsets = [0, 5], sizes = [16, 16], strides = [1, 1]} : vector<16x22xf32> to vector<16x16xf32>
    %789 = vector.broadcast %787 : f32 to vector<16x16xf32>
    %790 = arith.mulf %789, %788 : vector<16x16xf32>
    %791 = arith.addf %786, %790 : vector<16x16xf32>
    %c139 = arith.constant 139 : index
    %792 = memref.load %arg1[%c139] : memref<196xf32, #tpu.memory_space<smem>>
    %793 = vector.extract_strided_slice %761 {offsets = [0, 6], sizes = [16, 16], strides = [1, 1]} : vector<16x22xf32> to vector<16x16xf32>
    %794 = vector.broadcast %792 : f32 to vector<16x16xf32>
    %795 = arith.mulf %794, %793 : vector<16x16xf32>
    %796 = arith.addf %791, %795 : vector<16x16xf32>
    %c2_114 = arith.constant 2 : index
    %c6_115 = arith.constant 6 : index
    %c0_116 = arith.constant 0 : index
    %797 = vector.load %arg6[%c2_114, %c6_115, %c0_116] : memref<4x22x22xf32, #tpu.memory_space<vmem>>, vector<1x16x22xf32>
    %798 = vector.shape_cast %797 : vector<1x16x22xf32> to vector<16x22xf32>
    %c140 = arith.constant 140 : index
    %799 = memref.load %arg1[%c140] : memref<196xf32, #tpu.memory_space<smem>>
    %800 = vector.extract_strided_slice %798 {offsets = [0, 0], sizes = [16, 16], strides = [1, 1]} : vector<16x22xf32> to vector<16x16xf32>
    %801 = vector.broadcast %799 : f32 to vector<16x16xf32>
    %802 = arith.mulf %801, %800 : vector<16x16xf32>
    %803 = arith.addf %796, %802 : vector<16x16xf32>
    %c141 = arith.constant 141 : index
    %804 = memref.load %arg1[%c141] : memref<196xf32, #tpu.memory_space<smem>>
    %805 = vector.extract_strided_slice %798 {offsets = [0, 1], sizes = [16, 16], strides = [1, 1]} : vector<16x22xf32> to vector<16x16xf32>
    %806 = vector.broadcast %804 : f32 to vector<16x16xf32>
    %807 = arith.mulf %806, %805 : vector<16x16xf32>
    %808 = arith.addf %803, %807 : vector<16x16xf32>
    %c142 = arith.constant 142 : index
    %809 = memref.load %arg1[%c142] : memref<196xf32, #tpu.memory_space<smem>>
    %810 = vector.extract_strided_slice %798 {offsets = [0, 2], sizes = [16, 16], strides = [1, 1]} : vector<16x22xf32> to vector<16x16xf32>
    %811 = vector.broadcast %809 : f32 to vector<16x16xf32>
    %812 = arith.mulf %811, %810 : vector<16x16xf32>
    %813 = arith.addf %808, %812 : vector<16x16xf32>
    %c143 = arith.constant 143 : index
    %814 = memref.load %arg1[%c143] : memref<196xf32, #tpu.memory_space<smem>>
    %815 = vector.extract_strided_slice %798 {offsets = [0, 3], sizes = [16, 16], strides = [1, 1]} : vector<16x22xf32> to vector<16x16xf32>
    %816 = vector.broadcast %814 : f32 to vector<16x16xf32>
    %817 = arith.mulf %816, %815 : vector<16x16xf32>
    %818 = arith.addf %813, %817 : vector<16x16xf32>
    %c144 = arith.constant 144 : index
    %819 = memref.load %arg1[%c144] : memref<196xf32, #tpu.memory_space<smem>>
    %820 = vector.extract_strided_slice %798 {offsets = [0, 4], sizes = [16, 16], strides = [1, 1]} : vector<16x22xf32> to vector<16x16xf32>
    %821 = vector.broadcast %819 : f32 to vector<16x16xf32>
    %822 = arith.mulf %821, %820 : vector<16x16xf32>
    %823 = arith.addf %818, %822 : vector<16x16xf32>
    %c145 = arith.constant 145 : index
    %824 = memref.load %arg1[%c145] : memref<196xf32, #tpu.memory_space<smem>>
    %825 = vector.extract_strided_slice %798 {offsets = [0, 5], sizes = [16, 16], strides = [1, 1]} : vector<16x22xf32> to vector<16x16xf32>
    %826 = vector.broadcast %824 : f32 to vector<16x16xf32>
    %827 = arith.mulf %826, %825 : vector<16x16xf32>
    %828 = arith.addf %823, %827 : vector<16x16xf32>
    %c146 = arith.constant 146 : index
    %829 = memref.load %arg1[%c146] : memref<196xf32, #tpu.memory_space<smem>>
    %830 = vector.extract_strided_slice %798 {offsets = [0, 6], sizes = [16, 16], strides = [1, 1]} : vector<16x22xf32> to vector<16x16xf32>
    %831 = vector.broadcast %829 : f32 to vector<16x16xf32>
    %832 = arith.mulf %831, %830 : vector<16x16xf32>
    %833 = arith.addf %828, %832 : vector<16x16xf32>
    %cst_117 = arith.constant 0.000000e+00 : f32
    %834 = vector.broadcast %cst_117 : f32 to vector<16x16xf32>
    %c3_118 = arith.constant 3 : index
    %c0_119 = arith.constant 0 : index
    %c0_120 = arith.constant 0 : index
    %835 = vector.load %arg6[%c3_118, %c0_119, %c0_120] : memref<4x22x22xf32, #tpu.memory_space<vmem>>, vector<1x16x22xf32>
    %836 = vector.shape_cast %835 : vector<1x16x22xf32> to vector<16x22xf32>
    %c147 = arith.constant 147 : index
    %837 = memref.load %arg1[%c147] : memref<196xf32, #tpu.memory_space<smem>>
    %838 = vector.extract_strided_slice %836 {offsets = [0, 0], sizes = [16, 16], strides = [1, 1]} : vector<16x22xf32> to vector<16x16xf32>
    %839 = vector.broadcast %837 : f32 to vector<16x16xf32>
    %840 = arith.mulf %839, %838 : vector<16x16xf32>
    %841 = arith.addf %834, %840 : vector<16x16xf32>
    %c148 = arith.constant 148 : index
    %842 = memref.load %arg1[%c148] : memref<196xf32, #tpu.memory_space<smem>>
    %843 = vector.extract_strided_slice %836 {offsets = [0, 1], sizes = [16, 16], strides = [1, 1]} : vector<16x22xf32> to vector<16x16xf32>
    %844 = vector.broadcast %842 : f32 to vector<16x16xf32>
    %845 = arith.mulf %844, %843 : vector<16x16xf32>
    %846 = arith.addf %841, %845 : vector<16x16xf32>
    %c149 = arith.constant 149 : index
    %847 = memref.load %arg1[%c149] : memref<196xf32, #tpu.memory_space<smem>>
    %848 = vector.extract_strided_slice %836 {offsets = [0, 2], sizes = [16, 16], strides = [1, 1]} : vector<16x22xf32> to vector<16x16xf32>
    %849 = vector.broadcast %847 : f32 to vector<16x16xf32>
    %850 = arith.mulf %849, %848 : vector<16x16xf32>
    %851 = arith.addf %846, %850 : vector<16x16xf32>
    %c150 = arith.constant 150 : index
    %852 = memref.load %arg1[%c150] : memref<196xf32, #tpu.memory_space<smem>>
    %853 = vector.extract_strided_slice %836 {offsets = [0, 3], sizes = [16, 16], strides = [1, 1]} : vector<16x22xf32> to vector<16x16xf32>
    %854 = vector.broadcast %852 : f32 to vector<16x16xf32>
    %855 = arith.mulf %854, %853 : vector<16x16xf32>
    %856 = arith.addf %851, %855 : vector<16x16xf32>
    %c151 = arith.constant 151 : index
    %857 = memref.load %arg1[%c151] : memref<196xf32, #tpu.memory_space<smem>>
    %858 = vector.extract_strided_slice %836 {offsets = [0, 4], sizes = [16, 16], strides = [1, 1]} : vector<16x22xf32> to vector<16x16xf32>
    %859 = vector.broadcast %857 : f32 to vector<16x16xf32>
    %860 = arith.mulf %859, %858 : vector<16x16xf32>
    %861 = arith.addf %856, %860 : vector<16x16xf32>
    %c152 = arith.constant 152 : index
    %862 = memref.load %arg1[%c152] : memref<196xf32, #tpu.memory_space<smem>>
    %863 = vector.extract_strided_slice %836 {offsets = [0, 5], sizes = [16, 16], strides = [1, 1]} : vector<16x22xf32> to vector<16x16xf32>
    %864 = vector.broadcast %862 : f32 to vector<16x16xf32>
    %865 = arith.mulf %864, %863 : vector<16x16xf32>
    %866 = arith.addf %861, %865 : vector<16x16xf32>
    %c153 = arith.constant 153 : index
    %867 = memref.load %arg1[%c153] : memref<196xf32, #tpu.memory_space<smem>>
    %868 = vector.extract_strided_slice %836 {offsets = [0, 6], sizes = [16, 16], strides = [1, 1]} : vector<16x22xf32> to vector<16x16xf32>
    %869 = vector.broadcast %867 : f32 to vector<16x16xf32>
    %870 = arith.mulf %869, %868 : vector<16x16xf32>
    %871 = arith.addf %866, %870 : vector<16x16xf32>
    %c3_121 = arith.constant 3 : index
    %c1_122 = arith.constant 1 : index
    %c0_123 = arith.constant 0 : index
    %872 = vector.load %arg6[%c3_121, %c1_122, %c0_123] : memref<4x22x22xf32, #tpu.memory_space<vmem>>, vector<1x16x22xf32>
    %873 = vector.shape_cast %872 : vector<1x16x22xf32> to vector<16x22xf32>
    %c154 = arith.constant 154 : index
    %874 = memref.load %arg1[%c154] : memref<196xf32, #tpu.memory_space<smem>>
    %875 = vector.extract_strided_slice %873 {offsets = [0, 0], sizes = [16, 16], strides = [1, 1]} : vector<16x22xf32> to vector<16x16xf32>
    %876 = vector.broadcast %874 : f32 to vector<16x16xf32>
    %877 = arith.mulf %876, %875 : vector<16x16xf32>
    %878 = arith.addf %871, %877 : vector<16x16xf32>
    %c155 = arith.constant 155 : index
    %879 = memref.load %arg1[%c155] : memref<196xf32, #tpu.memory_space<smem>>
    %880 = vector.extract_strided_slice %873 {offsets = [0, 1], sizes = [16, 16], strides = [1, 1]} : vector<16x22xf32> to vector<16x16xf32>
    %881 = vector.broadcast %879 : f32 to vector<16x16xf32>
    %882 = arith.mulf %881, %880 : vector<16x16xf32>
    %883 = arith.addf %878, %882 : vector<16x16xf32>
    %c156 = arith.constant 156 : index
    %884 = memref.load %arg1[%c156] : memref<196xf32, #tpu.memory_space<smem>>
    %885 = vector.extract_strided_slice %873 {offsets = [0, 2], sizes = [16, 16], strides = [1, 1]} : vector<16x22xf32> to vector<16x16xf32>
    %886 = vector.broadcast %884 : f32 to vector<16x16xf32>
    %887 = arith.mulf %886, %885 : vector<16x16xf32>
    %888 = arith.addf %883, %887 : vector<16x16xf32>
    %c157 = arith.constant 157 : index
    %889 = memref.load %arg1[%c157] : memref<196xf32, #tpu.memory_space<smem>>
    %890 = vector.extract_strided_slice %873 {offsets = [0, 3], sizes = [16, 16], strides = [1, 1]} : vector<16x22xf32> to vector<16x16xf32>
    %891 = vector.broadcast %889 : f32 to vector<16x16xf32>
    %892 = arith.mulf %891, %890 : vector<16x16xf32>
    %893 = arith.addf %888, %892 : vector<16x16xf32>
    %c158 = arith.constant 158 : index
    %894 = memref.load %arg1[%c158] : memref<196xf32, #tpu.memory_space<smem>>
    %895 = vector.extract_strided_slice %873 {offsets = [0, 4], sizes = [16, 16], strides = [1, 1]} : vector<16x22xf32> to vector<16x16xf32>
    %896 = vector.broadcast %894 : f32 to vector<16x16xf32>
    %897 = arith.mulf %896, %895 : vector<16x16xf32>
    %898 = arith.addf %893, %897 : vector<16x16xf32>
    %c159 = arith.constant 159 : index
    %899 = memref.load %arg1[%c159] : memref<196xf32, #tpu.memory_space<smem>>
    %900 = vector.extract_strided_slice %873 {offsets = [0, 5], sizes = [16, 16], strides = [1, 1]} : vector<16x22xf32> to vector<16x16xf32>
    %901 = vector.broadcast %899 : f32 to vector<16x16xf32>
    %902 = arith.mulf %901, %900 : vector<16x16xf32>
    %903 = arith.addf %898, %902 : vector<16x16xf32>
    %c160 = arith.constant 160 : index
    %904 = memref.load %arg1[%c160] : memref<196xf32, #tpu.memory_space<smem>>
    %905 = vector.extract_strided_slice %873 {offsets = [0, 6], sizes = [16, 16], strides = [1, 1]} : vector<16x22xf32> to vector<16x16xf32>
    %906 = vector.broadcast %904 : f32 to vector<16x16xf32>
    %907 = arith.mulf %906, %905 : vector<16x16xf32>
    %908 = arith.addf %903, %907 : vector<16x16xf32>
    %c3_124 = arith.constant 3 : index
    %c2_125 = arith.constant 2 : index
    %c0_126 = arith.constant 0 : index
    %909 = vector.load %arg6[%c3_124, %c2_125, %c0_126] : memref<4x22x22xf32, #tpu.memory_space<vmem>>, vector<1x16x22xf32>
    %910 = vector.shape_cast %909 : vector<1x16x22xf32> to vector<16x22xf32>
    %c161 = arith.constant 161 : index
    %911 = memref.load %arg1[%c161] : memref<196xf32, #tpu.memory_space<smem>>
    %912 = vector.extract_strided_slice %910 {offsets = [0, 0], sizes = [16, 16], strides = [1, 1]} : vector<16x22xf32> to vector<16x16xf32>
    %913 = vector.broadcast %911 : f32 to vector<16x16xf32>
    %914 = arith.mulf %913, %912 : vector<16x16xf32>
    %915 = arith.addf %908, %914 : vector<16x16xf32>
    %c162 = arith.constant 162 : index
    %916 = memref.load %arg1[%c162] : memref<196xf32, #tpu.memory_space<smem>>
    %917 = vector.extract_strided_slice %910 {offsets = [0, 1], sizes = [16, 16], strides = [1, 1]} : vector<16x22xf32> to vector<16x16xf32>
    %918 = vector.broadcast %916 : f32 to vector<16x16xf32>
    %919 = arith.mulf %918, %917 : vector<16x16xf32>
    %920 = arith.addf %915, %919 : vector<16x16xf32>
    %c163 = arith.constant 163 : index
    %921 = memref.load %arg1[%c163] : memref<196xf32, #tpu.memory_space<smem>>
    %922 = vector.extract_strided_slice %910 {offsets = [0, 2], sizes = [16, 16], strides = [1, 1]} : vector<16x22xf32> to vector<16x16xf32>
    %923 = vector.broadcast %921 : f32 to vector<16x16xf32>
    %924 = arith.mulf %923, %922 : vector<16x16xf32>
    %925 = arith.addf %920, %924 : vector<16x16xf32>
    %c164 = arith.constant 164 : index
    %926 = memref.load %arg1[%c164] : memref<196xf32, #tpu.memory_space<smem>>
    %927 = vector.extract_strided_slice %910 {offsets = [0, 3], sizes = [16, 16], strides = [1, 1]} : vector<16x22xf32> to vector<16x16xf32>
    %928 = vector.broadcast %926 : f32 to vector<16x16xf32>
    %929 = arith.mulf %928, %927 : vector<16x16xf32>
    %930 = arith.addf %925, %929 : vector<16x16xf32>
    %c165 = arith.constant 165 : index
    %931 = memref.load %arg1[%c165] : memref<196xf32, #tpu.memory_space<smem>>
    %932 = vector.extract_strided_slice %910 {offsets = [0, 4], sizes = [16, 16], strides = [1, 1]} : vector<16x22xf32> to vector<16x16xf32>
    %933 = vector.broadcast %931 : f32 to vector<16x16xf32>
    %934 = arith.mulf %933, %932 : vector<16x16xf32>
    %935 = arith.addf %930, %934 : vector<16x16xf32>
    %c166 = arith.constant 166 : index
    %936 = memref.load %arg1[%c166] : memref<196xf32, #tpu.memory_space<smem>>
    %937 = vector.extract_strided_slice %910 {offsets = [0, 5], sizes = [16, 16], strides = [1, 1]} : vector<16x22xf32> to vector<16x16xf32>
    %938 = vector.broadcast %936 : f32 to vector<16x16xf32>
    %939 = arith.mulf %938, %937 : vector<16x16xf32>
    %940 = arith.addf %935, %939 : vector<16x16xf32>
    %c167 = arith.constant 167 : index
    %941 = memref.load %arg1[%c167] : memref<196xf32, #tpu.memory_space<smem>>
    %942 = vector.extract_strided_slice %910 {offsets = [0, 6], sizes = [16, 16], strides = [1, 1]} : vector<16x22xf32> to vector<16x16xf32>
    %943 = vector.broadcast %941 : f32 to vector<16x16xf32>
    %944 = arith.mulf %943, %942 : vector<16x16xf32>
    %945 = arith.addf %940, %944 : vector<16x16xf32>
    %c3_127 = arith.constant 3 : index
    %c3_128 = arith.constant 3 : index
    %c0_129 = arith.constant 0 : index
    %946 = vector.load %arg6[%c3_127, %c3_128, %c0_129] : memref<4x22x22xf32, #tpu.memory_space<vmem>>, vector<1x16x22xf32>
    %947 = vector.shape_cast %946 : vector<1x16x22xf32> to vector<16x22xf32>
    %c168 = arith.constant 168 : index
    %948 = memref.load %arg1[%c168] : memref<196xf32, #tpu.memory_space<smem>>
    %949 = vector.extract_strided_slice %947 {offsets = [0, 0], sizes = [16, 16], strides = [1, 1]} : vector<16x22xf32> to vector<16x16xf32>
    %950 = vector.broadcast %948 : f32 to vector<16x16xf32>
    %951 = arith.mulf %950, %949 : vector<16x16xf32>
    %952 = arith.addf %945, %951 : vector<16x16xf32>
    %c169 = arith.constant 169 : index
    %953 = memref.load %arg1[%c169] : memref<196xf32, #tpu.memory_space<smem>>
    %954 = vector.extract_strided_slice %947 {offsets = [0, 1], sizes = [16, 16], strides = [1, 1]} : vector<16x22xf32> to vector<16x16xf32>
    %955 = vector.broadcast %953 : f32 to vector<16x16xf32>
    %956 = arith.mulf %955, %954 : vector<16x16xf32>
    %957 = arith.addf %952, %956 : vector<16x16xf32>
    %c170 = arith.constant 170 : index
    %958 = memref.load %arg1[%c170] : memref<196xf32, #tpu.memory_space<smem>>
    %959 = vector.extract_strided_slice %947 {offsets = [0, 2], sizes = [16, 16], strides = [1, 1]} : vector<16x22xf32> to vector<16x16xf32>
    %960 = vector.broadcast %958 : f32 to vector<16x16xf32>
    %961 = arith.mulf %960, %959 : vector<16x16xf32>
    %962 = arith.addf %957, %961 : vector<16x16xf32>
    %c171 = arith.constant 171 : index
    %963 = memref.load %arg1[%c171] : memref<196xf32, #tpu.memory_space<smem>>
    %964 = vector.extract_strided_slice %947 {offsets = [0, 3], sizes = [16, 16], strides = [1, 1]} : vector<16x22xf32> to vector<16x16xf32>
    %965 = vector.broadcast %963 : f32 to vector<16x16xf32>
    %966 = arith.mulf %965, %964 : vector<16x16xf32>
    %967 = arith.addf %962, %966 : vector<16x16xf32>
    %c172 = arith.constant 172 : index
    %968 = memref.load %arg1[%c172] : memref<196xf32, #tpu.memory_space<smem>>
    %969 = vector.extract_strided_slice %947 {offsets = [0, 4], sizes = [16, 16], strides = [1, 1]} : vector<16x22xf32> to vector<16x16xf32>
    %970 = vector.broadcast %968 : f32 to vector<16x16xf32>
    %971 = arith.mulf %970, %969 : vector<16x16xf32>
    %972 = arith.addf %967, %971 : vector<16x16xf32>
    %c173 = arith.constant 173 : index
    %973 = memref.load %arg1[%c173] : memref<196xf32, #tpu.memory_space<smem>>
    %974 = vector.extract_strided_slice %947 {offsets = [0, 5], sizes = [16, 16], strides = [1, 1]} : vector<16x22xf32> to vector<16x16xf32>
    %975 = vector.broadcast %973 : f32 to vector<16x16xf32>
    %976 = arith.mulf %975, %974 : vector<16x16xf32>
    %977 = arith.addf %972, %976 : vector<16x16xf32>
    %c174 = arith.constant 174 : index
    %978 = memref.load %arg1[%c174] : memref<196xf32, #tpu.memory_space<smem>>
    %979 = vector.extract_strided_slice %947 {offsets = [0, 6], sizes = [16, 16], strides = [1, 1]} : vector<16x22xf32> to vector<16x16xf32>
    %980 = vector.broadcast %978 : f32 to vector<16x16xf32>
    %981 = arith.mulf %980, %979 : vector<16x16xf32>
    %982 = arith.addf %977, %981 : vector<16x16xf32>
    %c3_130 = arith.constant 3 : index
    %c4_131 = arith.constant 4 : index
    %c0_132 = arith.constant 0 : index
    %983 = vector.load %arg6[%c3_130, %c4_131, %c0_132] : memref<4x22x22xf32, #tpu.memory_space<vmem>>, vector<1x16x22xf32>
    %984 = vector.shape_cast %983 : vector<1x16x22xf32> to vector<16x22xf32>
    %c175 = arith.constant 175 : index
    %985 = memref.load %arg1[%c175] : memref<196xf32, #tpu.memory_space<smem>>
    %986 = vector.extract_strided_slice %984 {offsets = [0, 0], sizes = [16, 16], strides = [1, 1]} : vector<16x22xf32> to vector<16x16xf32>
    %987 = vector.broadcast %985 : f32 to vector<16x16xf32>
    %988 = arith.mulf %987, %986 : vector<16x16xf32>
    %989 = arith.addf %982, %988 : vector<16x16xf32>
    %c176 = arith.constant 176 : index
    %990 = memref.load %arg1[%c176] : memref<196xf32, #tpu.memory_space<smem>>
    %991 = vector.extract_strided_slice %984 {offsets = [0, 1], sizes = [16, 16], strides = [1, 1]} : vector<16x22xf32> to vector<16x16xf32>
    %992 = vector.broadcast %990 : f32 to vector<16x16xf32>
    %993 = arith.mulf %992, %991 : vector<16x16xf32>
    %994 = arith.addf %989, %993 : vector<16x16xf32>
    %c177 = arith.constant 177 : index
    %995 = memref.load %arg1[%c177] : memref<196xf32, #tpu.memory_space<smem>>
    %996 = vector.extract_strided_slice %984 {offsets = [0, 2], sizes = [16, 16], strides = [1, 1]} : vector<16x22xf32> to vector<16x16xf32>
    %997 = vector.broadcast %995 : f32 to vector<16x16xf32>
    %998 = arith.mulf %997, %996 : vector<16x16xf32>
    %999 = arith.addf %994, %998 : vector<16x16xf32>
    %c178 = arith.constant 178 : index
    %1000 = memref.load %arg1[%c178] : memref<196xf32, #tpu.memory_space<smem>>
    %1001 = vector.extract_strided_slice %984 {offsets = [0, 3], sizes = [16, 16], strides = [1, 1]} : vector<16x22xf32> to vector<16x16xf32>
    %1002 = vector.broadcast %1000 : f32 to vector<16x16xf32>
    %1003 = arith.mulf %1002, %1001 : vector<16x16xf32>
    %1004 = arith.addf %999, %1003 : vector<16x16xf32>
    %c179 = arith.constant 179 : index
    %1005 = memref.load %arg1[%c179] : memref<196xf32, #tpu.memory_space<smem>>
    %1006 = vector.extract_strided_slice %984 {offsets = [0, 4], sizes = [16, 16], strides = [1, 1]} : vector<16x22xf32> to vector<16x16xf32>
    %1007 = vector.broadcast %1005 : f32 to vector<16x16xf32>
    %1008 = arith.mulf %1007, %1006 : vector<16x16xf32>
    %1009 = arith.addf %1004, %1008 : vector<16x16xf32>
    %c180 = arith.constant 180 : index
    %1010 = memref.load %arg1[%c180] : memref<196xf32, #tpu.memory_space<smem>>
    %1011 = vector.extract_strided_slice %984 {offsets = [0, 5], sizes = [16, 16], strides = [1, 1]} : vector<16x22xf32> to vector<16x16xf32>
    %1012 = vector.broadcast %1010 : f32 to vector<16x16xf32>
    %1013 = arith.mulf %1012, %1011 : vector<16x16xf32>
    %1014 = arith.addf %1009, %1013 : vector<16x16xf32>
    %c181 = arith.constant 181 : index
    %1015 = memref.load %arg1[%c181] : memref<196xf32, #tpu.memory_space<smem>>
    %1016 = vector.extract_strided_slice %984 {offsets = [0, 6], sizes = [16, 16], strides = [1, 1]} : vector<16x22xf32> to vector<16x16xf32>
    %1017 = vector.broadcast %1015 : f32 to vector<16x16xf32>
    %1018 = arith.mulf %1017, %1016 : vector<16x16xf32>
    %1019 = arith.addf %1014, %1018 : vector<16x16xf32>
    %c3_133 = arith.constant 3 : index
    %c5_134 = arith.constant 5 : index
    %c0_135 = arith.constant 0 : index
    %1020 = vector.load %arg6[%c3_133, %c5_134, %c0_135] : memref<4x22x22xf32, #tpu.memory_space<vmem>>, vector<1x16x22xf32>
    %1021 = vector.shape_cast %1020 : vector<1x16x22xf32> to vector<16x22xf32>
    %c182 = arith.constant 182 : index
    %1022 = memref.load %arg1[%c182] : memref<196xf32, #tpu.memory_space<smem>>
    %1023 = vector.extract_strided_slice %1021 {offsets = [0, 0], sizes = [16, 16], strides = [1, 1]} : vector<16x22xf32> to vector<16x16xf32>
    %1024 = vector.broadcast %1022 : f32 to vector<16x16xf32>
    %1025 = arith.mulf %1024, %1023 : vector<16x16xf32>
    %1026 = arith.addf %1019, %1025 : vector<16x16xf32>
    %c183 = arith.constant 183 : index
    %1027 = memref.load %arg1[%c183] : memref<196xf32, #tpu.memory_space<smem>>
    %1028 = vector.extract_strided_slice %1021 {offsets = [0, 1], sizes = [16, 16], strides = [1, 1]} : vector<16x22xf32> to vector<16x16xf32>
    %1029 = vector.broadcast %1027 : f32 to vector<16x16xf32>
    %1030 = arith.mulf %1029, %1028 : vector<16x16xf32>
    %1031 = arith.addf %1026, %1030 : vector<16x16xf32>
    %c184 = arith.constant 184 : index
    %1032 = memref.load %arg1[%c184] : memref<196xf32, #tpu.memory_space<smem>>
    %1033 = vector.extract_strided_slice %1021 {offsets = [0, 2], sizes = [16, 16], strides = [1, 1]} : vector<16x22xf32> to vector<16x16xf32>
    %1034 = vector.broadcast %1032 : f32 to vector<16x16xf32>
    %1035 = arith.mulf %1034, %1033 : vector<16x16xf32>
    %1036 = arith.addf %1031, %1035 : vector<16x16xf32>
    %c185 = arith.constant 185 : index
    %1037 = memref.load %arg1[%c185] : memref<196xf32, #tpu.memory_space<smem>>
    %1038 = vector.extract_strided_slice %1021 {offsets = [0, 3], sizes = [16, 16], strides = [1, 1]} : vector<16x22xf32> to vector<16x16xf32>
    %1039 = vector.broadcast %1037 : f32 to vector<16x16xf32>
    %1040 = arith.mulf %1039, %1038 : vector<16x16xf32>
    %1041 = arith.addf %1036, %1040 : vector<16x16xf32>
    %c186 = arith.constant 186 : index
    %1042 = memref.load %arg1[%c186] : memref<196xf32, #tpu.memory_space<smem>>
    %1043 = vector.extract_strided_slice %1021 {offsets = [0, 4], sizes = [16, 16], strides = [1, 1]} : vector<16x22xf32> to vector<16x16xf32>
    %1044 = vector.broadcast %1042 : f32 to vector<16x16xf32>
    %1045 = arith.mulf %1044, %1043 : vector<16x16xf32>
    %1046 = arith.addf %1041, %1045 : vector<16x16xf32>
    %c187 = arith.constant 187 : index
    %1047 = memref.load %arg1[%c187] : memref<196xf32, #tpu.memory_space<smem>>
    %1048 = vector.extract_strided_slice %1021 {offsets = [0, 5], sizes = [16, 16], strides = [1, 1]} : vector<16x22xf32> to vector<16x16xf32>
    %1049 = vector.broadcast %1047 : f32 to vector<16x16xf32>
    %1050 = arith.mulf %1049, %1048 : vector<16x16xf32>
    %1051 = arith.addf %1046, %1050 : vector<16x16xf32>
    %c188 = arith.constant 188 : index
    %1052 = memref.load %arg1[%c188] : memref<196xf32, #tpu.memory_space<smem>>
    %1053 = vector.extract_strided_slice %1021 {offsets = [0, 6], sizes = [16, 16], strides = [1, 1]} : vector<16x22xf32> to vector<16x16xf32>
    %1054 = vector.broadcast %1052 : f32 to vector<16x16xf32>
    %1055 = arith.mulf %1054, %1053 : vector<16x16xf32>
    %1056 = arith.addf %1051, %1055 : vector<16x16xf32>
    %c3_136 = arith.constant 3 : index
    %c6_137 = arith.constant 6 : index
    %c0_138 = arith.constant 0 : index
    %1057 = vector.load %arg6[%c3_136, %c6_137, %c0_138] : memref<4x22x22xf32, #tpu.memory_space<vmem>>, vector<1x16x22xf32>
    %1058 = vector.shape_cast %1057 : vector<1x16x22xf32> to vector<16x22xf32>
    %c189 = arith.constant 189 : index
    %1059 = memref.load %arg1[%c189] : memref<196xf32, #tpu.memory_space<smem>>
    %1060 = vector.extract_strided_slice %1058 {offsets = [0, 0], sizes = [16, 16], strides = [1, 1]} : vector<16x22xf32> to vector<16x16xf32>
    %1061 = vector.broadcast %1059 : f32 to vector<16x16xf32>
    %1062 = arith.mulf %1061, %1060 : vector<16x16xf32>
    %1063 = arith.addf %1056, %1062 : vector<16x16xf32>
    %c190 = arith.constant 190 : index
    %1064 = memref.load %arg1[%c190] : memref<196xf32, #tpu.memory_space<smem>>
    %1065 = vector.extract_strided_slice %1058 {offsets = [0, 1], sizes = [16, 16], strides = [1, 1]} : vector<16x22xf32> to vector<16x16xf32>
    %1066 = vector.broadcast %1064 : f32 to vector<16x16xf32>
    %1067 = arith.mulf %1066, %1065 : vector<16x16xf32>
    %1068 = arith.addf %1063, %1067 : vector<16x16xf32>
    %c191 = arith.constant 191 : index
    %1069 = memref.load %arg1[%c191] : memref<196xf32, #tpu.memory_space<smem>>
    %1070 = vector.extract_strided_slice %1058 {offsets = [0, 2], sizes = [16, 16], strides = [1, 1]} : vector<16x22xf32> to vector<16x16xf32>
    %1071 = vector.broadcast %1069 : f32 to vector<16x16xf32>
    %1072 = arith.mulf %1071, %1070 : vector<16x16xf32>
    %1073 = arith.addf %1068, %1072 : vector<16x16xf32>
    %c192 = arith.constant 192 : index
    %1074 = memref.load %arg1[%c192] : memref<196xf32, #tpu.memory_space<smem>>
    %1075 = vector.extract_strided_slice %1058 {offsets = [0, 3], sizes = [16, 16], strides = [1, 1]} : vector<16x22xf32> to vector<16x16xf32>
    %1076 = vector.broadcast %1074 : f32 to vector<16x16xf32>
    %1077 = arith.mulf %1076, %1075 : vector<16x16xf32>
    %1078 = arith.addf %1073, %1077 : vector<16x16xf32>
    %c193 = arith.constant 193 : index
    %1079 = memref.load %arg1[%c193] : memref<196xf32, #tpu.memory_space<smem>>
    %1080 = vector.extract_strided_slice %1058 {offsets = [0, 4], sizes = [16, 16], strides = [1, 1]} : vector<16x22xf32> to vector<16x16xf32>
    %1081 = vector.broadcast %1079 : f32 to vector<16x16xf32>
    %1082 = arith.mulf %1081, %1080 : vector<16x16xf32>
    %1083 = arith.addf %1078, %1082 : vector<16x16xf32>
    %c194 = arith.constant 194 : index
    %1084 = memref.load %arg1[%c194] : memref<196xf32, #tpu.memory_space<smem>>
    %1085 = vector.extract_strided_slice %1058 {offsets = [0, 5], sizes = [16, 16], strides = [1, 1]} : vector<16x22xf32> to vector<16x16xf32>
    %1086 = vector.broadcast %1084 : f32 to vector<16x16xf32>
    %1087 = arith.mulf %1086, %1085 : vector<16x16xf32>
    %1088 = arith.addf %1083, %1087 : vector<16x16xf32>
    %c195 = arith.constant 195 : index
    %1089 = memref.load %arg1[%c195] : memref<196xf32, #tpu.memory_space<smem>>
    %1090 = vector.extract_strided_slice %1058 {offsets = [0, 6], sizes = [16, 16], strides = [1, 1]} : vector<16x22xf32> to vector<16x16xf32>
    %1091 = vector.broadcast %1089 : f32 to vector<16x16xf32>
    %1092 = arith.mulf %1091, %1090 : vector<16x16xf32>
    %1093 = arith.addf %1088, %1092 : vector<16x16xf32>
    %1094 = arith.addf %313, %573 : vector<16x16xf32>
    %1095 = arith.addf %833, %1093 : vector<16x16xf32>
    %1096 = arith.addf %1094, %1095 : vector<16x16xf32>
    %c0_139 = arith.constant 0 : index
    %1097 = memref.load %arg2[%c0_139] : memref<1xf32, #tpu.memory_space<smem>>
    %1098 = vector.broadcast %1097 : f32 to vector<16x16xf32>
    %1099 = arith.addf %1096, %1098 : vector<16x16xf32>
    %1100 = math.absf %1099 : vector<16x16xf32>
    %cst_140 = arith.constant 0.000000e+00 : f32
    %1101 = vector.broadcast %cst_140 : f32 to vector<16x16xf32>
    %1102 = arith.subf %1101, %1100 : vector<16x16xf32>
    %1103 = math.exp %1102 : vector<16x16xf32>
    %cst_141 = arith.constant 1.000000e+00 : f32
    %1104 = vector.broadcast %cst_141 : f32 to vector<16x16xf32>
    %1105 = arith.addf %1104, %1103 : vector<16x16xf32>
    %cst_142 = arith.constant 1.000000e+00 : f32
    %1106 = vector.broadcast %cst_142 : f32 to vector<16x16xf32>
    %1107 = arith.divf %1106, %1105 : vector<16x16xf32>
    %cst_143 = arith.constant 0.000000e+00 : f32
    %1108 = vector.broadcast %cst_143 : f32 to vector<16x16xf32>
    %1109 = arith.cmpf oge, %1099, %1108 : vector<16x16xf32>
    %cst_144 = arith.constant 1.000000e+00 : f32
    %1110 = vector.broadcast %cst_144 : f32 to vector<16x16xf32>
    %1111 = arith.subf %1110, %1107 : vector<16x16xf32>
    %1112 = arith.select %1109, %1107, %1111 : vector<16x16xi1>, vector<16x16xf32>
    %c0_145 = arith.constant 0 : index
    %c0_146 = arith.constant 0 : index
    %c0_147 = arith.constant 0 : index
    %1113 = vector.load %arg5[%c0_145, %c0_146, %c0_147] : memref<1x16x16xf32, #tpu.memory_space<vmem>>, vector<1x16x16xf32>
    %1114 = vector.shape_cast %1113 : vector<1x16x16xf32> to vector<16x16xf32>
    %1115 = vector.shape_cast %1112 : vector<16x16xf32> to vector<1x16x16xf32>
    tpu.vector_store %arg5[%c0_145, %c0_146, %c0_147], %1115 {strides = array<i32>} : memref<1x16x16xf32, #tpu.memory_space<vmem>>, vector<1x16x16xf32>,
    return
  }
  func.func @transform_0(%arg0: i32) -> i32 {
    %c0_i32 = arith.constant 0 : i32
    %c0_i32_0 = arith.constant 0 : i32
    return %c0_i32 : i32
  }
  func.func @transform_1(%arg0: i32) -> i32 {
    %c0_i32 = arith.constant 0 : i32
    %c0_i32_0 = arith.constant 0 : i32
    return %c0_i32 : i32
  }
  func.func @transform_2(%arg0: i32) -> (i32, i32, i32, i32) {
    %c0_i32 = arith.constant 0 : i32
    %c0_i32_0 = arith.constant 0 : i32
    %c0_i32_1 = arith.constant 0 : i32
    %c0_i32_2 = arith.constant 0 : i32
    return %arg0, %c0_i32, %c0_i32_0, %c0_i32_1 : i32, i32, i32, i32
  }
  func.func @transform_3(%arg0: i32) -> (i32, i32, i32, i32) {
    %c0_i32 = arith.constant 0 : i32
    %c0_i32_0 = arith.constant 0 : i32
    %c0_i32_1 = arith.constant 0 : i32
    %c0_i32_2 = arith.constant 0 : i32
    return %arg0, %c0_i32, %c0_i32_0, %c0_i32_1 : i32, i32, i32, i32
  }
  func.func @transform_4(%arg0: i32) -> (i32, i32, i32) {
    %c0_i32 = arith.constant 0 : i32
    %c0_i32_0 = arith.constant 0 : i32
    %c0_i32_1 = arith.constant 0 : i32
    return %arg0, %c0_i32, %c0_i32_0 : i32, i32, i32
  }
}

</mosaic_0001>

<bundles_post_ra>
// kernel: tpu_custom_call.1
= control target key start
LH: loop header
LB: loop body
LE: loop exit
PB: predicated region body
PF: predicated region fallthrough
CT: control target
= control target key end

     0   :  { %s5336_s0 = inlined_call_operand.vmem [shape: f32[196], index: 0, kind: input, shape index: {}]   ;;  %s5337_s1 = inlined_call_operand.<no memory space> [shape: f32[1], index: 1, kind: input, shape index: {}]   ;;  %s5338_s2 = inlined_call_operand.hbm [shape: f32[2,4,16,16], index: 2, kind: input, shape index: {}]   ;;  %s5339_s3 = inlined_call_operand.hbm [shape: f32[2,4,16,16], index: 3, kind: input, shape index: {}]   ;;  %s5340_s4 = inlined_call_operand.hbm [shape: f32[2,16,16], index: 4, kind: output, shape index: {}]  }
   0x1   :  { %9 = sst [smem:[#allocation3]] %s5337_s1 }
   0x2   :  { %10 = vsyncpa [#allocation7], 0 }
   0x3   :  { %11 = vsyncpa [#allocation5], 0 }
   0x4   :  { %13 = vsyncpa [#allocation5 + $0x1], 0 }
   0x5   :  { %14 = vsyncpa [#allocation10], 0 }
   0x6   :  { %16 = vsyncpa [#allocation10 + $0x1], 0 }
   0x7   :  { %17 = vsyncpa [#allocation6], 0 }
   0x8   :  { %19 = vsyncpa [#allocation6 + $0x1], 0  ;;  %s3646_s17 = smov 0   ;;  %s3648_s18 = smov 0  }
   0x9   :  { %s3650_s19 = smov 0   ;;  %s3652_s20 = smov 0  }
   0xa LB: > { %s3667_s1 = sadd.s32 4294967295, %s3600_s20   ;;  %s3150_s21 = sadd.s32 4294967294, %s3600_s20   ;;  %s3600_s20 = sphi %s3652_s20, %s5360_s20   ;;  %s3596_s19 = sphi %s3650_s19, %s5359_s19   ;;  %s3592_s18 = sphi %s3648_s18, %s5358_s18   ;;  %s3588_s17 = sphi %s3646_s17, %s5357_s17  }
   0xb   : > { %s3671_s22 = sadd.s32 1, %s3600_s20   ;;  %s74_s23 = sadd.s32 1, %s3596_s19 }
   0xc   : > { %s71_s24 = ssub.s32 %s3600_s20, %s3671_s22  ;;  %p81_p0 = scmp.ne.s32.totalorder %s3596_s19, %s3592_s18 }
   0xd   : > { %p72_p1 = scmp.eq.s32.totalorder %s71_s24, 0  ;;  %p82_p2 = scmp.eq.s32.totalorder %s3600_s20, 0 }
   0xe   : > { %p87_p3 = scmp.ne.s32.totalorder %s3592_s18, %s3588_s17  ;;  %p5341_p4 = scmp.eq.s32.totalorder %s3667_s1, 0 }
   0xf   : > { %s3683_s25 = scalar_select %p72_p1, %s3596_s19, %s74_s23  }
  0x10   : > { %p3685_p5 = por %p82_p2, %p81_p0  ;;  %p3691_p6 = por %p5341_p4, %p87_p3 }
  0x11   : > { %p137_p7 = scmp.eq.s32.totalorder %s3667_s1, 1  ;;  %p143_p8 = scmp.eq.s32.totalorder %s3150_s21, 1 }
  0x12   : > { %s5345_s27 = scalar_select %p3691_p6, 1, 0 }
  0x13   : > { %p3151_p9 = scmp.ge.s32.totalorder %s3600_s20, 1  ;;  %p150_p10 = scmp.lt.s32.totalorder %s3600_s20, 3 }
  0x14   : > { %p3698_p11 = por %p137_p7, %p81_p0  ;;  %p3702_p12 = por %p143_p8, %p87_p3 }
  0x15   : > { %p3706_p13 = pnand %p3151_p9, %p150_p10  ;;  %s163_s7 = sshll.u32 %s5336_s0, 4  ;;  %s164_s7 = int_to_ptr.vmem [resolvable:$true] %s163_s7 }
  0x16   : > { %s5346_s28 = scalar_select %p3698_p11, 1, 0 }
  0x17   : > { %s5347_s29 = scalar_select %p3702_p12, 1, 0 }
  0x18   : > { %p3378_p1 = pneg %p3706_p13  ;;  %p3394_p2 = scmp.lt.s32.totalorder %s3600_s20, 2 }
  0x19   : > { %s3724_s9 = sand.u32 1, %s3596_s19   ;;  %s3451_s12 = scalar_lea.vmem %s164_s7, 32 }
  0x1a   : > { %p3719_p7 = pnand %p3378_p1, %p5341_p4  ;;  %p3728_p3 = pnand %p3394_p2, %p3685_p5 }
  0x1b   : > { %s3154_s11 = sshll.u32 %s3724_s9, 6  ;;  %p3452_p8 = scmp.ne.s32.totalorder %s164_s7, %s3451_s12 }
  0x1c   : > { %p3453_p9 = pneg %p3719_p7  ;;  %p3459_p1 = scmp.lt.s32.totalorder %s164_s7, %s164_s7 }
  0x1d   : > { %p3460_p4 = scmp.lt.s32.totalorder %s3451_s12, %s3451_s12 }
  0x1e   : > { %p3454_p10 = pnand %p3453_p9, %p3452_p8 }
  0x1f   : > { %p3461_p12 = por %p3460_p4, %p3459_p1 }
  0x20   : > { %p3455_p0 = pneg %p3454_p10 }
  0x22   : > { %p3462_p11 = pnand %p3461_p12, %p3455_p0 }
  0x24   : > { %3465 = shalt.err (!%p3462_p11)
}
  0x25   : > { %s3602_s13 = smov [#allocation4]   ;;  %s3365_s14 = sshll.u32 %s3600_s20, 10 }
  0x26   : > { %3381 = dma.vmem_to_smem (!%p3719_p7), %s164_s7, 32, %s3602_s13, [#allocation7]  }
  0x27   : > { %s181_s15 = scalar_lea.vmem [#allocation8], %s3154_s11  ;;  %s3745_s24 = scalar_lea.hbm %s5338_s2, %s3365_s14 }
  0x28   : > { %s188_s16 = sshll.u32 %s181_s15, 4  ;;  %s178_s26 = scalar_lea.sflag [#allocation5], %s3724_s9  ;;  %s3747_s16 = int_to_ptr.vmem [resolvable:$true] %s188_s16 }
  0x29   : > { %s3466_s5 = scalar_lea.hbm %s3745_s24, 1024  ;;  %p3468_p5 = pneg %p3728_p3 }
  0x2a   : > { %p3467_p4 = scmp.ne.s32.totalorder %s3745_s24, %s3466_s5  ;;  %s3471_s8 = scalar_lea.hbm %s5338_s2, 2048 }
  0x2b   : > { %p3472_p0 = scmp.lt.u32.totalorder %s3745_s24, %s5338_s2  ;;  %p3473_p2 = scmp.lt.u32.totalorder %s3471_s8, %s3466_s5 }
  0x2c   : > { %p3469_p11 = pnand %p3468_p5, %p3467_p4  ;;  %p3475_p8 = scmp.lt.u32.totalorder %s3466_s5, %s3745_s24 }
  0x2d   : > { %p3474_p7 = por %p3473_p2, %p3472_p0 }
  0x2e   : > { %p3470_p12 = pneg %p3469_p11 }
  0x2f   : > { %p3476_p9 = por %p3475_p8, %p3474_p7 }
  0x31   : > { %p3477_p10 = pnand %p3476_p9, %p3470_p12 }
  0x33   : > { %3480 = shalt.err (!%p3477_p10)
}
  0x34   : > { %s3481_s15 = scalar_lea.vmem %s3747_s16, 1024  ;;  %s3603_s21 = smov [#allocation8]  }
  0x35   : > { %p3482_p1 = scmp.ne.s32.totalorder %s3747_s16, %s3481_s15  ;;  %s3486_s23 = sshll.u32 %s3603_s21, 4  ;;  %s3487_s23 = int_to_ptr.vmem [resolvable:$false] %s3486_s23 }
  0x36   : > { %s3488_s6 = scalar_lea.vmem %s3487_s23, 2048  ;;  %p3489_p6 = scmp.lt.s32.totalorder %s3747_s16, %s3487_s23 }
  0x37   : > { %p3484_p4 = pnand %p3482_p1, %p3468_p5  ;;  %p3490_p0 = scmp.lt.s32.totalorder %s3488_s6, %s3481_s15 }
  0x39   : > { %p3485_p11 = pneg %p3484_p4  ;;  %p3491_p2 = por %p3490_p0, %p3489_p6 }
  0x3b   : > { %p3492_p7 = pnand %p3491_p2, %p3485_p11 }
  0x3d   : > { %3495 = shalt.err (!%p3492_p7)
}
  0x3e   : > { %s3604_s5 = smov 128   ;;  %s3605_s7 = smov 8  }
  0x3f   : > { %3385 = dma.hbm_to_vmem [thread:$0]  (!%p3728_p3), %s3745_s24, 1024, %s3747_s16, %s178_s26, %s3604_s5, %s3604_s5, %s3605_s7  }
  0x40   : > { %s3785_s13 = scalar_lea.hbm %s5339_s3, %s3365_s14  ;;  %s202_s15 = scalar_lea.vmem [#allocation9], %s3154_s11 }
  0x41   : > { %s209_s21 = sshll.u32 %s202_s15, 4  ;;  %s199_s23 = scalar_lea.sflag [#allocation10], %s3724_s9  ;;  %s3789_s21 = int_to_ptr.vmem [resolvable:$true] %s209_s21 }
  0x42   : > { %s3496_s6 = scalar_lea.hbm %s3785_s13, 1024  ;;  %s3501_s14 = scalar_lea.hbm %s5339_s3, 2048 }
  0x43   : > { %p3497_p6 = scmp.ne.s32.totalorder %s3785_s13, %s3496_s6  ;;  %p3502_p9 = scmp.lt.u32.totalorder %s3785_s13, %s5339_s3 }
  0x44   : > { %p3503_p10 = scmp.lt.u32.totalorder %s3501_s14, %s3496_s6  ;;  %p3505_p4 = scmp.lt.u32.totalorder %s3496_s6, %s3785_s13 }
  0x45   : > { %p3499_p12 = pnand %p3497_p6, %p3468_p5 }
  0x46   : > { %p3504_p1 = por %p3503_p10, %p3502_p9 }
  0x47   : > { %p3500_p8 = pneg %p3499_p12 }
  0x48   : > { %p3506_p11 = por %p3505_p4, %p3504_p1 }
  0x4a   : > { %p3507_p0 = pnand %p3506_p11, %p3500_p8 }
  0x4c   : > { %3510 = shalt.err (!%p3507_p0)
}
  0x4d   : > { %s3511_s11 = scalar_lea.vmem %s3789_s21, 1024  ;;  %s3606_s12 = smov [#allocation9]  }
  0x4e   : > { %p3512_p2 = scmp.ne.s32.totalorder %s3789_s21, %s3511_s11  ;;  %s3516_s15 = sshll.u32 %s3606_s12, 4  ;;  %s3517_s15 = int_to_ptr.vmem [resolvable:$false] %s3516_s15 }
  0x4f   : > { %s3518_s16 = scalar_lea.vmem %s3517_s15, 2048  ;;  %p3519_p12 = scmp.lt.s32.totalorder %s3789_s21, %s3517_s15 }
  0x50   : > { %p3514_p7 = pnand %p3512_p2, %p3468_p5  ;;  %p3520_p9 = scmp.lt.s32.totalorder %s3518_s16, %s3511_s11 }
  0x52   : > { %p3515_p6 = pneg %p3514_p7  ;;  %p3521_p10 = por %p3520_p9, %p3519_p12 }
  0x54   : > { %p3522_p1 = pnand %p3521_p10, %p3515_p6 }
  0x56   : > { %3525 = shalt.err (!%p3522_p1)
}
  0x57   : > { %3388 = dma.hbm_to_vmem [thread:$0]  (!%p3728_p3), %s3785_s13, 1024, %s3789_s21, %s199_s23, %s3604_s5, %s3604_s5, %s3605_s7  }
  0x58   : > { %221 = sbr.rel (%p3706_p13) target bundleno = 1084 (0x43c), region = 36  ;;  %p5351_p5 = scmp.eq.s32.totalorder (!%p3706_p13), %s3667_s1, 0 }
  0x5f   : > { %3571 = dma.done.wait (%p5351_p5), [#allocation7], 32   ;;  %p5352_p8 = pmov %p5351_p5 }
  0x60   : > { %s3827_s10 = sand.u32 1, %s3592_s18   ;;  %p5353_p4 = scmp.ne.s32.totalorder %s5345_s27, 0 }
  0x61   : > { %3573 = vsyncadd (%p5352_p8), [#allocation7], 4294967264  ;;  %s3162_s6 = sshll.u32 %s3827_s10, 6  ;;  %s228_s9 = scalar_lea.sflag [#allocation5], %s3827_s10 }
  0x62   : > { %s231_s24 = scalar_lea.vmem [#allocation8], %s3162_s6 }
  0x63   : > { %3575 = dma.done.wait (%p5353_p4), %s228_s9, 1024  }
  0x64   : > { %3577 = vsyncadd (%p5353_p4), %s228_s9, 4294966272  ;;  %s237_s30 = scalar_lea.sflag [#allocation10], %s3827_s10  ;;  %s3836_s5 = scalar_lea.vmem [#allocation9], %s3162_s6 }
  0x65   : > { %3579 = dma.done.wait (%p5353_p4), %s237_s30, 1024  }
  0x66   : > { %3581 = vsyncadd (%p5353_p4), %s237_s30, 4294966272 }
  0x67   : > { %245 = sfence }
  0x68   : > { %v271_v0 = vld [vmem:[%s231_s24] sm:$0xff]  ;;  %v273_v1 = vld [vmem:[%s231_s24 + $0x10] sm:$0xff]  ;;  %vm279_vm0 = vcmask 130048   ;;  %v272_v7 = vld [vmem:[%s231_s24 + $0x8] sm:$0xff]  ;;  %s3607_s27 = smov 3   ;;  %vm349_vm1 = vcmask 174080  }
  0x69   : > { %v275_v2 = vld [vmem:[%s231_s24 + $0x20] sm:$0xff]  ;;  %v277_v3 = vld [vmem:[%s231_s24 + $0x30] sm:$0xff]  ;;  %v280_v4 = vsel %vm279_vm0, %v271_v0, 0.0  ;;  %v281_v5 = vsel %vm279_vm0, %v273_v1, 0.0  ;;  %v274_v8 = vld [vmem:[%s231_s24 + $0x18] sm:$0xff]  ;;  %v287_v13 = vsel %vm279_vm0, %v272_v7, 0.0 }
  0x6a   : > { %v283_v6 = vsel %vm279_vm0, %v275_v2, 0.0  ;;  %v282_v9 = vadd.f32 %v281_v5, %v280_v4  ;;  %v285_v10 = vsel %vm279_vm0, %v277_v3, 0.0  ;;  %v276_v11 = vld [vmem:[%s231_s24 + $0x28] sm:$0xff]  ;;  %v278_v12 = vld [vmem:[%s231_s24 + $0x38] sm:$0xff]  ;;  %v288_v14 = vsel %vm279_vm0, %v274_v8, 0.0  ;;  %v311_v26 = vld [vmem:[%s3836_s5] sm:$0xff] }
  0x6b   : > { %v289_v15 = vadd.f32 %v288_v14, %v287_v13  ;;  %v290_v16 = vsel %vm279_vm0, %v276_v11, 0.0  ;;  %v292_v17 = vsel %vm279_vm0, %v278_v12, 0.0  ;;  %v297_v18 = vsel %vm279_vm0, %v271_v0, -inf  ;;  %v313_v30 = vld [vmem:[%s3836_s5 + $0x10] sm:$0xff]  ;;  %v315_v31 = vld [vmem:[%s3836_s5 + $0x20] sm:$0xff]  ;;  %v312_v37 = vld [vmem:[%s3836_s5 + $0x8] sm:$0xff] }
  0x6c   : > { %v284_v19 = vadd.f32 %v283_v6, %v282_v9  ;;  %v298_v20 = vsel %vm279_vm0, %v273_v1, -inf  ;;  %v299_v21 = vsel %vm279_vm0, %v275_v2, -inf  ;;  %v301_v22 = vsel %vm279_vm0, %v277_v3, -inf  ;;  %v317_v32 = vld [vmem:[%s3836_s5 + $0x30] sm:$0xff]  ;;  %v314_v38 = vld [vmem:[%s3836_s5 + $0x18] sm:$0xff]  ;;  %v316_v43 = vld [vmem:[%s3836_s5 + $0x28] sm:$0xff] }
  0x6d   : > { %v291_v23 = vadd.f32 %v290_v16, %v289_v15  ;;  %v300_v24 = vmax.f32 %v297_v18, %v299_v21  ;;  %v302_v25 = vmax.f32 %v298_v20, %v301_v22  ;;  %v304_v28 = vsel %vm279_vm0, %v272_v7, -inf  ;;  %v318_v44 = vld [vmem:[%s3836_s5 + $0x38] sm:$0xff]  ;;  %s3890_s7 = sld [smem:[#allocation4 + $0x1]]  ;;  %s3898_s13 = sld [smem:[#allocation4 + $0x2]] }
  0x6e   : > { %v286_v27 = vadd.f32 %v285_v10, %v284_v19  ;;  %v305_v29 = vsel %vm279_vm0, %v274_v8, -inf  ;;  %v306_v35 = vsel %vm279_vm0, %v276_v11, -inf  ;;  %v308_v36 = vsel %vm279_vm0, %v278_v12, -inf  ;;  %s3907_s21 = sld [smem:[#allocation4 + $0x3]]  ;;  %s3916_s23 = sld [smem:[#allocation4 + $0x4]] }
  0x6f   : > { %v293_v33 = vadd.f32 %v292_v17, %v291_v23  ;;  %v303_v34 = vmax.f32 %v300_v24, %v302_v25  ;;  %v307_v40 = vmax.f32 %v304_v28, %v306_v35  ;;  %v309_v41 = vmax.f32 %v305_v29, %v308_v36  ;;  %s3609_s14 = smov 127   ;;  %s3925_s26 = sld [smem:[#allocation4 + $0x5]] }
  0x70   : > { %v295_v39 = vmul.f32 0.25, %v286_v27  ;;  %v319_v42 = vsel %vm279_vm0, %v311_v26, 0.0  ;;  %v320_v46 = vsel %vm279_vm0, %v313_v30, 0.0  ;;  %v322_v47 = vsel %vm279_vm0, %v315_v31, 0.0  ;;  %s3610_s8 = smov 126   ;;  %s3934_s11 = sld [smem:[#allocation4 + $0x6]] }
  0x71   : > { %v296_v45 = vmul.f32 0.25, %v293_v33  ;;  %374 = vrot.lane.b32.xlu1 %v303_v34, %s3607_s27  ;;  %v324_v48 = vsel %vm279_vm0, %v317_v32, 0.0  ;;  %v310_v49 = vmax.f32 %v307_v40, %v309_v41  ;;  %v321_v50 = vadd.f32 %v320_v46, %v319_v42  ;;  %s3611_s12 = smov 125   ;;  %s3942_s15 = sld [smem:[#allocation4 + $0x8]] }
  0x72   : > { %354 = vrot.lane.b32.xlu0 %v295_v39, %s3607_s27  ;;  %v326_v51 = vsel %vm279_vm0, %v312_v37, 0.0  ;;  %v327_v52 = vsel %vm279_vm0, %v314_v38, 0.0  ;;  %v329_v54 = vsel %vm279_vm0, %v316_v43, 0.0  ;;  %v331_v55 = vsel %vm279_vm0, %v318_v44, 0.0  ;;  %s3612_s16 = smov 124   ;;  %s3173_s6 = sld [smem:[#allocation4 + $0x9]] }
  0x73   : > { %v328_v53 = vadd.f32 %v327_v52, %v326_v51  ;;  %v335_v56 = vsel %vm279_vm0, %v311_v26, -inf  ;;  %v323_v57 = vadd.f32 %v322_v47, %v321_v50  ;;  %v336_v58 = vsel %vm279_vm0, %v313_v30, -inf  ;;  %s3613_s9 = smov 123   ;;  %s3174_s24 = sld [smem:[#allocation4 + $0xa]] }
  0x74   : > { %v337_v59 = vsel %vm279_vm0, %v315_v31, -inf  ;;  %v339_v60 = vsel %vm279_vm0, %v317_v32, -inf  ;;  %v342_v0 = vsel %vm279_vm0, %v312_v37, -inf  ;;  %v343_v2 = vsel %vm279_vm0, %v314_v38, -inf  ;;  %s3614_s30 = smov 122   ;;  %s3175_s5 = sld [smem:[#allocation4 + $0xb]] }
  0x75   : > { %376 = vrot.lane.b32.xlu1 %v310_v49, %s3607_s27  ;;  %v330_v61 = vadd.f32 %v329_v54, %v328_v53  ;;  %v338_v62 = vmax.f32 %v335_v56, %v337_v59  ;;  %v340_v63 = vmax.f32 %v336_v58, %v339_v60  ;;  %v325_v1 = vadd.f32 %v324_v48, %v323_v57  ;;  %p5354_p3 = scmp.ne.s32.totalorder %s5346_s28, 0 }
  0x76   : > { %356 = vrot.lane.b32.xlu0 %v296_v45, %s3607_s27  ;;  %v344_v3 = vsel %vm279_vm0, %v316_v43, -inf  ;;  %v346_v4 = vsel %vm279_vm0, %v318_v44, -inf  ;;  %v3608_v10 = vmov 0.0   ;;  %vm360_vm2 = vcmask 23552  }
  0x77   : > { %v332_v5 = vadd.f32 %v331_v55, %v330_v61  ;;  %v345_v6 = vmax.f32 %v342_v0, %v344_v3  ;;  %v347_v7 = vmax.f32 %v343_v2, %v346_v4  ;;  %v333_v8 = vmul.f32 0.25, %v325_v1  ;;  %350 = vst.msk [vmem:[#allocation2] sm:$0x7] %vm349_vm1, %v3608_v10  ;;  %351 = vst.msk [vmem:[#allocation2 + $0x13] sm:$0x7] %vm349_vm1, %v3608_v10 }
  0x78   : > { %370 = vst.msk [vmem:[#allocation2 + $0x18] sm:$0x7] %vm349_vm1, %v3608_v10  ;;  %371 = vst.msk [vmem:[#allocation2 + $0x2b] sm:$0x7] %vm349_vm1, %v3608_v10  ;;  %v341_v11 = vmax.f32 %v338_v62, %v340_v63  ;;  %vm363_vm3 = vcmask 154624   ;;  %vm366_vm4 = vcmask 179200   ;;  %v429_v25 = vstv %s3890_s7 }
  0x79   : > { %v334_v9 = vmul.f32 0.25, %v332_v5  ;;  %387 = vst.msk [vmem:[#allocation2 + $0x30] sm:$0x7] %vm349_vm1, %v3608_v10  ;;  %388 = vst.msk [vmem:[#allocation2 + $0x43] sm:$0x7] %vm349_vm1, %v3608_v10  ;;  %v348_v12 = vmax.f32 %v345_v6, %v347_v7  ;;  %v443_v32 = vstv %s3898_s13  ;;  %v457_v37 = vstv %s3907_s21  ;;  %s3177_s7 = sld [smem:[#allocation4 + $0xd]] }
  0x7a   : > { %404 = vst.msk [vmem:[#allocation2 + $0x48] sm:$0x7] %vm349_vm1, %v3608_v10  ;;  %405 = vst.msk [vmem:[#allocation2 + $0x5b] sm:$0x7] %vm349_vm1, %v3608_v10  ;;  %391 = vrot.lane.b32.xlu0 %v333_v8, %s3607_s27  ;;  %v471_v41 = vstv %s3916_s23  ;;  %v485_v47 = vstv %s3925_s26  ;;  %v499_v53 = vstv %s3934_s11  ;;  %s3179_s13 = sld [smem:[#allocation4 + $0xf]]  ;;  %s3180_s21 = sld [smem:[#allocation4 + $0x10]] }
  0x7b   : > { %393 = vrot.lane.b32.xlu1 %v334_v9, %s3607_s27  ;;  %v521_v57 = vstv %s3942_s15  ;;  %v535_v60 = vstv %s3173_s6  ;;  %v549_v0 = vstv %s3174_s24  ;;  %s3181_s23 = sld [smem:[#allocation4 + $0x11]]  ;;  %s3182_s26 = sld [smem:[#allocation4 + $0x12]] }
  0x7c   : > { %v563_v3 = vstv %s3175_s5  ;;  %s3183_s11 = sld [smem:[#allocation4 + $0x13]]  ;;  %s3184_s15 = sld [smem:[#allocation4 + $0x14]] }
  0x7d   : > { %s3186_s6 = sld [smem:[#allocation4 + $0x16]]  ;;  %s3187_s24 = sld [smem:[#allocation4 + $0x17]] }
  0x7e   : > { %408 = vrot.lane.b32.xlu0 %v341_v11, %s3607_s27  ;;  %s3188_s5 = sld [smem:[#allocation4 + $0x18]] }
  0x7f   : > { %410 = vrot.lane.b32.xlu1 %v348_v12, %s3607_s27  ;;  %s3176_s27 = sld [smem:[#allocation4 + $0xc]]  ;;  %v591_v9 = vstv %s3177_s7  ;;  %s3190_s7 = sld [smem:[#allocation4 + $0x1a]] }
  0x85   : > { %v577_v6 = vstv %s3176_s27  ;;  %s3189_s27 = sld [smem:[#allocation4 + $0x19]] }
  0xe3   : > { %v375_v13 = vpop.permute.xlu1 %374 }
  0xe4   : > { %v355_v14 = vpop.permute.xlu0 %354  ;;  %v380_v15 = vsel %vm360_vm2, 0.0, %v375_v13  ;;  %v613_v13 = vstv %s3179_s13  ;;  %s3191_s13 = sld [smem:[#allocation4 + $0x1b]] }
  0xe5   : > { %v361_v16 = vsel %vm360_vm2, 0.0, %v355_v14  ;;  %v382_v17 = vsel %vm363_vm3, %v380_v15, 0.0 }
  0xe6   : > { %v364_v18 = vsel %vm363_vm3, %v361_v16, 0.0  ;;  %384 = vst.msk [vmem:[#allocation2 + $0x1b] sm:$0xff] %vm366_vm4, %v382_v17  ;;  %v627_v16 = vstv %s3180_s21  ;;  %s3193_s21 = sld [smem:[#allocation4 + $0x1d]] }
  0xe7   : > { %367 = vst.msk [vmem:[#allocation2 + $0x3] sm:$0xff] %vm366_vm4, %v364_v18  ;;  %v377_v19 = vpop.permute.xlu1 %376 }
  0xe8   : > { %v357_v20 = vpop.permute.xlu0 %356  ;;  %v381_v21 = vsel %vm360_vm2, 0.0, %v377_v19 }
  0xe9   : > { %v362_v22 = vsel %vm360_vm2, 0.0, %v357_v20  ;;  %v383_v23 = vsel %vm363_vm3, %v381_v21, 0.0  ;;  %v641_v20 = vstv %s3181_s23  ;;  %s3194_s23 = sld [smem:[#allocation4 + $0x1e]] }
  0xea   : > { %v365_v24 = vsel %vm363_vm3, %v362_v22, 0.0  ;;  %385 = vst.msk [vmem:[#allocation2 + $0x23] sm:$0xff] %vm366_vm4, %v383_v23  ;;  %v655_v23 = vstv %s3182_s26  ;;  %s3195_s26 = sld [smem:[#allocation4 + $0x1f]] }
  0xeb   : > { %368 = vst.msk [vmem:[#allocation2 + $0xb] sm:$0xff] %vm366_vm4, %v365_v24 }
  0xec   : > { %v392_v26 = vpop.permute.xlu0 %391 }
  0xed   : > { %v397_v27 = vsel %vm360_vm2, 0.0, %v392_v26  ;;  %v394_v31 = vpop.permute.xlu1 %393  ;;  %v669_v26 = vstv %s3183_s11  ;;  %s4047_s11 = sld [smem:[#allocation4 + $0x8b]] }
  0xee   : > { %v3910_v28 = vld [vmem:[#allocation2] sm:$0xff]  ;;  %v399_v29 = vsel %vm363_vm3, %v397_v27, 0.0  ;;  %v398_v34 = vsel %vm360_vm2, 0.0, %v394_v31 }
  0xef   : > { %v430_v30 = vmul.f32 %v429_v25, %v3910_v28  ;;  %401 = vst.msk [vmem:[#allocation2 + $0x33] sm:$0xff] %vm366_vm4, %v399_v29  ;;  %v444_v35 = vmul.f32 %v443_v32, %v3910_v28  ;;  %v400_v38 = vsel %vm363_vm3, %v398_v34, 0.0  ;;  %v458_v39 = vmul.f32 %v457_v37, %v3910_v28  ;;  %v3958_v56 = vld [vmem:[#allocation2 + $0x1] sm:$0xff] }
  0xf0   : > { %402 = vst.msk [vmem:[#allocation2 + $0x3b] sm:$0xff] %vm366_vm4, %v400_v38  ;;  %v409_v42 = vpop.permute.xlu0 %408  ;;  %v472_v44 = vmul.f32 %v471_v41, %v3910_v28  ;;  %v486_v50 = vmul.f32 %v485_v47, %v3910_v28  ;;  %v500_v54 = vmul.f32 %v499_v53, %v3910_v28  ;;  %v522_v58 = vmul.f32 %v521_v57, %v3958_v56  ;;  %v3987_v12 = vld [vmem:[#allocation2 + $0x2] sm:$0xff] }
  0xf1   : > { %434 = vrot.lane.b32.xlu0 %v430_v30, %s3609_s14  ;;  %v414_v43 = vsel %vm360_vm2, 0.0, %v409_v42  ;;  %v411_v46 = vpop.permute.xlu1 %410  ;;  %v536_v62 = vmul.f32 %v535_v60, %v3958_v56  ;;  %v550_v1 = vmul.f32 %v549_v0, %v3958_v56  ;;  %v564_v4 = vmul.f32 %v563_v3, %v3958_v56  ;;  %v4015_v34 = vld [vmem:[#allocation2 + $0x3] sm:$0xff] }
  0xf2   : > { %v3919_v33 = vld [vmem:[#allocation2 + $0x8] sm:$0xff]  ;;  %v416_v48 = vsel %vm363_vm3, %v414_v43, 0.0  ;;  %v415_v49 = vsel %vm360_vm2, 0.0, %v411_v46  ;;  %v578_v7 = vmul.f32 %v577_v6, %v3958_v56  ;;  %v592_v10 = vmul.f32 %v591_v9, %v3958_v56 }
  0xf3   : > { %v431_v36 = vmul.f32 %v429_v25, %v3919_v33  ;;  %v445_v40 = vmul.f32 %v443_v32, %v3919_v33  ;;  %v459_v45 = vmul.f32 %v457_v37, %v3919_v33  ;;  %418 = vst.msk [vmem:[#allocation2 + $0x4b] sm:$0xff] %vm366_vm4, %v416_v48  ;;  %v473_v51 = vmul.f32 %v471_v41, %v3919_v33  ;;  %v3965_v61 = vld [vmem:[#allocation2 + $0x9] sm:$0xff] }
  0xf4   : > { %v417_v52 = vsel %vm363_vm3, %v415_v49, 0.0  ;;  %v487_v55 = vmul.f32 %v485_v47, %v3919_v33  ;;  %v501_v59 = vmul.f32 %v499_v53, %v3919_v33  ;;  %v523_v63 = vmul.f32 %v521_v57, %v3965_v61  ;;  %v3993_v17 = vld [vmem:[#allocation2 + $0xa] sm:$0xff] }
  0xf5   : > { %448 = vrot.lane.b32.xlu0 %v444_v35, %s3610_s8  ;;  %436 = vrot.lane.b32.xlu1 %v431_v36, %s3609_s14  ;;  %419 = vst.msk [vmem:[#allocation2 + $0x53] sm:$0xff] %vm366_vm4, %v417_v52  ;;  %v537_v2 = vmul.f32 %v535_v60, %v3965_v61  ;;  %v551_v5 = vmul.f32 %v549_v0, %v3965_v61  ;;  %v683_v30 = vstv %s3184_s15  ;;  %v705_v35 = vstv %s3186_s6  ;;  %v4051_v60 = vld [vmem:[#allocation2 + $0xc] sm:$0xff]  ;;  %s3196_s15 = sld [smem:[#allocation4 + $0x20]]  ;;  %s3197_s6 = sld [smem:[#allocation4 + $0x21]] }
  0xf6   : > { %v565_v8 = vmul.f32 %v563_v3, %v3965_v61  ;;  %v579_v11 = vmul.f32 %v577_v6, %v3965_v61  ;;  %v614_v14 = vmul.f32 %v613_v13, %v3987_v12  ;;  %v593_v15 = vmul.f32 %v591_v9, %v3965_v61 }
  0xf7   : > { %v628_v18 = vmul.f32 %v627_v16, %v3987_v12  ;;  %v615_v19 = vmul.f32 %v613_v13, %v3993_v17  ;;  %v642_v21 = vmul.f32 %v641_v20, %v3987_v12  ;;  %v629_v22 = vmul.f32 %v627_v16, %v3993_v17 }
  0xf8   : > { %v656_v24 = vmul.f32 %v655_v23, %v3987_v12  ;;  %v643_v25 = vmul.f32 %v641_v20, %v3993_v17  ;;  %v670_v27 = vmul.f32 %v669_v26, %v3987_v12  ;;  %v657_v29 = vmul.f32 %v655_v23, %v3993_v17 }
  0xf9   : > { %462 = vrot.lane.b32.xlu0 %v458_v39, %s3611_s12  ;;  %450 = vrot.lane.b32.xlu1 %v445_v40, %s3610_s8  ;;  %v684_v31 = vmul.f32 %v683_v30, %v3987_v12  ;;  %v671_v32 = vmul.f32 %v669_v26, %v3993_v17  ;;  %v706_v36 = vmul.f32 %v705_v35, %v4015_v34  ;;  %v719_v38 = vstv %s3187_s24  ;;  %v4021_v39 = vld [vmem:[#allocation2 + $0xb] sm:$0xff]  ;;  %s3198_s24 = sld [smem:[#allocation4 + $0x22]] }
  0xfa   : > { %v685_v37 = vmul.f32 %v683_v30, %v3993_v17  ;;  %v720_v40 = vmul.f32 %v719_v38, %v4015_v34  ;;  %v707_v41 = vmul.f32 %v705_v35, %v4021_v39  ;;  %v733_v42 = vstv %s3188_s5  ;;  %s4070_s5 = sld [smem:[#allocation4 + $0x24]] }
  0xfb   : > { %v734_v43 = vmul.f32 %v733_v42, %v4015_v34  ;;  %v735_v47 = vmul.f32 %v733_v42, %v4021_v39  ;;  %v761_v48 = vstv %s3190_s7  ;;  %v825_v0 = vstv %s3195_s26  ;;  %s4080_s7 = sld [smem:[#allocation4]]  ;;  %s4109_s26 = sld [smem:[#allocation4 + $0x7]] }
  0xfc   : > { %v762_v49 = vmul.f32 %v761_v48, %v4015_v34  ;;  %v763_v53 = vmul.f32 %v761_v48, %v4021_v39  ;;  %v853_v9 = vstv %s3197_s6  ;;  %s4122_s6 = sld [smem:[#allocation4 + $0x2b]] }
  0xfd   : > { %476 = vrot.lane.b32.xlu0 %v472_v44, %s3612_s16  ;;  %464 = vrot.lane.b32.xlu1 %v459_v45, %s3611_s12  ;;  %v721_v44 = vmul.f32 %v719_v38, %v4021_v39  ;;  %v747_v45 = vstv %s3189_s27  ;;  %s4076_s27 = sld [smem:[#allocation4 + $0x25]]  ;;  %v855_v16 = vmul.f32 %v853_v9, %v4051_v60 }
  0xfe   : > { %v748_v46 = vmul.f32 %v747_v45, %v4015_v34 }
  0xff   : > { %v867_v13 = vstv %s3198_s24  ;;  %s4131_s24 = sld [smem:[#allocation4 + $0x2c]] }
 0x100   : > { %v869_v23 = vmul.f32 %v867_v13, %v4051_v60 }
 0x101   : > { %490 = vrot.lane.b32.xlu0 %v486_v50, %s3613_s9  ;;  %478 = vrot.lane.b32.xlu1 %v473_v51, %s3612_s16  ;;  %v749_v50 = vmul.f32 %v747_v45, %v4021_v39  ;;  %v775_v51 = vstv %s3191_s13  ;;  %s4087_s13 = sld [smem:[#allocation4 + $0x26]]  ;;  %v423_v26 = vstv %s4080_s7  ;;  %s4157_s7 = sld [smem:[#allocation4 + $0x2f]] }
 0x102   : > { %v776_v52 = vmul.f32 %v775_v51, %v4015_v34  ;;  %v425_v42 = vmul.f32 %v423_v26, %v3919_v33 }
 0x105   : > { %504 = vrot.lane.b32.xlu0 %v500_v54, %s3614_s30  ;;  %492 = vrot.lane.b32.xlu1 %v487_v55, %s3613_s9  ;;  %v4043_v54 = vld [vmem:[#allocation2 + $0x4] sm:$0xff]  ;;  %v797_v55 = vstv %s3193_s21  ;;  %s4096_s21 = sld [smem:[#allocation4 + $0x27]] }
 0x106   : > { %v798_v57 = vmul.f32 %v797_v55, %v4043_v54  ;;  %v826_v3 = vmul.f32 %v825_v0, %v4043_v54 }
 0x107   : > { %v917_v35 = vstv %s4087_s13  ;;  %s4161_s13 = sld [smem:[#allocation4 + $0xe]] }
 0x109   : > { %526 = vrot.lane.b32.xlu0 %v522_v58, %s3609_s14  ;;  %506 = vrot.lane.b32.xlu1 %v501_v59, %s3614_s30  ;;  %v777_v58 = vmul.f32 %v775_v51, %v4021_v39  ;;  %v811_v59 = vstv %s3194_s23  ;;  %s4105_s23 = sld [smem:[#allocation4 + $0x28]] }
 0x10d   : > { %540 = vrot.lane.b32.xlu0 %v536_v62, %s3610_s8  ;;  %528 = vrot.lane.b32.xlu1 %v523_v63, %s3609_s14  ;;  %v812_v62 = vmul.f32 %v811_v59, %v4043_v54  ;;  %v799_v63 = vmul.f32 %v797_v55, %v4051_v60 }
 0x10f   : > { %v945_v51 = vstv %s4105_s23  ;;  %s4173_s23 = sld [smem:[#allocation4 + $0x32]] }
 0x111   : > { %554 = vrot.lane.b32.xlu0 %v550_v1, %s3611_s12  ;;  %542 = vrot.lane.b32.xlu1 %v537_v2, %s3610_s8  ;;  %v2169_v1 = vld [vmem:[#allocation2 + $0x3d] sm:$0xff]  ;;  %v2247_v2 = vstv %s4047_s11  ;;  %s3315_s11 = sld [smem:[#allocation4 + $0x97]] }
 0x112   : > { %v4066_v6 = vmul.f32 %v2247_v2, %v2169_v1 }
 0x115   : > { %568 = vrot.lane.b32.xlu0 %v564_v4, %s3612_s16  ;;  %556 = vrot.lane.b32.xlu1 %v551_v5, %s3611_s12  ;;  %v813_v4 = vmul.f32 %v811_v59, %v4051_v60  ;;  %v839_v5 = vstv %s3196_s15  ;;  %s4115_s15 = sld [smem:[#allocation4 + $0x29]] }
 0x119   : > { %582 = vrot.lane.b32.xlu0 %v578_v7, %s3613_s9  ;;  %570 = vrot.lane.b32.xlu1 %v565_v8, %s3612_s16  ;;  %v840_v7 = vmul.f32 %v839_v5, %v4043_v54  ;;  %v827_v8 = vmul.f32 %v825_v0, %v4051_v60 }
 0x11d   : > { %596 = vrot.lane.b32.xlu0 %v592_v10, %s3614_s30  ;;  %584 = vrot.lane.b32.xlu1 %v579_v11, %s3613_s9  ;;  %v854_v10 = vmul.f32 %v853_v9, %v4043_v54  ;;  %v841_v11 = vmul.f32 %v839_v5, %v4051_v60 }
 0x121   : > { %618 = vrot.lane.b32.xlu0 %v614_v14, %s3609_s14  ;;  %598 = vrot.lane.b32.xlu1 %v593_v15, %s3614_s30  ;;  %v868_v15 = vmul.f32 %v867_v13, %v4043_v54  ;;  %v4138_v13 = vld [vmem:[#allocation2 + $0x6] sm:$0xff] }
 0x125   : > { %632 = vrot.lane.b32.xlu0 %v628_v18, %s3610_s8  ;;  %620 = vrot.lane.b32.xlu1 %v615_v19, %s3609_s14  ;;  %v4084_v18 = vld [vmem:[#allocation2 + $0x5] sm:$0xff]  ;;  %v889_v19 = vstv %s4070_s5  ;;  %s4141_s5 = sld [smem:[#allocation4 + $0x2d]] }
 0x126   : > { %v946_v59 = vmul.f32 %v945_v51, %v4084_v18 }
 0x129   : > { %646 = vrot.lane.b32.xlu0 %v642_v21, %s3611_s12  ;;  %634 = vrot.lane.b32.xlu1 %v629_v22, %s3610_s8  ;;  %v890_v22 = vmul.f32 %v889_v19, %v4084_v18 }
 0x12d   : > { %660 = vrot.lane.b32.xlu0 %v656_v24, %s3612_s16  ;;  %648 = vrot.lane.b32.xlu1 %v643_v25, %s3611_s12  ;;  %v903_v24 = vstv %s4076_s27  ;;  %v4094_v25 = vld [vmem:[#allocation2 + $0xd] sm:$0xff]  ;;  %s4150_s27 = sld [smem:[#allocation4 + $0x2e]] }
 0x12e   : > { %v904_v30 = vmul.f32 %v903_v24, %v4084_v18 }
 0x131   : > { %674 = vrot.lane.b32.xlu0 %v670_v27, %s3613_s9  ;;  %662 = vrot.lane.b32.xlu1 %v657_v29, %s3612_s16 }
 0x135   : > { %688 = vrot.lane.b32.xlu0 %v684_v31, %s3614_s30  ;;  %676 = vrot.lane.b32.xlu1 %v671_v32, %s3613_s9  ;;  %v891_v31 = vmul.f32 %v889_v19, %v4094_v25  ;;  %v424_v32 = vmul.f32 %v423_v26, %v3910_v28 }
 0x139   : > { %710 = vrot.lane.b32.xlu0 %v706_v36, %s3609_s14  ;;  %690 = vrot.lane.b32.xlu1 %v685_v37, %s3614_s30 }
 0x13d   : > { %724 = vrot.lane.b32.xlu0 %v720_v40, %s3610_s8  ;;  %712 = vrot.lane.b32.xlu1 %v707_v41, %s3609_s14  ;;  %v918_v40 = vmul.f32 %v917_v35, %v4084_v18  ;;  %v905_v41 = vmul.f32 %v903_v24, %v4094_v25 }
 0x141   : > { %738 = vrot.lane.b32.xlu0 %v734_v43, %s3611_s12  ;;  %726 = vrot.lane.b32.xlu1 %v721_v44, %s3610_s8  ;;  %v931_v43 = vstv %s4096_s21  ;;  %s4166_s21 = sld [smem:[#allocation4 + $0x30]] }
 0x142   : > { %v932_v48 = vmul.f32 %v931_v43, %v4084_v18 }
 0x145   : > { %752 = vrot.lane.b32.xlu0 %v748_v46, %s3612_s16  ;;  %740 = vrot.lane.b32.xlu1 %v735_v47, %s3611_s12 }
 0x149   : > { %766 = vrot.lane.b32.xlu0 %v762_v49, %s3613_s9  ;;  %754 = vrot.lane.b32.xlu1 %v749_v50, %s3612_s16  ;;  %v919_v49 = vmul.f32 %v917_v35, %v4094_v25 }
 0x14d   : > { %780 = vrot.lane.b32.xlu0 %v776_v52, %s3614_s30  ;;  %768 = vrot.lane.b32.xlu1 %v763_v53, %s3613_s9  ;;  %v515_v52 = vstv %s4109_s26  ;;  %s4182_s26 = sld [smem:[#allocation4 + $0x33]] }
 0x14e   : > { %v516_v0 = vmul.f32 %v515_v52, %v3958_v56 }
 0x151   : > { %802 = vrot.lane.b32.xlu0 %v798_v57, %s3609_s14  ;;  %782 = vrot.lane.b32.xlu1 %v777_v58, %s3614_s30 }
 0x155   : > { %816 = vrot.lane.b32.xlu0 %v812_v62, %s3610_s8  ;;  %804 = vrot.lane.b32.xlu1 %v799_v63, %s3609_s14  ;;  %v933_v62 = vmul.f32 %v931_v43, %v4094_v25 }
 0x159   : > { %830 = vrot.lane.b32.xlu0 %v826_v3, %s3611_s12  ;;  %818 = vrot.lane.b32.xlu1 %v813_v4, %s3610_s8  ;;  %v959_v3 = vstv %s4115_s15  ;;  %s4192_s15 = sld [smem:[#allocation4 + $0x34]] }
 0x15a   : > { %v960_v9 = vmul.f32 %v959_v3, %v4084_v18 }
 0x15d   : > { %844 = vrot.lane.b32.xlu0 %v840_v7, %s3612_s16  ;;  %832 = vrot.lane.b32.xlu1 %v827_v8, %s3611_s12 }
 0x161   : > { %858 = vrot.lane.b32.xlu0 %v854_v10, %s3613_s9  ;;  %846 = vrot.lane.b32.xlu1 %v841_v11, %s3612_s16  ;;  %v947_v10 = vmul.f32 %v945_v51, %v4094_v25  ;;  %v517_v11 = vmul.f32 %v515_v52, %v3965_v61  ;;  %v4148_v61 = vld [vmem:[#allocation2 + $0xe] sm:$0xff] }
 0x163   : > { %v435_v14 = vpop.permute.xlu0 %434 }
 0x164   : > { %v440_v36 = vadd.f32 %v435_v14, %v424_v32  ;;  %v981_v14 = vstv %s4122_s6  ;;  %s4201_s6 = sld [smem:[#allocation4 + $0x35]] }
 0x165   : > { %872 = vrot.lane.b32.xlu0 %v868_v15, %s3614_s30  ;;  %860 = vrot.lane.b32.xlu1 %v855_v16, %s3613_s9 }
 0x167   : > { %v437_v20 = vpop.permute.xlu1 %436  ;;  %v449_v21 = vpop.permute.xlu0 %448 }
 0x168   : > { %v454_v28 = vadd.f32 %v449_v21, %v440_v36  ;;  %v441_v44 = vadd.f32 %v437_v20, %v425_v42  ;;  %v982_v20 = vmul.f32 %v981_v14, %v4138_v13  ;;  %v961_v21 = vmul.f32 %v959_v3, %v4094_v25 }
 0x169   : > { %894 = vrot.lane.b32.xlu0 %v890_v22, %s3609_s14  ;;  %874 = vrot.lane.b32.xlu1 %v869_v23, %s3614_s30  ;;  %v995_v22 = vstv %s4131_s24  ;;  %s4208_s24 = sld [smem:[#allocation4 + $0x36]] }
 0x16a   : > { %v996_v26 = vmul.f32 %v995_v22, %v4138_v13  ;;  %v997_v36 = vmul.f32 %v995_v22, %v4148_v61  ;;  %v1101_v22 = vstv %s4192_s15  ;;  %s4263_s15 = sld [smem:[#allocation4 + $0x1c]] }
 0x16b   : > { %v451_v27 = vpop.permute.xlu1 %450  ;;  %v463_v29 = vpop.permute.xlu0 %462 }
 0x16c   : > { %v468_v45 = vadd.f32 %v463_v29, %v454_v28  ;;  %v455_v50 = vadd.f32 %v451_v27, %v441_v44  ;;  %v983_v27 = vmul.f32 %v981_v14, %v4148_v61  ;;  %v1009_v29 = vstv %s4141_s5  ;;  %s4212_s5 = sld [smem:[#allocation4 + $0x15]] }
 0x16d   : > { %908 = vrot.lane.b32.xlu0 %v904_v30, %s3610_s8  ;;  %896 = vrot.lane.b32.xlu1 %v891_v31, %s3609_s14  ;;  %v1010_v35 = vmul.f32 %v1009_v29, %v4138_v13  ;;  %v1011_v44 = vmul.f32 %v1009_v29, %v4148_v61 }
 0x16f   : > { %v465_v37 = vpop.permute.xlu1 %464  ;;  %v477_v38 = vpop.permute.xlu0 %476 }
 0x170   : > { %v482_v33 = vadd.f32 %v477_v38, %v468_v45  ;;  %v469_v53 = vadd.f32 %v465_v37, %v455_v50  ;;  %v1023_v38 = vstv %s4150_s27  ;;  %s4217_s27 = sld [smem:[#allocation4 + $0x37]] }
 0x171   : > { %922 = vrot.lane.b32.xlu0 %v918_v40, %s3611_s12  ;;  %910 = vrot.lane.b32.xlu1 %v905_v41, %s3610_s8  ;;  %v1024_v43 = vmul.f32 %v1023_v38, %v4138_v13 }
 0x173   : > { %v479_v46 = vpop.permute.xlu1 %478  ;;  %v491_v47 = vpop.permute.xlu0 %490 }
 0x174   : > { %v496_v55 = vadd.f32 %v491_v47, %v482_v33  ;;  %v483_v63 = vadd.f32 %v479_v46, %v469_v53  ;;  %v1037_v47 = vstv %s4157_s7  ;;  %v1025_v53 = vmul.f32 %v1023_v38, %v4148_v61  ;;  %s4224_s7 = sld [smem:[#allocation4 + $0x39]] }
 0x175   : > { %936 = vrot.lane.b32.xlu0 %v932_v48, %s3612_s16  ;;  %924 = vrot.lane.b32.xlu1 %v919_v49, %s3611_s12  ;;  %v607_v48 = vstv %s4161_s13  ;;  %v1038_v52 = vmul.f32 %v1037_v47, %v4138_v13  ;;  %s4233_s13 = sld [smem:[#allocation4 + $0x3a]] }
 0x177   : > { %v493_v57 = vpop.permute.xlu1 %492  ;;  %v505_v58 = vpop.permute.xlu0 %504 }
 0x178   : > { %v510_v1 = vadd.f32 %v505_v58, %v496_v55  ;;  %v497_v4 = vadd.f32 %v493_v57, %v483_v63  ;;  %v608_v57 = vmul.f32 %v607_v48, %v3987_v12 }
 0x179   : > { %950 = vrot.lane.b32.xlu0 %v946_v59, %s3613_s9  ;;  %938 = vrot.lane.b32.xlu1 %v933_v62, %s3612_s16  ;;  %v1051_v59 = vstv %s4166_s21  ;;  %s4243_s21 = sld [smem:[#allocation4 + $0x3b]] }
 0x17a   : > { %v518_v5 = vadd.f32 %v516_v0, %v510_v1  ;;  %v1052_v3 = vmul.f32 %v1051_v59, %v4138_v13  ;;  %v1053_v14 = vmul.f32 %v1051_v59, %v4148_v61 }
 0x17b   : > { %v507_v7 = vpop.permute.xlu1 %506  ;;  %v527_v8 = vpop.permute.xlu0 %526 }
 0x17c   : > { %v511_v56 = vadd.f32 %v507_v7, %v497_v4  ;;  %v532_v30 = vadd.f32 %v527_v8, %v518_v5  ;;  %v1039_v4 = vmul.f32 %v1037_v47, %v4148_v61  ;;  %v609_v5 = vmul.f32 %v607_v48, %v3993_v17  ;;  %v4189_v7 = vld [vmem:[#allocation2 + $0x18] sm:$0xff]  ;;  %v4199_v17 = vld [vmem:[#allocation2 + $0x20] sm:$0xff] }
 0x17d   : > { %964 = vrot.lane.b32.xlu0 %v960_v9, %s3614_s30  ;;  %952 = vrot.lane.b32.xlu1 %v947_v10, %s3613_s9  ;;  %v1073_v8 = vstv %s4173_s23  ;;  %s4252_s23 = sld [smem:[#allocation4 + $0x3c]] }
 0x17e   : > { %v519_v15 = vadd.f32 %v517_v11, %v511_v56  ;;  %v1074_v56 = vmul.f32 %v1073_v8, %v4189_v7 }
 0x17f   : > { %v529_v16 = vpop.permute.xlu1 %528  ;;  %v541_v19 = vpop.permute.xlu0 %540 }
 0x180   : > { %v546_v37 = vadd.f32 %v541_v19, %v532_v30  ;;  %v533_v40 = vadd.f32 %v529_v16, %v519_v15  ;;  %v1087_v15 = vstv %s4182_s26  ;;  %s4259_s26 = sld [smem:[#allocation4 + $0x3d]] }
 0x181   : > { %986 = vrot.lane.b32.xlu0 %v982_v20, %s3609_s14  ;;  %966 = vrot.lane.b32.xlu1 %v961_v21, %s3614_s30  ;;  %v1088_v20 = vmul.f32 %v1087_v15, %v4189_v7  ;;  %v1075_v21 = vmul.f32 %v1073_v8, %v4199_v17  ;;  %v1089_v29 = vmul.f32 %v1087_v15, %v4199_v17  ;;  %v1193_v15 = vstv %s4243_s21  ;;  %s4314_s21 = sld [smem:[#allocation4 + $0x23]] }
 0x183   : > { %v543_v23 = vpop.permute.xlu1 %542  ;;  %v555_v24 = vpop.permute.xlu0 %554 }
 0x184   : > { %v560_v41 = vadd.f32 %v555_v24, %v546_v37  ;;  %v547_v45 = vadd.f32 %v543_v23, %v533_v40  ;;  %v1103_v40 = vmul.f32 %v1101_v22, %v4199_v17 }
 0x185   : > { %1000 = vrot.lane.b32.xlu0 %v996_v26, %s3610_s8  ;;  %988 = vrot.lane.b32.xlu1 %v983_v27, %s3609_s14  ;;  %v1102_v27 = vmul.f32 %v1101_v22, %v4189_v7 }
 0x187   : > { %v557_v31 = vpop.permute.xlu1 %556  ;;  %v569_v32 = vpop.permute.xlu0 %568 }
 0x188   : > { %v574_v46 = vadd.f32 %v569_v32, %v560_v41  ;;  %v561_v49 = vadd.f32 %v557_v31, %v547_v45  ;;  %v1115_v31 = vstv %s4201_s6  ;;  %s4268_s6 = sld [smem:[#allocation4 + $0x3e]] }
 0x189   : > { %1014 = vrot.lane.b32.xlu0 %v1010_v35, %s3611_s12  ;;  %1002 = vrot.lane.b32.xlu1 %v997_v36, %s3610_s8  ;;  %v1116_v38 = vmul.f32 %v1115_v31, %v4189_v7 }
 0x18b   : > { %v571_v42 = vpop.permute.xlu1 %570  ;;  %v583_v28 = vpop.permute.xlu0 %582 }
 0x18c   : > { %v588_v50 = vadd.f32 %v583_v28, %v574_v46  ;;  %v575_v55 = vadd.f32 %v571_v42, %v561_v49  ;;  %v1129_v28 = vstv %s4208_s24  ;;  %v1117_v49 = vmul.f32 %v1115_v31, %v4199_v17  ;;  %s4275_s24 = sld [smem:[#allocation4 + $0x40]] }
 0x18d   : > { %1028 = vrot.lane.b32.xlu0 %v1024_v43, %s3612_s16  ;;  %1016 = vrot.lane.b32.xlu1 %v1011_v44, %s3611_s12  ;;  %v699_v43 = vstv %s4212_s5  ;;  %v1130_v48 = vmul.f32 %v1129_v28, %v4189_v7  ;;  %v1131_v59 = vmul.f32 %v1129_v28, %v4199_v17  ;;  %s4284_s5 = sld [smem:[#allocation4 + $0x41]] }
 0x18f   : > { %v585_v33 = vpop.permute.xlu1 %584  ;;  %v597_v51 = vpop.permute.xlu0 %596 }
 0x190   : > { %v602_v58 = vadd.f32 %v597_v51, %v588_v50  ;;  %v589_v62 = vadd.f32 %v585_v33, %v575_v55  ;;  %v700_v51 = vmul.f32 %v699_v43, %v4015_v34  ;;  %v4240_v34 = vld [vmem:[#allocation2 + $0x19] sm:$0xff] }
 0x191   : > { %1042 = vrot.lane.b32.xlu0 %v1038_v52, %s3613_s9  ;;  %1030 = vrot.lane.b32.xlu1 %v1025_v53, %s3612_s16  ;;  %v1143_v52 = vstv %s4217_s27  ;;  %v1194_v22 = vmul.f32 %v1193_v15, %v4240_v34  ;;  %s4294_s27 = sld [smem:[#allocation4 + $0x42]] }
 0x192   : > { %v610_v63 = vadd.f32 %v608_v57, %v602_v58 }
 0x193   : > { %v599_v0 = vpop.permute.xlu1 %598  ;;  %v619_v1 = vpop.permute.xlu0 %618 }
 0x194   : > { %v603_v12 = vadd.f32 %v599_v0, %v589_v62  ;;  %v624_v23 = vadd.f32 %v619_v1, %v610_v63  ;;  %v1144_v62 = vmul.f32 %v1143_v52, %v4189_v7  ;;  %v701_v0 = vmul.f32 %v699_v43, %v4021_v39 }
 0x195   : > { %1056 = vrot.lane.b32.xlu0 %v1052_v3, %s3614_s30  ;;  %1044 = vrot.lane.b32.xlu1 %v1039_v4, %s3613_s9  ;;  %v1165_v1 = vstv %s4224_s7  ;;  %v1179_v39 = vstv %s4233_s13  ;;  %s4303_s7 = sld [smem:[#allocation4 + $0x43]]  ;;  %s4310_s13 = sld [smem:[#allocation4 + $0x44]] }
 0x196   : > { %v611_v9 = vadd.f32 %v609_v5, %v603_v12  ;;  %v1145_v12 = vmul.f32 %v1143_v52, %v4199_v17  ;;  %v1166_v8 = vmul.f32 %v1165_v1, %v4240_v34 }
 0x197   : > { %v621_v10 = vpop.permute.xlu1 %620  ;;  %v633_v11 = vpop.permute.xlu0 %632 }
 0x198   : > { %v638_v30 = vadd.f32 %v633_v11, %v624_v23  ;;  %v625_v32 = vadd.f32 %v621_v10, %v611_v9  ;;  %v4249_v9 = vld [vmem:[#allocation2 + $0x21] sm:$0xff] }
 0x199   : > { %1078 = vrot.lane.b32.xlu0 %v1074_v56, %s3609_s14  ;;  %1058 = vrot.lane.b32.xlu1 %v1053_v14, %s3614_s30  ;;  %v1167_v56 = vmul.f32 %v1165_v1, %v4249_v9  ;;  %v1180_v14 = vmul.f32 %v1179_v39, %v4240_v34  ;;  %v1195_v31 = vmul.f32 %v1193_v15, %v4249_v9 }
 0x19b   : > { %v635_v16 = vpop.permute.xlu1 %634  ;;  %v647_v19 = vpop.permute.xlu0 %646 }
 0x19c   : > { %v652_v35 = vadd.f32 %v647_v19, %v638_v30  ;;  %v639_v41 = vadd.f32 %v635_v16, %v625_v32 }
 0x19d   : > { %1092 = vrot.lane.b32.xlu0 %v1088_v20, %s3610_s8  ;;  %1080 = vrot.lane.b32.xlu1 %v1075_v21, %s3609_s14  ;;  %v1181_v21 = vmul.f32 %v1179_v39, %v4249_v9  ;;  %v1285_v39 = vstv %s4294_s27  ;;  %s4365_s27 = sld [smem:[#allocation4 + $0x2a]] }
 0x19f   : > { %v649_v24 = vpop.permute.xlu1 %648  ;;  %v661_v26 = vpop.permute.xlu0 %660 }
 0x1a0   : > { %v666_v42 = vadd.f32 %v661_v26, %v652_v35  ;;  %v653_v44 = vadd.f32 %v649_v24, %v639_v41  ;;  %v1207_v24 = vstv %s4252_s23  ;;  %s4319_s23 = sld [smem:[#allocation4 + $0x45]] }
 0x1a1   : > { %1106 = vrot.lane.b32.xlu0 %v1102_v27, %s3611_s12  ;;  %1094 = vrot.lane.b32.xlu1 %v1089_v29, %s3610_s8  ;;  %v1208_v32 = vmul.f32 %v1207_v24, %v4240_v34  ;;  %v1209_v43 = vmul.f32 %v1207_v24, %v4249_v9 }
 0x1a3   : > { %v663_v36 = vpop.permute.xlu1 %662  ;;  %v675_v37 = vpop.permute.xlu0 %674 }
 0x1a4   : > { %v680_v45 = vadd.f32 %v675_v37, %v666_v42  ;;  %v667_v50 = vadd.f32 %v663_v36, %v653_v44  ;;  %v1221_v37 = vstv %s4259_s26  ;;  %s4326_s26 = sld [smem:[#allocation4 + $0x47]] }
 0x1a5   : > { %1120 = vrot.lane.b32.xlu0 %v1116_v38, %s3612_s16  ;;  %1108 = vrot.lane.b32.xlu1 %v1103_v40, %s3611_s12  ;;  %v791_v38 = vstv %s4263_s15  ;;  %v1222_v44 = vmul.f32 %v1221_v37, %v4240_v34  ;;  %v1223_v52 = vmul.f32 %v1221_v37, %v4249_v9  ;;  %s4335_s15 = sld [smem:[#allocation4 + $0x48]] }
 0x1a7   : > { %v677_v46 = vpop.permute.xlu1 %676  ;;  %v689_v47 = vpop.permute.xlu0 %688 }
 0x1a8   : > { %v694_v33 = vadd.f32 %v689_v47, %v680_v45  ;;  %v681_v53 = vadd.f32 %v677_v46, %v667_v50  ;;  %v792_v47 = vmul.f32 %v791_v38, %v4043_v54  ;;  %v4291_v54 = vld [vmem:[#allocation2 + $0x1a] sm:$0xff] }
 0x1a9   : > { %1134 = vrot.lane.b32.xlu0 %v1130_v48, %s3613_s9  ;;  %1122 = vrot.lane.b32.xlu1 %v1117_v49, %s3612_s16  ;;  %v1235_v48 = vstv %s4268_s6  ;;  %v1286_v15 = vmul.f32 %v1285_v39, %v4291_v54  ;;  %s4345_s6 = sld [smem:[#allocation4 + $0x49]] }
 0x1aa   : > { %v702_v55 = vadd.f32 %v700_v51, %v694_v33 }
 0x1ab   : > { %v691_v57 = vpop.permute.xlu1 %690  ;;  %v711_v58 = vpop.permute.xlu0 %710 }
 0x1ac   : > { %v695_v63 = vadd.f32 %v691_v57, %v681_v53  ;;  %v716_v16 = vadd.f32 %v711_v58, %v702_v55  ;;  %v1236_v53 = vmul.f32 %v1235_v48, %v4240_v34  ;;  %v793_v57 = vmul.f32 %v791_v38, %v4051_v60 }
 0x1ad   : > { %1136 = vrot.lane.b32.xlu1 %v1131_v59, %s3613_s9  ;;  %1148 = vrot.lane.b32.xlu0 %v1144_v62, %s3614_s30  ;;  %v1257_v58 = vstv %s4275_s24  ;;  %v1271_v60 = vstv %s4284_s5  ;;  %s4354_s24 = sld [smem:[#allocation4 + $0x4a]]  ;;  %s4361_s5 = sld [smem:[#allocation4 + $0x4b]] }
 0x1ae   : > { %v703_v3 = vadd.f32 %v701_v0, %v695_v63  ;;  %v1237_v0 = vmul.f32 %v1235_v48, %v4249_v9  ;;  %v1258_v1 = vmul.f32 %v1257_v58, %v4291_v54 }
 0x1af   : > { %v713_v4 = vpop.permute.xlu1 %712  ;;  %v725_v5 = vpop.permute.xlu0 %724 }
 0x1b0   : > { %v730_v23 = vadd.f32 %v725_v5, %v716_v16  ;;  %v717_v26 = vadd.f32 %v713_v4, %v703_v3  ;;  %v4300_v3 = vld [vmem:[#allocation2 + $0x22] sm:$0xff] }
 0x1b1   : > { %1150 = vrot.lane.b32.xlu1 %v1145_v12, %s3614_s30  ;;  %1170 = vrot.lane.b32.xlu0 %v1166_v8, %s3609_s14  ;;  %v1259_v12 = vmul.f32 %v1257_v58, %v4300_v3  ;;  %v1272_v8 = vmul.f32 %v1271_v60, %v4291_v54  ;;  %v1287_v24 = vmul.f32 %v1285_v39, %v4300_v3 }
 0x1b3   : > { %v727_v10 = vpop.permute.xlu1 %726  ;;  %v739_v11 = vpop.permute.xlu0 %738 }
 0x1b4   : > { %v744_v27 = vadd.f32 %v739_v11, %v730_v23  ;;  %v731_v35 = vadd.f32 %v727_v10, %v717_v26 }
 0x1b5   : > { %1172 = vrot.lane.b32.xlu1 %v1167_v56, %s3609_s14  ;;  %1184 = vrot.lane.b32.xlu0 %v1180_v14, %s3610_s8  ;;  %v1273_v14 = vmul.f32 %v1271_v60, %v4300_v3  ;;  %v1377_v60 = vstv %s4345_s6  ;;  %s4432_s6 = sld [smem:[#allocation4 + $0x53]] }
 0x1b7   : > { %v741_v19 = vpop.permute.xlu1 %740  ;;  %v753_v20 = vpop.permute.xlu0 %752 }
 0x1b8   : > { %v758_v36 = vadd.f32 %v753_v20, %v744_v27  ;;  %v745_v40 = vadd.f32 %v741_v19, %v731_v35  ;;  %v1299_v19 = vstv %s4303_s7  ;;  %s4370_s7 = sld [smem:[#allocation4 + $0x4c]] }
 0x1b9   : > { %1186 = vrot.lane.b32.xlu1 %v1181_v21, %s3610_s8  ;;  %1198 = vrot.lane.b32.xlu0 %v1194_v22, %s3611_s12  ;;  %v1300_v26 = vmul.f32 %v1299_v19, %v4291_v54  ;;  %v1301_v38 = vmul.f32 %v1299_v19, %v4300_v3 }
 0x1bb   : > { %v755_v29 = vpop.permute.xlu1 %754  ;;  %v767_v30 = vpop.permute.xlu0 %766 }
 0x1bc   : > { %v772_v41 = vadd.f32 %v767_v30, %v758_v36  ;;  %v759_v45 = vadd.f32 %v755_v29, %v745_v40  ;;  %v1313_v30 = vstv %s4310_s13  ;;  %s4377_s13 = sld [smem:[#allocation4 + $0x4e]] }
 0x1bd   : > { %1200 = vrot.lane.b32.xlu1 %v1195_v31, %s3611_s12  ;;  %1212 = vrot.lane.b32.xlu0 %v1208_v32, %s3612_s16  ;;  %v883_v31 = vstv %s4314_s21  ;;  %v1314_v40 = vmul.f32 %v1313_v30, %v4291_v54  ;;  %v1315_v48 = vmul.f32 %v1313_v30, %v4300_v3  ;;  %s4386_s21 = sld [smem:[#allocation4 + $0x4f]] }
 0x1bf   : > { %v769_v42 = vpop.permute.xlu1 %768  ;;  %v781_v28 = vpop.permute.xlu0 %780 }
 0x1c0   : > { %v786_v46 = vadd.f32 %v781_v28, %v772_v41  ;;  %v773_v49 = vadd.f32 %v769_v42, %v759_v45  ;;  %v884_v28 = vmul.f32 %v883_v31, %v4084_v18  ;;  %v4342_v18 = vld [vmem:[#allocation2 + $0x1b] sm:$0xff] }
 0x1c1   : > { %1214 = vrot.lane.b32.xlu1 %v1209_v43, %s3612_s16  ;;  %1226 = vrot.lane.b32.xlu0 %v1222_v44, %s3613_s9  ;;  %v1327_v43 = vstv %s4319_s23  ;;  %v1378_v39 = vmul.f32 %v1377_v60, %v4342_v18  ;;  %s4400_s23 = sld [smem:[#allocation4 + $0x50]] }
 0x1c2   : > { %v794_v50 = vadd.f32 %v792_v47, %v786_v46 }
 0x1c3   : > { %v783_v33 = vpop.permute.xlu1 %782  ;;  %v803_v51 = vpop.permute.xlu0 %802 }
 0x1c4   : > { %v787_v55 = vadd.f32 %v783_v33, %v773_v49  ;;  %v808_v10 = vadd.f32 %v803_v51, %v794_v50  ;;  %v1328_v49 = vmul.f32 %v1327_v43, %v4291_v54  ;;  %v885_v33 = vmul.f32 %v883_v31, %v4094_v25 }
 0x1c5   : > { %1228 = vrot.lane.b32.xlu1 %v1223_v52, %s3613_s9  ;;  %1240 = vrot.lane.b32.xlu0 %v1236_v53, %s3614_s30  ;;  %v1349_v51 = vstv %s4326_s26  ;;  %v1363_v25 = vstv %s4335_s15  ;;  %s3245_s26 = sld [smem:[#allocation4 + $0x51]]  ;;  %s3246_s15 = sld [smem:[#allocation4 + $0x52]] }
 0x1c6   : > { %v795_v59 = vadd.f32 %v793_v57, %v787_v55  ;;  %v1329_v57 = vmul.f32 %v1327_v43, %v4300_v3  ;;  %v1350_v58 = vmul.f32 %v1349_v51, %v4342_v18 }
 0x1c7   : > { %v805_v62 = vpop.permute.xlu1 %804  ;;  %v817_v63 = vpop.permute.xlu0 %816 }
 0x1c8   : > { %v822_v16 = vadd.f32 %v817_v63, %v808_v10  ;;  %v809_v20 = vadd.f32 %v805_v62, %v795_v59  ;;  %v4351_v59 = vld [vmem:[#allocation2 + $0x23] sm:$0xff] }
 0x1c9   : > { %1242 = vrot.lane.b32.xlu1 %v1237_v0, %s3614_s30  ;;  %1262 = vrot.lane.b32.xlu0 %v1258_v1, %s3609_s14  ;;  %v1351_v0 = vmul.f32 %v1349_v51, %v4351_v59  ;;  %v1364_v1 = vmul.f32 %v1363_v25, %v4342_v18  ;;  %v1379_v19 = vmul.f32 %v1377_v60, %v4351_v59  ;;  %v4412_v51 = vld [vmem:[#allocation2 + $0x24] sm:$0xff] }
 0x1cb   : > { %v819_v4 = vpop.permute.xlu1 %818  ;;  %v831_v5 = vpop.permute.xlu0 %830  ;;  %v1483_v60 = vstv %s3245_s26  ;;  %s4494_s26 = sld [smem:[#allocation4 + $0x5a]] }
 0x1cc   : > { %v836_v21 = vadd.f32 %v831_v5, %v822_v16  ;;  %v823_v27 = vadd.f32 %v819_v4, %v809_v20 }
 0x1cd   : > { %1264 = vrot.lane.b32.xlu1 %v1259_v12, %s3609_s14  ;;  %1276 = vrot.lane.b32.xlu0 %v1272_v8, %s3610_s8  ;;  %v1365_v8 = vmul.f32 %v1363_v25, %v4351_v59  ;;  %v1469_v25 = vstv %s4400_s23  ;;  %s4488_s23 = sld [smem:[#allocation4 + $0x38]] }
 0x1cf   : > { %v833_v11 = vpop.permute.xlu1 %832  ;;  %v845_v56 = vpop.permute.xlu0 %844 }
 0x1d0   : > { %v850_v29 = vadd.f32 %v845_v56, %v836_v21  ;;  %v837_v32 = vadd.f32 %v833_v11, %v823_v27  ;;  %v1391_v11 = vstv %s4354_s24  ;;  %s4442_s24 = sld [smem:[#allocation4 + $0x55]] }
 0x1d1   : > { %1278 = vrot.lane.b32.xlu1 %v1273_v14, %s3610_s8  ;;  %1290 = vrot.lane.b32.xlu0 %v1286_v15, %s3611_s12  ;;  %v1392_v20 = vmul.f32 %v1391_v11, %v4342_v18  ;;  %v1393_v31 = vmul.f32 %v1391_v11, %v4351_v59 }
 0x1d3   : > { %v847_v22 = vpop.permute.xlu1 %846  ;;  %v859_v23 = vpop.permute.xlu0 %858 }
 0x1d4   : > { %v864_v35 = vadd.f32 %v859_v23, %v850_v29  ;;  %v851_v41 = vadd.f32 %v847_v22, %v837_v32  ;;  %v1405_v23 = vstv %s4361_s5  ;;  %s4453_s5 = sld [smem:[#allocation4 + $0x56]] }
 0x1d5   : > { %1292 = vrot.lane.b32.xlu1 %v1287_v24, %s3611_s12  ;;  %1304 = vrot.lane.b32.xlu0 %v1300_v26, %s3612_s16  ;;  %v975_v24 = vstv %s4365_s27  ;;  %v1406_v32 = vmul.f32 %v1405_v23, %v4342_v18  ;;  %v1407_v43 = vmul.f32 %v1405_v23, %v4351_v59  ;;  %s4457_s27 = sld [smem:[#allocation4 + $0x31]] }
 0x1d6   : > { %v1533_v23 = vstv %s4442_s24  ;;  %s4520_s24 = sld [smem:[#allocation4 + $0x5e]] }
 0x1d7   : > { %v861_v36 = vpop.permute.xlu1 %860  ;;  %v873_v37 = vpop.permute.xlu0 %872 }
 0x1d8   : > { %v878_v42 = vadd.f32 %v873_v37, %v864_v35  ;;  %v865_v44 = vadd.f32 %v861_v36, %v851_v41  ;;  %v976_v37 = vmul.f32 %v975_v24, %v4138_v13  ;;  %v977_v13 = vmul.f32 %v975_v24, %v4148_v61 }
 0x1d9   : > { %1306 = vrot.lane.b32.xlu1 %v1301_v38, %s3612_s16  ;;  %1318 = vrot.lane.b32.xlu0 %v1314_v40, %s3613_s9  ;;  %v1419_v38 = vstv %s4370_s7  ;;  %s4466_s7 = sld [smem:[#allocation4 + $0x57]] }
 0x1da   : > { %v886_v45 = vadd.f32 %v884_v28, %v878_v42 }
 0x1db   : > { %v875_v46 = vpop.permute.xlu1 %874  ;;  %v895_v47 = vpop.permute.xlu0 %894 }
 0x1dc   : > { %v879_v50 = vadd.f32 %v875_v46, %v865_v44  ;;  %v900_v4 = vadd.f32 %v895_v47, %v886_v45  ;;  %v1420_v44 = vmul.f32 %v1419_v38, %v4342_v18  ;;  %v4397_v46 = vld [vmem:[#allocation2 + $0x1c] sm:$0xff]  ;;  %v1441_v47 = vstv %s4377_s13  ;;  %s4475_s13 = sld [smem:[#allocation4 + $0x58]] }
 0x1dd   : > { %1320 = vrot.lane.b32.xlu1 %v1315_v48, %s3613_s9  ;;  %1332 = vrot.lane.b32.xlu0 %v1328_v49, %s3614_s30  ;;  %v1442_v61 = vmul.f32 %v1441_v47, %v4397_v46 }
 0x1de   : > { %v887_v52 = vadd.f32 %v885_v33, %v879_v50  ;;  %v1421_v33 = vmul.f32 %v1419_v38, %v4351_v59 }
 0x1df   : > { %v897_v53 = vpop.permute.xlu1 %896  ;;  %v909_v55 = vpop.permute.xlu0 %908 }
 0x1e0   : > { %v914_v10 = vadd.f32 %v909_v55, %v900_v4  ;;  %v901_v56 = vadd.f32 %v897_v53, %v887_v52  ;;  %v1455_v52 = vstv %s4386_s21  ;;  %s4484_s21 = sld [smem:[#allocation4 + $0x59]] }
 0x1e1   : > { %1334 = vrot.lane.b32.xlu1 %v1329_v57, %s3614_s30  ;;  %1354 = vrot.lane.b32.xlu0 %v1350_v58, %s3609_s14  ;;  %v1443_v57 = vmul.f32 %v1441_v47, %v4412_v51  ;;  %v1456_v58 = vmul.f32 %v1455_v52, %v4397_v46 }
 0x1e3   : > { %v911_v62 = vpop.permute.xlu1 %910  ;;  %v923_v63 = vpop.permute.xlu0 %922 }
 0x1e4   : > { %v928_v14 = vadd.f32 %v923_v63, %v914_v10  ;;  %v915_v21 = vadd.f32 %v911_v62, %v901_v56  ;;  %v1485_v56 = vmul.f32 %v1483_v60, %v4412_v51 }
 0x1e5   : > { %1356 = vrot.lane.b32.xlu1 %v1351_v0, %s3609_s14  ;;  %1368 = vrot.lane.b32.xlu0 %v1364_v1, %s3610_s8  ;;  %v1457_v0 = vmul.f32 %v1455_v52, %v4412_v51  ;;  %v1470_v1 = vmul.f32 %v1469_v25, %v4397_v46 }
 0x1e7   : > { %v925_v5 = vpop.permute.xlu1 %924  ;;  %v937_v12 = vpop.permute.xlu0 %936 }
 0x1e8   : > { %v942_v22 = vadd.f32 %v937_v12, %v928_v14  ;;  %v929_v26 = vadd.f32 %v925_v5, %v915_v21  ;;  %v1471_v12 = vmul.f32 %v1469_v25, %v4412_v51 }
 0x1e9   : > { %1370 = vrot.lane.b32.xlu1 %v1365_v8, %s3610_s8  ;;  %1382 = vrot.lane.b32.xlu0 %v1378_v39, %s3611_s12  ;;  %v1484_v8 = vmul.f32 %v1483_v60, %v4397_v46  ;;  %v1497_v39 = vstv %s3246_s15  ;;  %s4501_s15 = sld [smem:[#allocation4 + $0x5c]] }
 0x1ea   : > { %v1498_v14 = vmul.f32 %v1497_v39, %v4397_v46 }
 0x1eb   : > { %v939_v15 = vpop.permute.xlu1 %938  ;;  %v951_v16 = vpop.permute.xlu0 %950 }
 0x1ec   : > { %v956_v27 = vadd.f32 %v951_v16, %v942_v22  ;;  %v943_v35 = vadd.f32 %v939_v15, %v929_v26  ;;  %v1511_v15 = vstv %s4432_s6  ;;  %v4463_v22 = vld [vmem:[#allocation2 + $0x1d] sm:$0xff]  ;;  %s4510_s6 = sld [smem:[#allocation4 + $0x5d]] }
 0x1ed   : > { %1384 = vrot.lane.b32.xlu1 %v1379_v19, %s3611_s12  ;;  %1396 = vrot.lane.b32.xlu0 %v1392_v20, %s3612_s16  ;;  %v1499_v20 = vmul.f32 %v1497_v39, %v4412_v51  ;;  %v1512_v21 = vmul.f32 %v1511_v15, %v4397_v46 }
 0x1ef   : > { %v953_v29 = vpop.permute.xlu1 %952  ;;  %v965_v30 = vpop.permute.xlu0 %964 }
 0x1f0   : > { %v970_v36 = vadd.f32 %v965_v30, %v956_v27  ;;  %v957_v40 = vadd.f32 %v953_v29, %v943_v35  ;;  %v1513_v27 = vmul.f32 %v1511_v15, %v4412_v51  ;;  %v1534_v29 = vmul.f32 %v1533_v23, %v4463_v22  ;;  %v4472_v30 = vld [vmem:[#allocation2 + $0x25] sm:$0xff] }
 0x1f1   : > { %1398 = vrot.lane.b32.xlu1 %v1393_v31, %s3612_s16  ;;  %1410 = vrot.lane.b32.xlu0 %v1406_v32, %s3613_s9  ;;  %v1547_v31 = vstv %s4453_s5  ;;  %v1067_v32 = vstv %s4457_s27  ;;  %s4529_s5 = sld [smem:[#allocation4 + $0x5f]]  ;;  %s4536_s27 = sld [smem:[#allocation4 + $0x60]] }
 0x1f2   : > { %v4390_v41 = vadd.f32 %v976_v37, %v970_v36  ;;  %v1535_v37 = vmul.f32 %v1533_v23, %v4472_v30  ;;  %v1548_v38 = vmul.f32 %v1547_v31, %v4463_v22 }
 0x1f3   : > { %v967_v42 = vpop.permute.xlu1 %966  ;;  %v4392_v28 = vpop.permute.xlu0 %986 }
 0x1f4   : > { %v971_v45 = vadd.f32 %v967_v42, %v957_v40  ;;  %v1068_v40 = vmul.f32 %v1067_v32, %v4189_v7  ;;  %v1561_v42 = vstv %s4466_s7  ;;  %s4540_s7 = sld [smem:[#allocation4 + $0x3f]] }
 0x1f5   : > { %1412 = vrot.lane.b32.xlu1 %v1407_v43, %s3613_s9  ;;  %1424 = vrot.lane.b32.xlu0 %v1420_v44, %s3614_s30  ;;  %v1562_v47 = vmul.f32 %v1561_v42, %v4463_v22 }
 0x1f6   : > { %v4404_v48 = vadd.f32 %v977_v13, %v971_v45  ;;  %v1549_v13 = vmul.f32 %v1547_v31, %v4472_v30 }
 0x1f7   : > { %v4406_v49 = vpop.permute.xlu1 %988  ;;  %v4408_v50 = vpop.permute.xlu0 %1000 }
 0x1f9   : > { %1426 = vrot.lane.b32.xlu1 %v1421_v33, %s3614_s30  ;;  %1446 = vrot.lane.b32.xlu0 %v1442_v61, %s3609_s14  ;;  %v1069_v33 = vmul.f32 %v1067_v32, %v4199_v17  ;;  %v1575_v61 = vstv %s4475_s13  ;;  %s4545_s13 = sld [smem:[#allocation4 + $0x61]] }
 0x1fb   : > { %v4417_v53 = vpop.permute.xlu1 %1002  ;;  %v4419_v55 = vpop.permute.xlu0 %1014 }
 0x1fd   : > { %1448 = vrot.lane.b32.xlu1 %v1443_v57, %s3609_s14  ;;  %1460 = vrot.lane.b32.xlu0 %v1456_v58, %s3610_s8 }
 0x1ff   : > { %v4426_v62 = vpop.permute.xlu1 %1016  ;;  %v4428_v63 = vpop.permute.xlu0 %1028 }
 0x201   : > { %1462 = vrot.lane.b32.xlu1 %v1457_v0, %s3610_s8  ;;  %1474 = vrot.lane.b32.xlu0 %v1470_v1, %s3611_s12  ;;  %v1563_v0 = vmul.f32 %v1561_v42, %v4472_v30  ;;  %v1576_v1 = vmul.f32 %v1575_v61, %v4463_v22 }
 0x203   : > { %v4436_v4 = vpop.permute.xlu1 %1030  ;;  %v4438_v5 = vpop.permute.xlu0 %1042 }
 0x205   : > { %1476 = vrot.lane.b32.xlu1 %v1471_v12, %s3611_s12  ;;  %1488 = vrot.lane.b32.xlu0 %v1484_v8, %s3612_s16  ;;  %v1589_v12 = vstv %s4484_s21  ;;  %v1159_v8 = vstv %s4488_s23  ;;  %s4552_s21 = sld [smem:[#allocation4 + $0x63]]  ;;  %s4561_s23 = sld [smem:[#allocation4 + $0x64]] }
 0x206   : > { %v1160_v23 = vmul.f32 %v1159_v8, %v4240_v34 }
 0x207   : > { %v4446_v10 = vpop.permute.xlu1 %1044  ;;  %v4448_v11 = vpop.permute.xlu0 %1056 }
 0x209   : > { %1490 = vrot.lane.b32.xlu1 %v1485_v56, %s3612_s16  ;;  %1502 = vrot.lane.b32.xlu0 %v1498_v14, %s3613_s9 }
 0x20b   : > { %v4459_v16 = vpop.permute.xlu1 %1058  ;;  %v1079_v19 = vpop.permute.xlu0 %1078 }
 0x20c   : > { %v1084_v43 = vadd.f32 %v1079_v19, %v1068_v40  ;;  %v1577_v19 = vmul.f32 %v1575_v61, %v4472_v30  ;;  %v1625_v40 = vstv %s4501_s15  ;;  %s4580_s15 = sld [smem:[#allocation4 + $0x66]] }
 0x20d   : > { %1504 = vrot.lane.b32.xlu1 %v1499_v20, %s3613_s9  ;;  %1516 = vrot.lane.b32.xlu0 %v1512_v21, %s3614_s30  ;;  %v1590_v20 = vmul.f32 %v1589_v12, %v4463_v22 }
 0x20f   : > { %v1081_v24 = vpop.permute.xlu1 %1080  ;;  %v1093_v26 = vpop.permute.xlu0 %1092 }
 0x210   : > { %v1098_v7 = vadd.f32 %v1093_v26, %v1084_v43  ;;  %v1085_v52 = vadd.f32 %v1081_v24, %v1069_v33  ;;  %v1603_v26 = vstv %s4494_s26  ;;  %s4571_s26 = sld [smem:[#allocation4 + $0x65]] }
 0x211   : > { %1518 = vrot.lane.b32.xlu1 %v1513_v27, %s3614_s30  ;;  %1538 = vrot.lane.b32.xlu0 %v1534_v29, %s3609_s14 }
 0x213   : > { %v1095_v35 = vpop.permute.xlu1 %1094  ;;  %v1107_v36 = vpop.permute.xlu0 %1106 }
 0x214   : > { %v1112_v57 = vadd.f32 %v1107_v36, %v1098_v7  ;;  %v1099_v60 = vadd.f32 %v1095_v35, %v1085_v52  ;;  %v1591_v35 = vmul.f32 %v1589_v12, %v4472_v30  ;;  %v1604_v36 = vmul.f32 %v1603_v26, %v4463_v22 }
 0x215   : > { %1540 = vrot.lane.b32.xlu1 %v1535_v37, %s3609_s14  ;;  %1552 = vrot.lane.b32.xlu0 %v1548_v38, %s3610_s8  ;;  %v1161_v37 = vmul.f32 %v1159_v8, %v4249_v9  ;;  %v4517_v38 = vld [vmem:[#allocation2 + $0x1e] sm:$0xff]  ;;  %v1639_v9 = vstv %s4510_s6  ;;  %v1667_v12 = vstv %s4529_s5  ;;  %s4587_s6 = sld [smem:[#allocation4 + $0x67]]  ;;  %s4596_s5 = sld [smem:[#allocation4 + $0x68]] }
 0x216   : > { %v1640_v52 = vmul.f32 %v1639_v9, %v4517_v38 }
 0x217   : > { %v1109_v44 = vpop.permute.xlu1 %1108  ;;  %v1121_v45 = vpop.permute.xlu0 %1120 }
 0x218   : > { %v1126_v17 = vadd.f32 %v1121_v45, %v1112_v57  ;;  %v1113_v39 = vadd.f32 %v1109_v44, %v1099_v60  ;;  %v1605_v45 = vmul.f32 %v1603_v26, %v4472_v30  ;;  %v1653_v57 = vstv %s4520_s24  ;;  %s4591_s24 = sld [smem:[#allocation4 + $0x46]] }
 0x219   : > { %1554 = vrot.lane.b32.xlu1 %v1549_v13, %s3610_s8  ;;  %1566 = vrot.lane.b32.xlu0 %v1562_v47, %s3611_s12  ;;  %v1626_v13 = vmul.f32 %v1625_v40, %v4517_v38  ;;  %v4526_v47 = vld [vmem:[#allocation2 + $0x26] sm:$0xff]  ;;  %v1654_v60 = vmul.f32 %v1653_v57, %v4517_v38 }
 0x21a   : > { %v1627_v61 = vmul.f32 %v1625_v40, %v4526_v47  ;;  %v1695_v40 = vstv %s4545_s13  ;;  %s4622_s13 = sld [smem:[#allocation4 + $0x6c]] }
 0x21b   : > { %v1123_v58 = vpop.permute.xlu1 %1122  ;;  %v1135_v25 = vpop.permute.xlu0 %1134 }
 0x21c   : > { %v1140_v56 = vadd.f32 %v1135_v25, %v1126_v17  ;;  %v1127_v21 = vadd.f32 %v1123_v58, %v1113_v39 }
 0x21d   : > { %1568 = vrot.lane.b32.xlu1 %v1563_v0, %s3611_s12  ;;  %1580 = vrot.lane.b32.xlu0 %v1576_v1, %s3612_s16  ;;  %v1641_v1 = vmul.f32 %v1639_v9, %v4526_v47  ;;  %v1696_v9 = vmul.f32 %v1695_v40, %v4517_v38 }
 0x21f   : > { %v1137_v14 = vpop.permute.xlu1 %1136  ;;  %v1149_v15 = vpop.permute.xlu0 %1148 }
 0x220   : > { %v1154_v24 = vadd.f32 %v1149_v15, %v1140_v56  ;;  %v1141_v27 = vadd.f32 %v1137_v14, %v1127_v21  ;;  %v1655_v15 = vmul.f32 %v1653_v57, %v4526_v47 }
 0x221   : > { %1582 = vrot.lane.b32.xlu1 %v1577_v19, %s3612_s16  ;;  %1594 = vrot.lane.b32.xlu0 %v1590_v20, %s3613_s9  ;;  %v1668_v19 = vmul.f32 %v1667_v12, %v4517_v38 }
 0x222   : > { %v1162_v29 = vadd.f32 %v1160_v23, %v1154_v24  ;;  %v1681_v23 = vstv %s4536_s27  ;;  %v1251_v24 = vstv %s4540_s7  ;;  %s4603_s27 = sld [smem:[#allocation4 + $0x6a]]  ;;  %s4612_s7 = sld [smem:[#allocation4 + $0x6b]] }
 0x223   : > { %v1151_v31 = vpop.permute.xlu1 %1150  ;;  %v1171_v32 = vpop.permute.xlu0 %1170 }
 0x224   : > { %v1155_v34 = vadd.f32 %v1151_v31, %v1141_v27  ;;  %v1176_v58 = vadd.f32 %v1171_v32, %v1162_v29  ;;  %v1669_v32 = vmul.f32 %v1667_v12, %v4526_v47 }
 0x225   : > { %1596 = vrot.lane.b32.xlu1 %v1591_v35, %s3613_s9  ;;  %1608 = vrot.lane.b32.xlu0 %v1604_v36, %s3614_s30  ;;  %v1682_v35 = vmul.f32 %v1681_v23, %v4517_v38 }
 0x226   : > { %v1163_v42 = vadd.f32 %v1161_v37, %v1155_v34  ;;  %v1252_v37 = vmul.f32 %v1251_v24, %v4291_v54 }
 0x227   : > { %v1173_v43 = vpop.permute.xlu1 %1172  ;;  %v1185_v44 = vpop.permute.xlu0 %1184 }
 0x228   : > { %v1190_v17 = vadd.f32 %v1185_v44, %v1176_v58  ;;  %v1177_v8 = vadd.f32 %v1173_v43, %v1163_v42 }
 0x229   : > { %1610 = vrot.lane.b32.xlu1 %v1605_v45, %s3614_s30  ;;  %1630 = vrot.lane.b32.xlu0 %v1626_v13, %s3609_s14  ;;  %v1683_v13 = vmul.f32 %v1681_v23, %v4526_v47  ;;  %v1759_v23 = vstv %s4580_s15  ;;  %s4647_s15 = sld [smem:[#allocation4 + $0x6f]] }
 0x22b   : > { %v1187_v33 = vpop.permute.xlu1 %1186  ;;  %v1199_v7 = vpop.permute.xlu0 %1198 }
 0x22c   : > { %v1204_v39 = vadd.f32 %v1199_v7, %v1190_v17  ;;  %v1191_v20 = vadd.f32 %v1187_v33, %v1177_v8  ;;  %v1253_v33 = vmul.f32 %v1251_v24, %v4300_v3  ;;  %v4568_v7 = vld [vmem:[#allocation2 + $0x30] sm:$0xff]  ;;  %v1731_v3 = vstv %s4561_s23  ;;  %s4638_s23 = sld [smem:[#allocation4 + $0x6e]] }
 0x22d   : > { %1632 = vrot.lane.b32.xlu1 %v1627_v61, %s3609_s14  ;;  %1644 = vrot.lane.b32.xlu0 %v1640_v52, %s3610_s8  ;;  %v1717_v61 = vstv %s4552_s21  ;;  %v1732_v8 = vmul.f32 %v1731_v3, %v4568_v7  ;;  %s4631_s21 = sld [smem:[#allocation4 + $0x6d]] }
 0x22f   : > { %v1201_v25 = vpop.permute.xlu1 %1200  ;;  %v1213_v0 = vpop.permute.xlu0 %1212 }
 0x230   : > { %v1218_v21 = vadd.f32 %v1213_v0, %v1204_v39  ;;  %v1205_v26 = vadd.f32 %v1201_v25, %v1191_v20  ;;  %v1697_v25 = vmul.f32 %v1695_v40, %v4526_v47  ;;  %v1718_v0 = vmul.f32 %v1717_v61, %v4568_v7 }
 0x231   : > { %1646 = vrot.lane.b32.xlu1 %v1641_v1, %s3610_s8  ;;  %1658 = vrot.lane.b32.xlu0 %v1654_v60, %s3611_s12  ;;  %v4577_v1 = vld [vmem:[#allocation2 + $0x38] sm:$0xff]  ;;  %v1745_v39 = vstv %s4571_s26  ;;  %s4642_s26 = sld [smem:[#allocation4 + $0x4d]] }
 0x232   : > { %v1719_v12 = vmul.f32 %v1717_v61, %v4577_v1  ;;  %v1746_v20 = vmul.f32 %v1745_v39, %v4568_v7  ;;  %v1787_v61 = vstv %s4596_s5  ;;  %s4673_s5 = sld [smem:[#allocation4 + $0x73]] }
 0x233   : > { %v1215_v56 = vpop.permute.xlu1 %1214  ;;  %v1227_v14 = vpop.permute.xlu0 %1226 }
 0x234   : > { %v1232_v27 = vadd.f32 %v1227_v14, %v1218_v21  ;;  %v1219_v36 = vadd.f32 %v1215_v56, %v1205_v26 }
 0x235   : > { %1660 = vrot.lane.b32.xlu1 %v1655_v15, %s3611_s12  ;;  %1672 = vrot.lane.b32.xlu0 %v1668_v19, %s3612_s16  ;;  %v1733_v19 = vmul.f32 %v1731_v3, %v4577_v1  ;;  %v1788_v3 = vmul.f32 %v1787_v61, %v4568_v7 }
 0x237   : > { %v1229_v29 = vpop.permute.xlu1 %1228  ;;  %v1241_v31 = vpop.permute.xlu0 %1240 }
 0x238   : > { %v1246_v34 = vadd.f32 %v1241_v31, %v1232_v27  ;;  %v1233_v42 = vadd.f32 %v1229_v29, %v1219_v36  ;;  %v1747_v31 = vmul.f32 %v1745_v39, %v4577_v1 }
 0x239   : > { %1674 = vrot.lane.b32.xlu1 %v1669_v32, %s3612_s16  ;;  %1686 = vrot.lane.b32.xlu0 %v1682_v35, %s3613_s9  ;;  %v1760_v32 = vmul.f32 %v1759_v23, %v4568_v7 }
 0x23a   : > { %v1254_v43 = vadd.f32 %v1252_v37, %v1246_v34  ;;  %v1773_v37 = vstv %s4587_s6  ;;  %v1343_v34 = vstv %s4591_s24  ;;  %s4654_s6 = sld [smem:[#allocation4 + $0x71]]  ;;  %s4663_s24 = sld [smem:[#allocation4 + $0x72]] }
 0x23b   : > { %v1243_v44 = vpop.permute.xlu1 %1242  ;;  %v1263_v45 = vpop.permute.xlu0 %1262 }
 0x23c   : > { %v1247_v54 = vadd.f32 %v1243_v44, %v1233_v42  ;;  %v1268_v56 = vadd.f32 %v1263_v45, %v1254_v43  ;;  %v1761_v45 = vmul.f32 %v1759_v23, %v4577_v1 }
 0x23d   : > { %1688 = vrot.lane.b32.xlu1 %v1683_v13, %s3613_s9  ;;  %1700 = vrot.lane.b32.xlu0 %v1696_v9, %s3614_s30  ;;  %v1774_v13 = vmul.f32 %v1773_v37, %v4568_v7 }
 0x23e   : > { %v1255_v52 = vadd.f32 %v1253_v33, %v1247_v54  ;;  %v1344_v54 = vmul.f32 %v1343_v34, %v4342_v18  ;;  %v4619_v18 = vld [vmem:[#allocation2 + $0x31] sm:$0xff] }
 0x23f   : > { %v1265_v57 = vpop.permute.xlu1 %1264  ;;  %v1277_v58 = vpop.permute.xlu0 %1276 }
 0x240   : > { %v1282_v21 = vadd.f32 %v1277_v58, %v1268_v56  ;;  %v1269_v24 = vadd.f32 %v1265_v57, %v1255_v52 }
 0x241   : > { %1702 = vrot.lane.b32.xlu1 %v1697_v25, %s3614_s30  ;;  %1722 = vrot.lane.b32.xlu0 %v1718_v0, %s3609_s14  ;;  %v1775_v0 = vmul.f32 %v1773_v37, %v4577_v1  ;;  %v1851_v37 = vstv %s4631_s21  ;;  %s4698_s21 = sld [smem:[#allocation4 + $0x76]] }
 0x243   : > { %v1279_v60 = vpop.permute.xlu1 %1278  ;;  %v1291_v17 = vpop.permute.xlu0 %1290 }
 0x244   : > { %v1296_v26 = vadd.f32 %v1291_v17, %v1282_v21  ;;  %v1283_v35 = vadd.f32 %v1279_v60, %v1269_v24  ;;  %v1345_v17 = vmul.f32 %v1343_v34, %v4351_v59  ;;  %v1823_v59 = vstv %s4612_s7  ;;  %s4689_s7 = sld [smem:[#allocation4 + $0x75]] }
 0x245   : > { %1724 = vrot.lane.b32.xlu1 %v1719_v12, %s3609_s14  ;;  %1736 = vrot.lane.b32.xlu0 %v1732_v8, %s3610_s8  ;;  %v1809_v12 = vstv %s4603_s27  ;;  %v1824_v24 = vmul.f32 %v1823_v59, %v4619_v18  ;;  %s4682_s27 = sld [smem:[#allocation4 + $0x74]] }
 0x247   : > { %v1293_v14 = vpop.permute.xlu1 %1292  ;;  %v1305_v15 = vpop.permute.xlu0 %1304 }
 0x248   : > { %v1310_v36 = vadd.f32 %v1305_v15, %v1296_v26  ;;  %v1297_v40 = vadd.f32 %v1293_v14, %v1283_v35  ;;  %v1789_v14 = vmul.f32 %v1787_v61, %v4577_v1  ;;  %v1810_v15 = vmul.f32 %v1809_v12, %v4619_v18 }
 0x249   : > { %1738 = vrot.lane.b32.xlu1 %v1733_v19, %s3610_s8  ;;  %1750 = vrot.lane.b32.xlu0 %v1746_v20, %s3611_s12  ;;  %v4628_v19 = vld [vmem:[#allocation2 + $0x39] sm:$0xff]  ;;  %v1837_v26 = vstv %s4622_s13  ;;  %s4693_s13 = sld [smem:[#allocation4 + $0x54]] }
 0x24a   : > { %v1811_v23 = vmul.f32 %v1809_v12, %v4628_v19  ;;  %v1838_v35 = vmul.f32 %v1837_v26, %v4619_v18  ;;  %v1879_v12 = vstv %s4647_s15  ;;  %s4724_s15 = sld [smem:[#allocation4 + $0x7a]] }
 0x24b   : > { %v1307_v27 = vpop.permute.xlu1 %1306  ;;  %v1319_v29 = vpop.permute.xlu0 %1318 }
 0x24c   : > { %v1324_v42 = vadd.f32 %v1319_v29, %v1310_v36  ;;  %v1311_v9 = vadd.f32 %v1307_v27, %v1297_v40 }
 0x24d   : > { %1752 = vrot.lane.b32.xlu1 %v1747_v31, %s3611_s12  ;;  %1764 = vrot.lane.b32.xlu0 %v1760_v32, %s3612_s16  ;;  %v1825_v32 = vmul.f32 %v1823_v59, %v4628_v19  ;;  %v1880_v59 = vmul.f32 %v1879_v12, %v4619_v18 }
 0x24f   : > { %v1321_v43 = vpop.permute.xlu1 %1320  ;;  %v1333_v44 = vpop.permute.xlu0 %1332 }
 0x250   : > { %v1338_v33 = vadd.f32 %v1333_v44, %v1324_v42  ;;  %v1325_v52 = vadd.f32 %v1321_v43, %v1311_v9  ;;  %v1839_v44 = vmul.f32 %v1837_v26, %v4628_v19 }
 0x251   : > { %1766 = vrot.lane.b32.xlu1 %v1761_v45, %s3612_s16  ;;  %1778 = vrot.lane.b32.xlu0 %v1774_v13, %s3613_s9  ;;  %v1852_v45 = vmul.f32 %v1851_v37, %v4619_v18 }
 0x252   : > { %v1346_v57 = vadd.f32 %v1344_v54, %v1338_v33  ;;  %v1865_v33 = vstv %s4638_s23  ;;  %v1435_v54 = vstv %s4642_s26  ;;  %s4705_s23 = sld [smem:[#allocation4 + $0x78]]  ;;  %s4714_s26 = sld [smem:[#allocation4 + $0x79]] }
 0x253   : > { %v1335_v58 = vpop.permute.xlu1 %1334  ;;  %v1355_v25 = vpop.permute.xlu0 %1354 }
 0x254   : > { %v1339_v60 = vadd.f32 %v1335_v58, %v1325_v52  ;;  %v1360_v27 = vadd.f32 %v1355_v25, %v1346_v57  ;;  %v1853_v25 = vmul.f32 %v1851_v37, %v4628_v19 }
 0x255   : > { %1780 = vrot.lane.b32.xlu1 %v1775_v0, %s3613_s9  ;;  %1792 = vrot.lane.b32.xlu0 %v1788_v3, %s3614_s30  ;;  %v1866_v0 = vmul.f32 %v1865_v33, %v4619_v18 }
 0x256   : > { %v1347_v8 = vadd.f32 %v1345_v17, %v1339_v60  ;;  %v1436_v17 = vmul.f32 %v1435_v54, %v4397_v46  ;;  %v4670_v46 = vld [vmem:[#allocation2 + $0x32] sm:$0xff] }
 0x257   : > { %v1357_v39 = vpop.permute.xlu1 %1356  ;;  %v1369_v56 = vpop.permute.xlu0 %1368 }
 0x258   : > { %v1374_v36 = vadd.f32 %v1369_v56, %v1360_v27  ;;  %v1361_v34 = vadd.f32 %v1357_v39, %v1347_v8 }
 0x259   : > { %1794 = vrot.lane.b32.xlu1 %v1789_v14, %s3614_s30  ;;  %1814 = vrot.lane.b32.xlu0 %v1810_v15, %s3609_s14  ;;  %v1867_v15 = vmul.f32 %v1865_v33, %v4628_v19  ;;  %v1943_v33 = vstv %s4682_s27  ;;  %s4749_s27 = sld [smem:[#allocation4 + $0x7d]] }
 0x25b   : > { %v1371_v20 = vpop.permute.xlu1 %1370  ;;  %v1383_v21 = vpop.permute.xlu0 %1382 }
 0x25c   : > { %v1388_v40 = vadd.f32 %v1383_v21, %v1374_v36  ;;  %v1375_v13 = vadd.f32 %v1371_v20, %v1361_v34  ;;  %v1437_v21 = vmul.f32 %v1435_v54, %v4412_v51  ;;  %v1915_v51 = vstv %s4663_s24  ;;  %s4740_s24 = sld [smem:[#allocation4 + $0x7c]] }
 0x25d   : > { %1816 = vrot.lane.b32.xlu1 %v1811_v23, %s3609_s14  ;;  %1828 = vrot.lane.b32.xlu0 %v1824_v24, %s3610_s8  ;;  %v1901_v23 = vstv %s4654_s6  ;;  %v1916_v34 = vmul.f32 %v1915_v51, %v4670_v46  ;;  %s4733_s6 = sld [smem:[#allocation4 + $0x7b]] }
 0x25f   : > { %v1385_v29 = vpop.permute.xlu1 %1384  ;;  %v1397_v31 = vpop.permute.xlu0 %1396 }
 0x260   : > { %v1402_v9 = vadd.f32 %v1397_v31, %v1388_v40  ;;  %v1389_v61 = vadd.f32 %v1385_v29, %v1375_v13  ;;  %v1881_v29 = vmul.f32 %v1879_v12, %v4628_v19  ;;  %v1902_v31 = vmul.f32 %v1901_v23, %v4670_v46 }
 0x261   : > { %1830 = vrot.lane.b32.xlu1 %v1825_v32, %s3610_s8  ;;  %1842 = vrot.lane.b32.xlu0 %v1838_v35, %s3611_s12  ;;  %v4679_v32 = vld [vmem:[#allocation2 + $0x3a] sm:$0xff]  ;;  %v1929_v40 = vstv %s4673_s5  ;;  %s4744_s5 = sld [smem:[#allocation4 + $0x5b]] }
 0x262   : > { %v1903_v37 = vmul.f32 %v1901_v23, %v4679_v32  ;;  %v1930_v13 = vmul.f32 %v1929_v40, %v4670_v46  ;;  %v1971_v23 = vstv %s4698_s21  ;;  %s4775_s21 = sld [smem:[#allocation4 + $0x81]] }
 0x263   : > { %v1399_v42 = vpop.permute.xlu1 %1398  ;;  %v1411_v43 = vpop.permute.xlu0 %1410 }
 0x264   : > { %v1416_v52 = vadd.f32 %v1411_v43, %v1402_v9  ;;  %v1403_v3 = vadd.f32 %v1399_v42, %v1389_v61 }
 0x265   : > { %1844 = vrot.lane.b32.xlu1 %v1839_v44, %s3611_s12  ;;  %1856 = vrot.lane.b32.xlu0 %v1852_v45, %s3612_s16  ;;  %v1917_v45 = vmul.f32 %v1915_v51, %v4679_v32  ;;  %v1972_v51 = vmul.f32 %v1971_v23, %v4670_v46 }
 0x267   : > { %v1413_v57 = vpop.permute.xlu1 %1412  ;;  %v1425_v58 = vpop.permute.xlu0 %1424 }
 0x268   : > { %v1430_v60 = vadd.f32 %v1425_v58, %v1416_v52  ;;  %v1417_v8 = vadd.f32 %v1413_v57, %v1403_v3  ;;  %v1931_v58 = vmul.f32 %v1929_v40, %v4679_v32 }
 0x269   : > { %1858 = vrot.lane.b32.xlu1 %v1853_v25, %s3612_s16  ;;  %1870 = vrot.lane.b32.xlu0 %v1866_v0, %s3613_s9  ;;  %v1944_v25 = vmul.f32 %v1943_v33, %v4670_v46 }
 0x26a   : > { %v1438_v39 = vadd.f32 %v1436_v17, %v1430_v60  ;;  %v1957_v60 = vstv %s4689_s7  ;;  %v1527_v17 = vstv %s4693_s13  ;;  %s4756_s7 = sld [smem:[#allocation4 + $0x7f]]  ;;  %s4765_s13 = sld [smem:[#allocation4 + $0x80]] }
 0x26b   : > { %v1427_v56 = vpop.permute.xlu1 %1426  ;;  %v1447_v14 = vpop.permute.xlu0 %1446 }
 0x26c   : > { %v1431_v20 = vadd.f32 %v1427_v56, %v1417_v8  ;;  %v1452_v42 = vadd.f32 %v1447_v14, %v1438_v39  ;;  %v1945_v14 = vmul.f32 %v1943_v33, %v4679_v32 }
 0x26d   : > { %1872 = vrot.lane.b32.xlu1 %v1867_v15, %s3613_s9  ;;  %1884 = vrot.lane.b32.xlu0 %v1880_v59, %s3614_s30  ;;  %v1958_v15 = vmul.f32 %v1957_v60, %v4670_v46 }
 0x26e   : > { %v1439_v24 = vadd.f32 %v1437_v21, %v1431_v20  ;;  %v1528_v21 = vmul.f32 %v1527_v17, %v4463_v22  ;;  %v4721_v22 = vld [vmem:[#allocation2 + $0x33] sm:$0xff] }
 0x26f   : > { %v1449_v26 = vpop.permute.xlu1 %1448  ;;  %v1461_v27 = vpop.permute.xlu0 %1460 }
 0x270   : > { %v1466_v9 = vadd.f32 %v1461_v27, %v1452_v42  ;;  %v1453_v54 = vadd.f32 %v1449_v26, %v1439_v24 }
 0x271   : > { %1886 = vrot.lane.b32.xlu1 %v1881_v29, %s3614_s30  ;;  %1906 = vrot.lane.b32.xlu0 %v1902_v31, %s3609_s14  ;;  %v1959_v31 = vmul.f32 %v1957_v60, %v4679_v32  ;;  %v2035_v60 = vstv %s4733_s6  ;;  %s4813_s6 = sld [smem:[#allocation4 + $0x86]] }
 0x273   : > { %v1463_v35 = vpop.permute.xlu1 %1462  ;;  %v1475_v36 = vpop.permute.xlu0 %1474 }
 0x274   : > { %v1480_v61 = vadd.f32 %v1475_v36, %v1466_v9  ;;  %v1467_v0 = vadd.f32 %v1463_v35, %v1453_v54  ;;  %v1529_v36 = vmul.f32 %v1527_v17, %v4472_v30  ;;  %v2007_v30 = vstv %s4714_s26  ;;  %s4790_s26 = sld [smem:[#allocation4 + $0x83]] }
 0x275   : > { %1908 = vrot.lane.b32.xlu1 %v1903_v37, %s3609_s14  ;;  %1920 = vrot.lane.b32.xlu0 %v1916_v34, %s3610_s8  ;;  %v1993_v37 = vstv %s4705_s23  ;;  %v2008_v54 = vmul.f32 %v2007_v30, %v4721_v22  ;;  %s4784_s23 = sld [smem:[#allocation4 + $0x82]] }
 0x277   : > { %v1477_v43 = vpop.permute.xlu1 %1476  ;;  %v1489_v44 = vpop.permute.xlu0 %1488 }
 0x278   : > { %v1494_v3 = vadd.f32 %v1489_v44, %v1480_v61  ;;  %v1481_v12 = vadd.f32 %v1477_v43, %v1467_v0  ;;  %v1973_v43 = vmul.f32 %v1971_v23, %v4679_v32  ;;  %v1994_v44 = vmul.f32 %v1993_v37, %v4721_v22 }
 0x279   : > { %1922 = vrot.lane.b32.xlu1 %v1917_v45, %s3610_s8  ;;  %1934 = vrot.lane.b32.xlu0 %v1930_v13, %s3611_s12  ;;  %v4730_v45 = vld [vmem:[#allocation2 + $0x3b] sm:$0xff]  ;;  %v2021_v61 = vstv %s4724_s15  ;;  %s4799_s15 = sld [smem:[#allocation4 + $0x84]] }
 0x27a   : > { %v1995_v33 = vmul.f32 %v1993_v37, %v4730_v45  ;;  %v2022_v0 = vmul.f32 %v2021_v61, %v4721_v22  ;;  %v2063_v37 = vstv %s4749_s27  ;;  %s4839_s27 = sld [smem:[#allocation4 + $0x88]] }
 0x27b   : > { %v1491_v52 = vpop.permute.xlu1 %1490  ;;  %v1503_v57 = vpop.permute.xlu0 %1502 }
 0x27c   : > { %v1508_v8 = vadd.f32 %v1503_v57, %v1494_v3  ;;  %v1495_v59 = vadd.f32 %v1491_v52, %v1481_v12 }
 0x27d   : > { %1936 = vrot.lane.b32.xlu1 %v1931_v58, %s3611_s12  ;;  %1948 = vrot.lane.b32.xlu0 %v1944_v25, %s3612_s16  ;;  %v2009_v25 = vmul.f32 %v2007_v30, %v4730_v45  ;;  %v2064_v30 = vmul.f32 %v2063_v37, %v4721_v22 }
 0x27f   : > { %v1505_v39 = vpop.permute.xlu1 %1504  ;;  %v1517_v56 = vpop.permute.xlu0 %1516 }
 0x280   : > { %v1522_v20 = vadd.f32 %v1517_v56, %v1508_v8  ;;  %v1509_v24 = vadd.f32 %v1505_v39, %v1495_v59  ;;  %v2023_v56 = vmul.f32 %v2021_v61, %v4730_v45 }
 0x281   : > { %1950 = vrot.lane.b32.xlu1 %v1945_v14, %s3612_s16  ;;  %1962 = vrot.lane.b32.xlu0 %v1958_v15, %s3613_s9  ;;  %v2036_v14 = vmul.f32 %v2035_v60, %v4721_v22 }
 0x282   : > { %v1530_v26 = vadd.f32 %v1528_v21, %v1522_v20  ;;  %v2049_v20 = vstv %s4740_s24  ;;  %v1619_v21 = vstv %s4744_s5  ;;  %s4824_s24 = sld [smem:[#allocation4 + $0x87]]  ;;  %s4828_s5 = sld [smem:[#allocation4 + $0x62]] }
 0x283   : > { %v1519_v27 = vpop.permute.xlu1 %1518  ;;  %v1539_v29 = vpop.permute.xlu0 %1538 }
 0x284   : > { %v1523_v35 = vadd.f32 %v1519_v27, %v1509_v24  ;;  %v1544_v52 = vadd.f32 %v1539_v29, %v1530_v26  ;;  %v2037_v29 = vmul.f32 %v2035_v60, %v4730_v45 }
 0x285   : > { %1964 = vrot.lane.b32.xlu1 %v1959_v31, %s3613_s9  ;;  %1976 = vrot.lane.b32.xlu0 %v1972_v51, %s3614_s30  ;;  %v2050_v31 = vmul.f32 %v2049_v20, %v4721_v22 }
 0x286   : > { %v1531_v34 = vadd.f32 %v1529_v36, %v1523_v35  ;;  %v1620_v36 = vmul.f32 %v1619_v21, %v4517_v38  ;;  %v4772_v38 = vld [vmem:[#allocation2 + $0x34] sm:$0xff] }
 0x287   : > { %v1541_v40 = vpop.permute.xlu1 %1540  ;;  %v1553_v42 = vpop.permute.xlu0 %1552 }
 0x288   : > { %v1558_v3 = vadd.f32 %v1553_v42, %v1544_v52  ;;  %v1545_v17 = vadd.f32 %v1541_v40, %v1531_v34 }
 0x289   : > { %1978 = vrot.lane.b32.xlu1 %v1973_v43, %s3614_s30  ;;  %1998 = vrot.lane.b32.xlu0 %v1994_v44, %s3609_s14  ;;  %v2051_v44 = vmul.f32 %v2049_v20, %v4730_v45 }
 0x28b   : > { %v1555_v13 = vpop.permute.xlu1 %1554  ;;  %v1567_v9 = vpop.permute.xlu0 %1566 }
 0x28c   : > { %v1572_v12 = vadd.f32 %v1567_v9, %v1558_v3  ;;  %v1559_v15 = vadd.f32 %v1555_v13, %v1545_v17  ;;  %v1621_v9 = vmul.f32 %v1619_v21, %v4526_v47  ;;  %v2099_v47 = vstv %s4765_s13  ;;  %s4859_s13 = sld [smem:[#allocation4 + $0x8a]] }
 0x28d   : > { %2000 = vrot.lane.b32.xlu1 %v1995_v33, %s3609_s14  ;;  %2012 = vrot.lane.b32.xlu0 %v2008_v54, %s3610_s8  ;;  %v2085_v33 = vstv %s4756_s7  ;;  %v2100_v17 = vmul.f32 %v2099_v47, %v4772_v38  ;;  %s4848_s7 = sld [smem:[#allocation4 + $0x89]] }
 0x28f   : > { %v1569_v57 = vpop.permute.xlu1 %1568  ;;  %v1581_v58 = vpop.permute.xlu0 %1580 }
 0x290   : > { %v1586_v59 = vadd.f32 %v1581_v58, %v1572_v12  ;;  %v1573_v23 = vadd.f32 %v1569_v57, %v1559_v15  ;;  %v2065_v57 = vmul.f32 %v2063_v37, %v4730_v45  ;;  %v2086_v58 = vmul.f32 %v2085_v33, %v4772_v38 }
 0x291   : > { %2014 = vrot.lane.b32.xlu1 %v2009_v25, %s3610_s8  ;;  %2026 = vrot.lane.b32.xlu0 %v2022_v0, %s3611_s12  ;;  %v4781_v25 = vld [vmem:[#allocation2 + $0x3c] sm:$0xff]  ;;  %v2113_v12 = vstv %s4775_s21  ;;  %s4863_s21 = sld [smem:[#allocation4 + $0x69]] }
 0x292   : > { %v2087_v60 = vmul.f32 %v2085_v33, %v4781_v25  ;;  %v2101_v15 = vmul.f32 %v2099_v47, %v4781_v25  ;;  %v4836_v47 = vld [vmem:[#allocation2 + $0x35] sm:$0xff] }
 0x293   : > { %v1583_v8 = vpop.permute.xlu1 %1582  ;;  %v1595_v39 = vpop.permute.xlu0 %1594 }
 0x294   : > { %v1600_v24 = vadd.f32 %v1595_v39, %v1586_v59  ;;  %v1587_v51 = vadd.f32 %v1583_v8, %v1573_v23  ;;  %v992_v8 = vadd.f32 %v4392_v28, %v4390_v41  ;;  %v2114_v59 = vmul.f32 %v2113_v12, %v4772_v38 }
 0x295   : > { %2028 = vrot.lane.b32.xlu1 %v2023_v56, %s3611_s12  ;;  %2040 = vrot.lane.b32.xlu0 %v2036_v14, %s3612_s16  ;;  %v2127_v23 = vstv %s4784_s23  ;;  %v993_v41 = vadd.f32 %v4406_v49, %v4404_v48  ;;  %s4874_s23 = sld [smem:[#allocation4 + $0x94]] }
 0x296   : > { %v1006_v20 = vadd.f32 %v4408_v50, %v992_v8  ;;  %v2141_v50 = vstv %s4790_s26  ;;  %v1711_v8 = vstv %s4828_s5  ;;  %s3313_s26 = sld [smem:[#allocation4 + $0x95]]  ;;  %s4910_s5 = sld [smem:[#allocation4 + $0x99]] }
 0x297   : > { %v1597_v26 = vpop.permute.xlu1 %1596  ;;  %v1609_v27 = vpop.permute.xlu0 %1608 }
 0x298   : > { %v1614_v35 = vadd.f32 %v1609_v27, %v1600_v24  ;;  %v1601_v34 = vadd.f32 %v1597_v26, %v1587_v51  ;;  %v1020_v28 = vadd.f32 %v4419_v55, %v1006_v20  ;;  %v2128_v51 = vmul.f32 %v2127_v23, %v4772_v38 }
 0x299   : > { %2042 = vrot.lane.b32.xlu1 %v2037_v29, %s3612_s16  ;;  %2054 = vrot.lane.b32.xlu0 %v2050_v31, %s3613_s9  ;;  %v2115_v31 = vmul.f32 %v2113_v12, %v4781_v25  ;;  %v1712_v20 = vmul.f32 %v1711_v8, %v4568_v7 }
 0x29a   : > { %v1622_v40 = vadd.f32 %v1620_v36, %v1614_v35  ;;  %v1007_v35 = vadd.f32 %v4417_v53, %v993_v41  ;;  %v1034_v36 = vadd.f32 %v4428_v63, %v1020_v28  ;;  %v2129_v53 = vmul.f32 %v2127_v23, %v4781_v25 }
 0x29b   : > { %v1611_v42 = vpop.permute.xlu1 %1610  ;;  %v1631_v43 = vpop.permute.xlu0 %1630  ;;  %v2142_v63 = vmul.f32 %v2141_v50, %v4772_v38 }
 0x29c   : > { %v1615_v13 = vadd.f32 %v1611_v42, %v1601_v34  ;;  %v1636_v39 = vadd.f32 %v1631_v43, %v1622_v40  ;;  %v1021_v48 = vadd.f32 %v4426_v62, %v1007_v35  ;;  %v1048_v49 = vadd.f32 %v4438_v5, %v1034_v36 }
 0x29d   : > { %2056 = vrot.lane.b32.xlu1 %v2051_v44, %s3613_s9  ;;  %2068 = vrot.lane.b32.xlu0 %v2064_v30, %s3614_s30  ;;  %v2155_v44 = vstv %s4799_s15  ;;  %s3314_s15 = sld [smem:[#allocation4 + $0x96]] }
 0x29e   : > { %v1623_v54 = vadd.f32 %v1621_v9, %v1615_v13  ;;  %v1035_v30 = vadd.f32 %v4436_v4, %v1021_v48  ;;  %v1062_v13 = vadd.f32 %v4448_v11, %v1048_v49  ;;  %v2143_v11 = vmul.f32 %v2141_v50, %v4781_v25 }
 0x29f   : > { %v1633_v61 = vpop.permute.xlu1 %1632  ;;  %v1645_v52 = vpop.permute.xlu0 %1644  ;;  %v2233_v49 = vstv %s4859_s13  ;;  %s3321_s13 = sld [smem:[#allocation4 + $0x9d]] }
 0x2a0   : > { %v1650_v21 = vadd.f32 %v1645_v52, %v1636_v39  ;;  %v1637_v24 = vadd.f32 %v1633_v61, %v1623_v54  ;;  %v1049_v62 = vadd.f32 %v4446_v10, %v1035_v30  ;;  %v2156_v52 = vmul.f32 %v2155_v44, %v4772_v38 }
 0x2a1   : > { %2070 = vrot.lane.b32.xlu1 %v2065_v57, %s3614_s30  ;;  %2090 = vrot.lane.b32.xlu0 %v2086_v58, %s3609_s14 }
 0x2a2   : > { %v1063_v57 = vadd.f32 %v4459_v16, %v1049_v62  ;;  %v2191_v16 = vstv %s4824_s24  ;;  %s4906_s24 = sld [smem:[#allocation4 + $0x70]] }
 0x2a3   : > { %v1647_v0 = vpop.permute.xlu1 %1646  ;;  %v1659_v3 = vpop.permute.xlu0 %1658 }
 0x2a4   : > { %v1664_v26 = vadd.f32 %v1659_v3, %v1650_v21  ;;  %v1651_v37 = vadd.f32 %v1647_v0, %v1637_v24  ;;  %v2177_v0 = vstv %s4813_s6  ;;  %v2205_v21 = vstv %s4839_s27  ;;  %s4902_s6 = sld [smem:[#allocation4 + $0x98]]  ;;  %s4917_s27 = sld [smem:[#allocation4 + $0x9b]] }
 0x2a5   : > { %2092 = vrot.lane.b32.xlu1 %v2087_v60, %s3609_s14  ;;  %2104 = vrot.lane.b32.xlu0 %v2100_v17, %s3610_s8  ;;  %v2157_v17 = vmul.f32 %v2155_v44, %v4781_v25  ;;  %v2178_v12 = vmul.f32 %v2177_v0, %v4836_v47 }
 0x2a7   : > { %v1661_v56 = vpop.permute.xlu1 %1660  ;;  %v1673_v14 = vpop.permute.xlu0 %1672 }
 0x2a8   : > { %v1678_v34 = vadd.f32 %v1673_v14, %v1664_v26  ;;  %v1665_v55 = vadd.f32 %v1661_v56, %v1651_v37  ;;  %v4853_v14 = vld [vmem:[#allocation2 + $0x3d] sm:$0xff]  ;;  %v2206_v26 = vmul.f32 %v2205_v21, %v4836_v47 }
 0x2a9   : > { %2106 = vrot.lane.b32.xlu1 %v2101_v15, %s3610_s8  ;;  %2118 = vrot.lane.b32.xlu0 %v2114_v59, %s3611_s12  ;;  %v2179_v15 = vmul.f32 %v4853_v14, %v2177_v0  ;;  %v2192_v59 = vmul.f32 %v2191_v16, %v4836_v47  ;;  %v2193_v24 = vmul.f32 %v4853_v14, %v2191_v16 }
 0x2aa   : > { %v2207_v36 = vmul.f32 %v4853_v14, %v2205_v21 }
 0x2ab   : > { %v1675_v27 = vpop.permute.xlu1 %1674  ;;  %v1687_v29 = vpop.permute.xlu0 %1686 }
 0x2ac   : > { %v1692_v40 = vadd.f32 %v1687_v29, %v1678_v34  ;;  %v1679_v9 = vadd.f32 %v1675_v27, %v1665_v55  ;;  %v1713_v27 = vmul.f32 %v1711_v8, %v4577_v1  ;;  %v2219_v29 = vstv %s4848_s7  ;;  %s3320_s7 = sld [smem:[#allocation4 + $0x9c]] }
 0x2ad   : > { %2120 = vrot.lane.b32.xlu1 %v2115_v31, %s3611_s12  ;;  %2132 = vrot.lane.b32.xlu0 %v2128_v51, %s3612_s16  ;;  %v2220_v37 = vmul.f32 %v2219_v29, %v4836_v47  ;;  %v1803_v1 = vstv %s4863_s21  ;;  %s3322_s21 = sld [smem:[#allocation4 + $0x9e]] }
 0x2ae   : > { %v1804_v30 = vmul.f32 %v1803_v1, %v4619_v18  ;;  %v2361_v18 = vstv %s4874_s23  ;;  %s4944_s23 = sld [smem:[#allocation4 + $0x9f]] }
 0x2af   : > { %v1689_v42 = vpop.permute.xlu1 %1688  ;;  %v1701_v43 = vpop.permute.xlu0 %1700 }
 0x2b0   : > { %v1706_v33 = vadd.f32 %v1701_v43, %v1692_v40  ;;  %v1693_v5 = vadd.f32 %v1689_v42, %v1679_v9 }
 0x2b1   : > { %2134 = vrot.lane.b32.xlu1 %v2129_v53, %s3612_s16  ;;  %2146 = vrot.lane.b32.xlu0 %v2142_v63, %s3613_s9  ;;  %v2221_v53 = vmul.f32 %v4853_v14, %v2219_v29  ;;  %v2234_v63 = vmul.f32 %v2233_v49, %v4836_v47 }
 0x2b2   : > { %v4831_v54 = vadd.f32 %v1706_v33, %v1062_v13 }
 0x2b3   : > { %v1703_v61 = vpop.permute.xlu1 %1702  ;;  %v1723_v4 = vpop.permute.xlu0 %1722 }
 0x2b4   : > { %v1707_v58 = vadd.f32 %v1703_v61, %v1693_v5  ;;  %v1728_v23 = vadd.f32 %v1723_v4, %v1712_v20  ;;  %v2235_v61 = vmul.f32 %v4853_v14, %v2233_v49  ;;  %v2248_v4 = vmul.f32 %v2247_v2, %v4836_v47 }
 0x2b5   : > { %2148 = vrot.lane.b32.xlu1 %v2143_v11, %s3613_s9  ;;  %2160 = vrot.lane.b32.xlu0 %v2156_v52, %s3614_s30  ;;  %v1805_v11 = vmul.f32 %v1803_v1, %v4628_v19 }
 0x2b6   : > { %v4843_v10 = vadd.f32 %v1707_v58, %v1063_v57  ;;  %v4889_v57 = vld [vmem:[#allocation2 + $0x48] sm:$0xff]  ;;  %v4892_v58 = vld [vmem:[#allocation2 + $0x50] sm:$0xff] }
 0x2b7   : > { %v1725_v3 = vpop.permute.xlu1 %1724  ;;  %v1737_v60 = vpop.permute.xlu0 %1736  ;;  %v2363_v2 = vmul.f32 %v2361_v18, %v4892_v58 }
 0x2b8   : > { %v1742_v7 = vadd.f32 %v1737_v60, %v1728_v23  ;;  %v1729_v31 = vadd.f32 %v1725_v3, %v1713_v27 }
 0x2b9   : > { %2162 = vrot.lane.b32.xlu1 %v2157_v17, %s3614_s30  ;;  %2182 = vrot.lane.b32.xlu0 %v2178_v12, %s3609_s14  ;;  %v2362_v17 = vmul.f32 %v2361_v18, %v4889_v57  ;;  %v2375_v12 = vstv %s3313_s26  ;;  %s4948_s26 = sld [smem:[#allocation4 + $0x77]] }
 0x2ba   : > { %v2376_v8 = vmul.f32 %v2375_v12, %v4889_v57 }
 0x2bb   : > { %v1739_v39 = vpop.permute.xlu1 %1738  ;;  %v1751_v56 = vpop.permute.xlu0 %1750 }
 0x2bc   : > { %v1756_v51 = vadd.f32 %v1751_v56, %v1742_v7  ;;  %v1743_v34 = vadd.f32 %v1739_v39, %v1729_v31  ;;  %v2377_v39 = vmul.f32 %v2375_v12, %v4892_v58  ;;  %v2389_v56 = vstv %s3314_s15  ;;  %s4952_s15 = sld [smem:[#allocation4 + $0xa0]] }
 0x2bd   : > { %2184 = vrot.lane.b32.xlu1 %v2179_v15, %s3609_s14  ;;  %2196 = vrot.lane.b32.xlu0 %v2192_v59, %s3610_s8  ;;  %v2390_v21 = vmul.f32 %v2389_v56, %v4889_v57  ;;  %v2391_v23 = vmul.f32 %v2389_v56, %v4892_v58 }
 0x2bf   : > { %v1753_v41 = vpop.permute.xlu1 %1752  ;;  %v1765_v28 = vpop.permute.xlu0 %1764 }
 0x2c0   : > { %v1770_v48 = vadd.f32 %v1765_v28, %v1756_v51  ;;  %v1757_v55 = vadd.f32 %v1753_v41, %v1743_v34  ;;  %v2403_v28 = vstv %s3315_s11  ;;  %s4959_s11 = sld [smem:[#allocation4 + $0xa2]] }
 0x2c1   : > { %2198 = vrot.lane.b32.xlu1 %v2193_v24, %s3610_s8  ;;  %2210 = vrot.lane.b32.xlu0 %v2206_v26, %s3611_s12  ;;  %v2404_v29 = vmul.f32 %v2403_v28, %v4889_v57  ;;  %v2405_v31 = vmul.f32 %v2403_v28, %v4892_v58 }
 0x2c3   : > { %v1767_v50 = vpop.permute.xlu1 %1766  ;;  %v1779_v35 = vpop.permute.xlu0 %1778 }
 0x2c4   : > { %v1784_v40 = vadd.f32 %v1779_v35, %v1770_v48  ;;  %v1771_v44 = vadd.f32 %v1767_v50, %v1757_v55  ;;  %v2417_v35 = vstv %s4902_s6  ;;  %s3327_s6 = sld [smem:[#allocation4 + $0xa3]] }
 0x2c5   : > { %2212 = vrot.lane.b32.xlu1 %v2207_v36, %s3611_s12  ;;  %2224 = vrot.lane.b32.xlu0 %v2220_v37, %s3612_s16  ;;  %v1895_v36 = vstv %s4906_s24  ;;  %v2418_v1 = vmul.f32 %v2417_v35, %v4889_v57  ;;  %v2419_v55 = vmul.f32 %v2417_v35, %v4892_v58  ;;  %s3328_s24 = sld [smem:[#allocation4 + $0xa4]] }
 0x2c7   : > { %v1781_v42 = vpop.permute.xlu1 %1780  ;;  %v1793_v43 = vpop.permute.xlu0 %1792 }
 0x2c8   : > { %v1798_v13 = vadd.f32 %v1793_v43, %v1784_v40  ;;  %v1785_v9 = vadd.f32 %v1781_v42, %v1771_v44  ;;  %v1896_v42 = vmul.f32 %v1895_v36, %v4670_v46  ;;  %v2453_v46 = vstv %s4917_s27  ;;  %s4986_s27 = sld [smem:[#allocation4 + $0xa6]] }
 0x2c9   : > { %2226 = vrot.lane.b32.xlu1 %v2221_v53, %s3612_s16  ;;  %2238 = vrot.lane.b32.xlu0 %v2234_v63, %s3613_s9  ;;  %v2431_v53 = vstv %s4910_s5  ;;  %s3329_s5 = sld [smem:[#allocation4 + $0xa5]] }
 0x2ca   : > { %v1806_v33 = vadd.f32 %v1804_v30, %v1798_v13 }
 0x2cb   : > { %v1795_v62 = vpop.permute.xlu1 %1794  ;;  %v1815_v5 = vpop.permute.xlu0 %1814 }
 0x2cc   : > { %v1799_v52 = vadd.f32 %v1795_v62, %v1785_v9  ;;  %v1820_v15 = vadd.f32 %v1815_v5, %v1806_v33  ;;  %v2432_v9 = vmul.f32 %v2431_v53, %v4889_v57  ;;  %v2433_v33 = vmul.f32 %v2431_v53, %v4892_v58 }
 0x2cd   : > { %2240 = vrot.lane.b32.xlu1 %v2235_v61, %s3613_s9  ;;  %2252 = vrot.lane.b32.xlu0 %v2248_v4, %s3614_s30  ;;  %v1897_v62 = vmul.f32 %v1895_v36, %v4679_v32  ;;  %v4931_v61 = vld [vmem:[#allocation2 + $0x49] sm:$0xff]  ;;  %v4934_v4 = vld [vmem:[#allocation2 + $0x51] sm:$0xff] }
 0x2ce   : > { %v1807_v0 = vadd.f32 %v1805_v11, %v1799_v52 }
 0x2cf   : > { %v1817_v3 = vpop.permute.xlu1 %1816  ;;  %v1829_v60 = vpop.permute.xlu0 %1828 }
 0x2d0   : > { %v1834_v41 = vadd.f32 %v1829_v60, %v1820_v15  ;;  %v1821_v24 = vadd.f32 %v1817_v3, %v1807_v0  ;;  %v2454_v0 = vmul.f32 %v2453_v46, %v4931_v61  ;;  %v2455_v3 = vmul.f32 %v2453_v46, %v4934_v4 }
 0x2d1   : > { %2366 = vrot.lane.b32.xlu1 %v2362_v17, %s3609_s14  ;;  %2368 = vrot.lane.b32.xlu0 %v2363_v2, %s3609_s14  ;;  %v2467_v60 = vstv %s3320_s7  ;;  %s4990_s7 = sld [smem:[#allocation4 + $0x7e]] }
 0x2d2   : > { %v2468_v2 = vmul.f32 %v2467_v60, %v4931_v61  ;;  %v2469_v12 = vmul.f32 %v2467_v60, %v4934_v4 }
 0x2d3   : > { %v1831_v19 = vpop.permute.xlu1 %1830  ;;  %v1843_v16 = vpop.permute.xlu0 %1842 }
 0x2d4   : > { %v1848_v26 = vadd.f32 %v1843_v16, %v1834_v41  ;;  %v1835_v51 = vadd.f32 %v1831_v19, %v1821_v24  ;;  %v2481_v19 = vstv %s3321_s13  ;;  %s4994_s13 = sld [smem:[#allocation4 + $0xa7]] }
 0x2d5   : > { %2380 = vrot.lane.b32.xlu1 %v2376_v8, %s3610_s8  ;;  %2382 = vrot.lane.b32.xlu0 %v2377_v39, %s3610_s8  ;;  %v2482_v56 = vmul.f32 %v2481_v19, %v4931_v61  ;;  %v2483_v15 = vmul.f32 %v2481_v19, %v4934_v4 }
 0x2d7   : > { %v1845_v59 = vpop.permute.xlu1 %1844  ;;  %v1857_v20 = vpop.permute.xlu0 %1856 }
 0x2d8   : > { %v1862_v50 = vadd.f32 %v1857_v20, %v1848_v26  ;;  %v1849_v37 = vadd.f32 %v1845_v59, %v1835_v51  ;;  %v2495_v20 = vstv %s3322_s21  ;;  %s5001_s21 = sld [smem:[#allocation4 + $0xa9]] }
 0x2d9   : > { %2394 = vrot.lane.b32.xlu1 %v2390_v21, %s3611_s12  ;;  %2396 = vrot.lane.b32.xlu0 %v2391_v23, %s3611_s12  ;;  %v2496_v24 = vmul.f32 %v2495_v20, %v4931_v61  ;;  %v2497_v26 = vmul.f32 %v2495_v20, %v4934_v4 }
 0x2db   : > { %v1859_v27 = vpop.permute.xlu1 %1858  ;;  %v1871_v7 = vpop.permute.xlu0 %1870 }
 0x2dc   : > { %v1876_v34 = vadd.f32 %v1871_v7, %v1862_v50  ;;  %v1863_v40 = vadd.f32 %v1859_v27, %v1849_v37 }
 0x2dd   : > { %2408 = vrot.lane.b32.xlu1 %v2404_v29, %s3612_s16  ;;  %2410 = vrot.lane.b32.xlu0 %v2405_v31, %s3612_s16  ;;  %v2509_v29 = vstv %s4944_s23  ;;  %v1987_v31 = vstv %s4948_s26  ;;  %s3334_s23 = sld [smem:[#allocation4 + $0xaa]]  ;;  %s3335_s26 = sld [smem:[#allocation4 + $0xab]] }
 0x2de   : > { %v2510_v37 = vmul.f32 %v2509_v29, %v4931_v61 }
 0x2df   : > { %v1873_v48 = vpop.permute.xlu1 %1872  ;;  %v1885_v49 = vpop.permute.xlu0 %1884 }
 0x2e0   : > { %v1890_v43 = vadd.f32 %v1885_v49, %v1876_v34  ;;  %v1877_v63 = vadd.f32 %v1873_v48, %v1863_v40  ;;  %v2511_v34 = vmul.f32 %v2509_v29, %v4934_v4 }
 0x2e1   : > { %2422 = vrot.lane.b32.xlu1 %v2418_v1, %s3613_s9  ;;  %2424 = vrot.lane.b32.xlu0 %v2419_v55, %s3613_s9  ;;  %v1988_v1 = vmul.f32 %v1987_v31, %v4721_v22  ;;  %v2523_v55 = vstv %s4952_s15  ;;  %v2545_v22 = vstv %s4959_s11  ;;  %s3336_s15 = sld [smem:[#allocation4 + $0xac]]  ;;  %s5028_s11 = sld [smem:[#allocation4 + $0xad]] }
 0x2e2   : > { %v1898_v44 = vadd.f32 %v1896_v42, %v1890_v43 }
 0x2e3   : > { %v1887_v30 = vpop.permute.xlu1 %1886  ;;  %v1907_v13 = vpop.permute.xlu0 %1906 }
 0x2e4   : > { %v1891_v5 = vadd.f32 %v1887_v30, %v1877_v63  ;;  %v1912_v16 = vadd.f32 %v1907_v13, %v1898_v44  ;;  %v2524_v63 = vmul.f32 %v2523_v55, %v4931_v61  ;;  %v2525_v44 = vmul.f32 %v2523_v55, %v4934_v4 }
 0x2e5   : > { %2436 = vrot.lane.b32.xlu1 %v2432_v9, %s3614_s30  ;;  %2438 = vrot.lane.b32.xlu0 %v2433_v33, %s3614_s30  ;;  %v1989_v13 = vmul.f32 %v1987_v31, %v4730_v45  ;;  %v4973_v9 = vld [vmem:[#allocation2 + $0x4a] sm:$0xff]  ;;  %v4976_v33 = vld [vmem:[#allocation2 + $0x52] sm:$0xff] }
 0x2e6   : > { %v1899_v11 = vadd.f32 %v1897_v62, %v1891_v5 }
 0x2e7   : > { %v1909_v52 = vpop.permute.xlu1 %1908  ;;  %v1921_v18 = vpop.permute.xlu0 %1920 }
 0x2e8   : > { %v1926_v59 = vadd.f32 %v1921_v18, %v1912_v16  ;;  %v1913_v21 = vadd.f32 %v1909_v52, %v1899_v11  ;;  %v2546_v11 = vmul.f32 %v2545_v22, %v4973_v9  ;;  %v2547_v52 = vmul.f32 %v2545_v22, %v4976_v33 }
 0x2e9   : > { %2458 = vrot.lane.b32.xlu1 %v2454_v0, %s3609_s14  ;;  %2460 = vrot.lane.b32.xlu0 %v2455_v3, %s3609_s14  ;;  %v2559_v18 = vstv %s3327_s6  ;;  %s5032_s6 = sld [smem:[#allocation4 + $0x85]] }
 0x2ea   : > { %v2560_v3 = vmul.f32 %v2559_v18, %v4973_v9  ;;  %v2561_v60 = vmul.f32 %v2559_v18, %v4976_v33 }
 0x2eb   : > { %v1923_v32 = vpop.permute.xlu1 %1922  ;;  %v1935_v17 = vpop.permute.xlu0 %1934 }
 0x2ec   : > { %v1940_v23 = vadd.f32 %v1935_v17, %v1926_v59  ;;  %v1927_v27 = vadd.f32 %v1923_v32, %v1913_v21  ;;  %v2573_v32 = vstv %s3328_s24  ;;  %s5036_s24 = sld [smem:[#allocation4 + $0xae]] }
 0x2ed   : > { %2472 = vrot.lane.b32.xlu1 %v2468_v2, %s3610_s8  ;;  %2474 = vrot.lane.b32.xlu0 %v2469_v12, %s3610_s8  ;;  %v2574_v19 = vmul.f32 %v2573_v32, %v4973_v9  ;;  %v2575_v16 = vmul.f32 %v2573_v32, %v4976_v33 }
 0x2ef   : > { %v1937_v8 = vpop.permute.xlu1 %1936  ;;  %v1949_v39 = vpop.permute.xlu0 %1948 }
 0x2f0   : > { %v1954_v7 = vadd.f32 %v1949_v39, %v1940_v23  ;;  %v1941_v51 = vadd.f32 %v1937_v8, %v1927_v27  ;;  %v2587_v39 = vstv %s3329_s5  ;;  %s5043_s5 = sld [smem:[#allocation4 + $0xb0]] }
 0x2f1   : > { %2486 = vrot.lane.b32.xlu1 %v2482_v56, %s3611_s12  ;;  %2488 = vrot.lane.b32.xlu0 %v2483_v15, %s3611_s12  ;;  %v2588_v21 = vmul.f32 %v2587_v39, %v4973_v9  ;;  %v2589_v23 = vmul.f32 %v2587_v39, %v4976_v33 }
 0x2f3   : > { %v1951_v41 = vpop.permute.xlu1 %1950  ;;  %v1963_v28 = vpop.permute.xlu0 %1962 }
 0x2f4   : > { %v1968_v50 = vadd.f32 %v1963_v28, %v1954_v7  ;;  %v1955_v48 = vadd.f32 %v1951_v41, %v1941_v51 }
 0x2f5   : > { %2500 = vrot.lane.b32.xlu1 %v2496_v24, %s3612_s16  ;;  %2502 = vrot.lane.b32.xlu0 %v2497_v26, %s3612_s16  ;;  %v2601_v24 = vstv %s4986_s27  ;;  %v2079_v26 = vstv %s4990_s7  ;;  %s3341_s27 = sld [smem:[#allocation4 + $0xb1]]  ;;  %s3342_s7 = sld [smem:[#allocation4 + $0xb2]] }
 0x2f6   : > { %v2602_v51 = vmul.f32 %v2601_v24, %v4973_v9 }
 0x2f7   : > { %v1965_v35 = vpop.permute.xlu1 %1964  ;;  %v1977_v36 = vpop.permute.xlu0 %1976 }
 0x2f8   : > { %v1982_v49 = vadd.f32 %v1977_v36, %v1968_v50  ;;  %v1969_v40 = vadd.f32 %v1965_v35, %v1955_v48  ;;  %v2603_v50 = vmul.f32 %v2601_v24, %v4976_v33 }
 0x2f9   : > { %2514 = vrot.lane.b32.xlu1 %v2510_v37, %s3613_s9  ;;  %2516 = vrot.lane.b32.xlu0 %v2511_v34, %s3613_s9  ;;  %v2080_v37 = vmul.f32 %v2079_v26, %v4772_v38  ;;  %v2615_v34 = vstv %s4994_s13  ;;  %v2637_v38 = vstv %s5001_s21  ;;  %s3343_s13 = sld [smem:[#allocation4 + $0xb3]]  ;;  %s5076_s21 = sld [smem:[#allocation4 + $0xb4]] }
 0x2fa   : > { %v1990_v42 = vadd.f32 %v1988_v1, %v1982_v49 }
 0x2fb   : > { %v1979_v43 = vpop.permute.xlu1 %1978  ;;  %v1999_v53 = vpop.permute.xlu0 %1998 }
 0x2fc   : > { %v1983_v30 = vadd.f32 %v1979_v43, %v1969_v40  ;;  %v2004_v17 = vadd.f32 %v1999_v53, %v1990_v42  ;;  %v2616_v40 = vmul.f32 %v2615_v34, %v4973_v9  ;;  %v2617_v42 = vmul.f32 %v2615_v34, %v4976_v33 }
 0x2fd   : > { %2528 = vrot.lane.b32.xlu1 %v2524_v63, %s3614_s30  ;;  %2530 = vrot.lane.b32.xlu0 %v2525_v44, %s3614_s30  ;;  %v2081_v53 = vmul.f32 %v2079_v26, %v4781_v25  ;;  %v5015_v63 = vld [vmem:[#allocation2 + $0x4b] sm:$0xff]  ;;  %v5018_v44 = vld [vmem:[#allocation2 + $0x53] sm:$0xff] }
 0x2fe   : > { %v1991_v62 = vadd.f32 %v1989_v13, %v1983_v30 }
 0x2ff   : > { %v2001_v5 = vpop.permute.xlu1 %2000  ;;  %v2013_v46 = vpop.permute.xlu0 %2012 }
 0x300   : > { %v2018_v8 = vadd.f32 %v2013_v46, %v2004_v17  ;;  %v2005_v56 = vadd.f32 %v2001_v5, %v1991_v62  ;;  %v2638_v62 = vmul.f32 %v2637_v38, %v5015_v63  ;;  %v2639_v5 = vmul.f32 %v2637_v38, %v5018_v44 }
 0x301   : > { %2550 = vrot.lane.b32.xlu1 %v2546_v11, %s3609_s14  ;;  %2552 = vrot.lane.b32.xlu0 %v2547_v52, %s3609_s14  ;;  %v2651_v46 = vstv %s3334_s23  ;;  %s5080_s23 = sld [smem:[#allocation4 + $0x8c]] }
 0x302   : > { %v2652_v52 = vmul.f32 %v2651_v46, %v5015_v63  ;;  %v2653_v18 = vmul.f32 %v2651_v46, %v5018_v44 }
 0x303   : > { %v2015_v45 = vpop.permute.xlu1 %2014  ;;  %v2027_v0 = vpop.permute.xlu0 %2026 }
 0x304   : > { %v2032_v15 = vadd.f32 %v2027_v0, %v2018_v8  ;;  %v2019_v41 = vadd.f32 %v2015_v45, %v2005_v56  ;;  %v2665_v45 = vstv %s3335_s26  ;;  %s5086_s26 = sld [smem:[#allocation4 + $0x93]] }
 0x305   : > { %2564 = vrot.lane.b32.xlu1 %v2560_v3, %s3610_s8  ;;  %2566 = vrot.lane.b32.xlu0 %v2561_v60, %s3610_s8  ;;  %v2666_v32 = vmul.f32 %v2665_v45, %v5015_v63  ;;  %v2667_v17 = vmul.f32 %v2665_v45, %v5018_v44 }
 0x307   : > { %v2029_v2 = vpop.permute.xlu1 %2028  ;;  %v2041_v12 = vpop.permute.xlu0 %2040 }
 0x308   : > { %v2046_v28 = vadd.f32 %v2041_v12, %v2032_v15  ;;  %v2033_v27 = vadd.f32 %v2029_v2, %v2019_v41  ;;  %v2679_v12 = vstv %s3336_s15  ;;  %s5088_s15 = sld [smem:[#allocation4 + $0xb5]] }
 0x309   : > { %2578 = vrot.lane.b32.xlu1 %v2574_v19, %s3611_s12  ;;  %2580 = vrot.lane.b32.xlu0 %v2575_v16, %s3611_s12  ;;  %v2680_v56 = vmul.f32 %v2679_v12, %v5015_v63  ;;  %v2681_v15 = vmul.f32 %v2679_v12, %v5018_v44 }
 0x30b   : > { %v2043_v59 = vpop.permute.xlu1 %2042  ;;  %v2055_v20 = vpop.permute.xlu0 %2054 }
 0x30c   : > { %v2060_v7 = vadd.f32 %v2055_v20, %v2046_v28  ;;  %v2047_v35 = vadd.f32 %v2043_v59, %v2033_v27 }
 0x30d   : > { %2592 = vrot.lane.b32.xlu1 %v2588_v21, %s3612_s16  ;;  %2594 = vrot.lane.b32.xlu0 %v2589_v23, %s3612_s16  ;;  %v2693_v21 = vstv %s5028_s11  ;;  %v2171_v23 = vstv %s5032_s6  ;;  %s5097_s11 = sld [smem:[#allocation4 + $0xb7]]  ;;  %s5110_s6 = sld [smem:[#allocation4 + $0xb8]] }
 0x30e   : > { %v2694_v27 = vmul.f32 %v2693_v21, %v5015_v63 }
 0x30f   : > { %v2057_v29 = vpop.permute.xlu1 %2056  ;;  %v2069_v31 = vpop.permute.xlu0 %2068 }
 0x310   : > { %v2074_v36 = vadd.f32 %v2069_v31, %v2060_v7  ;;  %v2061_v48 = vadd.f32 %v2057_v29, %v2047_v35  ;;  %v2695_v7 = vmul.f32 %v2693_v21, %v5018_v44 }
 0x311   : > { %2606 = vrot.lane.b32.xlu1 %v2602_v51, %s3613_s9  ;;  %2608 = vrot.lane.b32.xlu0 %v2603_v50, %s3613_s9  ;;  %v2172_v51 = vmul.f32 %v2171_v23, %v4836_v47  ;;  %v2707_v50 = vstv %s5036_s24  ;;  %v2729_v47 = vstv %s5043_s5  ;;  %s3349_s24 = sld [smem:[#allocation4 + $0xb9]]  ;;  %s3350_s5 = sld [smem:[#allocation4 + $0xba]] }
 0x312   : > { %v2082_v49 = vadd.f32 %v2080_v37, %v2074_v36 }
 0x313   : > { %v2071_v1 = vpop.permute.xlu1 %2070  ;;  %v2091_v55 = vpop.permute.xlu0 %2090 }
 0x314   : > { %v2075_v43 = vadd.f32 %v2071_v1, %v2061_v48  ;;  %v2096_v0 = vadd.f32 %v2091_v55, %v2082_v49  ;;  %v2708_v48 = vmul.f32 %v2707_v50, %v5015_v63  ;;  %v2709_v49 = vmul.f32 %v2707_v50, %v5018_v44 }
 0x315   : > { %2620 = vrot.lane.b32.xlu1 %v2616_v40, %s3614_s30  ;;  %2622 = vrot.lane.b32.xlu0 %v2617_v42, %s3614_s30  ;;  %v2173_v55 = vmul.f32 %v4853_v14, %v2171_v23  ;;  %v5057_v40 = vld [vmem:[#allocation2 + $0x4c] sm:$0xff]  ;;  %v5060_v42 = vld [vmem:[#allocation2 + $0x54] sm:$0xff]  ;;  %v2743_v14 = vstv %s3341_s27  ;;  %s5137_s27 = sld [smem:[#allocation4 + $0x9a]] }
 0x316   : > { %v2083_v30 = vadd.f32 %v2081_v53, %v2075_v43  ;;  %v2745_v46 = vmul.f32 %v2743_v14, %v5060_v42 }
 0x317   : > { %v2093_v13 = vpop.permute.xlu1 %2092  ;;  %v2105_v22 = vpop.permute.xlu0 %2104 }
 0x318   : > { %v2110_v2 = vadd.f32 %v2105_v22, %v2096_v0  ;;  %v2097_v19 = vadd.f32 %v2093_v13, %v2083_v30  ;;  %v2730_v30 = vmul.f32 %v2729_v47, %v5057_v40  ;;  %v2731_v13 = vmul.f32 %v2729_v47, %v5060_v42 }
 0x319   : > { %2642 = vrot.lane.b32.xlu1 %v2638_v62, %s3609_s14  ;;  %2644 = vrot.lane.b32.xlu0 %v2639_v5, %s3609_s14  ;;  %v2744_v5 = vmul.f32 %v2743_v14, %v5057_v40 }
 0x31b   : > { %v2107_v25 = vpop.permute.xlu1 %2106  ;;  %v2119_v11 = vpop.permute.xlu0 %2118 }
 0x31c   : > { %v2124_v16 = vadd.f32 %v2119_v11, %v2110_v2  ;;  %v2111_v59 = vadd.f32 %v2107_v25, %v2097_v19  ;;  %v2757_v25 = vstv %s3342_s7  ;;  %s3351_s7 = sld [smem:[#allocation4 + $0xbb]] }
 0x31d   : > { %2656 = vrot.lane.b32.xlu1 %v2652_v52, %s3610_s8  ;;  %2658 = vrot.lane.b32.xlu0 %v2653_v18, %s3610_s8  ;;  %v2758_v45 = vmul.f32 %v2757_v25, %v5057_v40  ;;  %v2759_v0 = vmul.f32 %v2757_v25, %v5060_v42 }
 0x31f   : > { %v2121_v3 = vpop.permute.xlu1 %2120  ;;  %v2133_v60 = vpop.permute.xlu0 %2132 }
 0x320   : > { %v2138_v20 = vadd.f32 %v2133_v60, %v2124_v16  ;;  %v2125_v41 = vadd.f32 %v2121_v3, %v2111_v59  ;;  %v2771_v60 = vstv %s3343_s13  ;;  %s5143_s13 = sld [smem:[#allocation4 + $0xbc]] }
 0x321   : > { %2670 = vrot.lane.b32.xlu1 %v2666_v32, %s3611_s12  ;;  %2672 = vrot.lane.b32.xlu0 %v2667_v17, %s3611_s12  ;;  %v2772_v12 = vmul.f32 %v2771_v60, %v5057_v40  ;;  %v2773_v19 = vmul.f32 %v2771_v60, %v5060_v42 }
 0x323   : > { %v2135_v8 = vpop.permute.xlu1 %2134  ;;  %v2147_v39 = vpop.permute.xlu0 %2146 }
 0x324   : > { %v2152_v28 = vadd.f32 %v2147_v39, %v2138_v20  ;;  %v2139_v29 = vadd.f32 %v2135_v8, %v2125_v41  ;;  %v2785_v8 = vstv %s5076_s21  ;;  %v5101_v39 = vld [vmem:[#allocation2 + $0x36] sm:$0xff]  ;;  %v2355_v41 = vstv %s5086_s26  ;;  %s5150_s21 = sld [smem:[#allocation4 + $0x8d]]  ;;  %s5159_s26 = sld [smem:[#allocation4 + $0xbe]] }
 0x325   : > { %2684 = vrot.lane.b32.xlu1 %v2680_v56, %s3612_s16  ;;  %2686 = vrot.lane.b32.xlu0 %v2681_v15, %s3612_s16  ;;  %v2263_v56 = vstv %s5080_s23  ;;  %v2786_v21 = vmul.f32 %v2785_v8, %v5057_v40  ;;  %v2787_v23 = vmul.f32 %v2785_v8, %v5060_v42  ;;  %s3002_s23 = sld [smem:[#allocation3]] }
 0x327   : > { %v2149_v24 = vpop.permute.xlu1 %2148  ;;  %v2161_v26 = vpop.permute.xlu0 %2160 }
 0x328   : > { %v2166_v31 = vadd.f32 %v2161_v26, %v2152_v28  ;;  %v2153_v35 = vadd.f32 %v2149_v24, %v2139_v29  ;;  %v2799_v24 = vstv %s5088_s15  ;;  %v2264_v26 = vmul.f32 %v2263_v56, %v5101_v39  ;;  %s5165_s15 = sld [smem:[#allocation4 + $0x8e]] }
 0x329   : > { %2698 = vrot.lane.b32.xlu1 %v2694_v27, %s3613_s9  ;;  %2700 = vrot.lane.b32.xlu0 %v2695_v7, %s3613_s9  ;;  %v2356_v27 = vmul.f32 %v2355_v41, %v4889_v57  ;;  %v2357_v7 = vmul.f32 %v2355_v41, %v4892_v58  ;;  %v2800_v50 = vmul.f32 %v2799_v24, %v5057_v40 }
 0x32a   : > { %v2174_v36 = vadd.f32 %v2172_v51, %v2166_v31 }
 0x32b   : > { %v2163_v37 = vpop.permute.xlu1 %2162  ;;  %v2183_v34 = vpop.permute.xlu0 %2182 }
 0x32c   : > { %v2167_v1 = vadd.f32 %v2163_v37, %v2153_v35  ;;  %v2188_v11 = vadd.f32 %v2183_v34, %v2174_v36  ;;  %v2801_v35 = vmul.f32 %v2799_v24, %v5060_v42  ;;  %v5123_v34 = vld [vmem:[#allocation2 + $0x4d] sm:$0xff] }
 0x32d   : > { %2712 = vrot.lane.b32.xlu1 %v2708_v48, %s3614_s30  ;;  %2714 = vrot.lane.b32.xlu0 %v2709_v49, %s3614_s30  ;;  %v2821_v48 = vstv %s5097_s11  ;;  %v5126_v49 = vld [vmem:[#allocation2 + $0x55] sm:$0xff]  ;;  %s5177_s11 = sld [smem:[#allocation4 + $0xbf]] }
 0x32e   : > { %v5064_v43 = vadd.f32 %v2173_v55, %v2167_v1  ;;  %v2822_v1 = vmul.f32 %v2821_v48, %v5123_v34  ;;  %v2823_v55 = vmul.f32 %v2821_v48, %v5126_v49 }
 0x32f   : > { %v5066_v53 = vpop.permute.xlu1 %2184  ;;  %v2197_v38 = vpop.permute.xlu0 %2196 }
 0x330   : > { %v2202_v3 = vadd.f32 %v2197_v38, %v2188_v11  ;;  %v2849_v11 = vstv %s3349_s24  ;;  %s5188_s24 = sld [smem:[#allocation4 + $0x8f]] }
 0x331   : > { %2734 = vrot.lane.b32.xlu1 %v2730_v30, %s3609_s14  ;;  %2736 = vrot.lane.b32.xlu0 %v2731_v13, %s3609_s14  ;;  %v2835_v30 = vstv %s5110_s6  ;;  %s5186_s6 = sld [smem:[#allocation4 + $0xa1]] }
 0x333   : > { %v5072_v22 = vpop.permute.xlu1 %2198  ;;  %v2211_v62 = vpop.permute.xlu0 %2210 }
 0x334   : > { %v2216_v32 = vadd.f32 %v2211_v62, %v2202_v3  ;;  %v2836_v62 = vmul.f32 %v2835_v30, %v5123_v34  ;;  %v2851_v3 = vmul.f32 %v2849_v11, %v5126_v49 }
 0x335   : > { %2748 = vrot.lane.b32.xlu1 %v2744_v5, %s3610_s8  ;;  %2750 = vrot.lane.b32.xlu0 %v2745_v46, %s3610_s8  ;;  %v2837_v5 = vmul.f32 %v2835_v30, %v5126_v49 }
 0x337   : > { %v5082_v52 = vpop.permute.xlu1 %2212  ;;  %v2225_v18 = vpop.permute.xlu0 %2224 }
 0x338   : > { %v2230_v16 = vadd.f32 %v2225_v18, %v2216_v32 }
 0x339   : > { %2762 = vrot.lane.b32.xlu1 %v2758_v45, %s3611_s12  ;;  %2764 = vrot.lane.b32.xlu0 %v2759_v0, %s3611_s12  ;;  %v2850_v0 = vmul.f32 %v2849_v11, %v5123_v34 }
 0x33b   : > { %v5092_v17 = vpop.permute.xlu1 %2226  ;;  %v2239_v2 = vpop.permute.xlu0 %2238 }
 0x33c   : > { %v2244_v15 = vadd.f32 %v2239_v2, %v2230_v16  ;;  %v2863_v2 = vstv %s3350_s5  ;;  %s5195_s5 = sld [smem:[#allocation4 + $0xc0]] }
 0x33d   : > { %2776 = vrot.lane.b32.xlu1 %v2772_v12, %s3612_s16  ;;  %2778 = vrot.lane.b32.xlu0 %v2773_v19, %s3612_s16  ;;  %v2864_v16 = vmul.f32 %v2863_v2, %v5123_v34  ;;  %v2865_v8 = vmul.f32 %v2863_v2, %v5126_v49 }
 0x33f   : > { %v5104_v59 = vpop.permute.xlu1 %2240  ;;  %v2253_v20 = vpop.permute.xlu0 %2252 }
 0x340   : > { %v2258_v28 = vadd.f32 %v2253_v20, %v2244_v15 }
 0x341   : > { %2790 = vrot.lane.b32.xlu1 %v2786_v21, %s3613_s9  ;;  %2792 = vrot.lane.b32.xlu0 %v2787_v23, %s3613_s9  ;;  %v2447_v21 = vstv %s5137_s27  ;;  %v2877_v23 = vstv %s3351_s7  ;;  %s5203_s27 = sld [smem:[#allocation4 + $0x90]]  ;;  %s5219_s7 = sld [smem:[#allocation4 + $0x91]] }
 0x342   : > { %v5119_v29 = vadd.f32 %v2264_v26, %v2258_v28  ;;  %v2448_v41 = vmul.f32 %v2447_v21, %v4931_v61  ;;  %v2878_v26 = vmul.f32 %v2877_v23, %v5123_v34 }
 0x343   : > { %v2367_v31 = vpop.permute.xlu1 %2366  ;;  %v2369_v51 = vpop.permute.xlu0 %2368 }
 0x344   : > { %v2372_v36 = vadd.f32 %v2367_v31, %v2356_v27  ;;  %v2373_v37 = vadd.f32 %v2369_v51, %v2357_v7  ;;  %v2879_v27 = vmul.f32 %v2877_v23, %v5126_v49  ;;  %v2449_v31 = vmul.f32 %v2447_v21, %v4934_v4 }
 0x345   : > { %2804 = vrot.lane.b32.xlu1 %v2800_v50, %s3614_s30  ;;  %2806 = vrot.lane.b32.xlu0 %v2801_v35, %s3614_s30  ;;  %v2891_v50 = vstv %s5143_s13  ;;  %s5233_s13 = sld [smem:[#allocation4 + $0x92]] }
 0x346   : > { %v2892_v48 = vmul.f32 %v2891_v50, %v5123_v34 }
 0x347   : > { %v2381_v57 = vpop.permute.xlu1 %2380  ;;  %v2383_v58 = vpop.permute.xlu0 %2382 }
 0x348   : > { %v2386_v47 = vadd.f32 %v2381_v57, %v2372_v36  ;;  %v2387_v38 = vadd.f32 %v2383_v58, %v2373_v37 }
 0x349   : > { %2826 = vrot.lane.b32.xlu1 %v2822_v1, %s3609_s14  ;;  %2828 = vrot.lane.b32.xlu0 %v2823_v55, %s3609_s14  ;;  %v2269_v1 = vstv %s5150_s21  ;;  %s3332_s21 = sld [smem:[#allocation4 + $0xa8]] }
 0x34b   : > { %v2395_v13 = vpop.permute.xlu1 %2394  ;;  %v2397_v14 = vpop.permute.xlu0 %2396 }
 0x34c   : > { %v2400_v46 = vadd.f32 %v2395_v13, %v2386_v47  ;;  %v2401_v25 = vadd.f32 %v2397_v14, %v2387_v38  ;;  %v2893_v47 = vmul.f32 %v2891_v50, %v5126_v49  ;;  %v2270_v38 = vmul.f32 %v2269_v1, %v5101_v39  ;;  %v5172_v14 = vld [vmem:[#allocation2 + $0x3e] sm:$0xff] }
 0x34d   : > { %2840 = vrot.lane.b32.xlu1 %v2836_v62, %s3610_s8  ;;  %2842 = vrot.lane.b32.xlu0 %v2837_v5, %s3610_s8  ;;  %v5174_v62 = vld [vmem:[#allocation2 + $0x4e] sm:$0xff]  ;;  %v2913_v5 = vstv %s5159_s26  ;;  %s3164_s26 = sshll.u32 %s3827_s10, 4 }
 0x34e   : > { %v2914_v11 = vmul.f32 %v2913_v5, %v5174_v62 }
 0x34f   : > { %v2409_v18 = vpop.permute.xlu1 %2408  ;;  %v2411_v45 = vpop.permute.xlu0 %2410 }
 0x350   : > { %v2414_v60 = vadd.f32 %v2409_v18, %v2400_v46  ;;  %v2415_v32 = vadd.f32 %v2411_v45, %v2401_v25  ;;  %v2271_v25 = vmul.f32 %v2269_v1, %v5172_v14 }
 0x351   : > { %2854 = vrot.lane.b32.xlu1 %v2850_v0, %s3611_s12  ;;  %2856 = vrot.lane.b32.xlu0 %v2851_v3, %s3611_s12  ;;  %v5183_v0 = vld [vmem:[#allocation2 + $0x56] sm:$0xff]  ;;  %v2283_v3 = vstv %s5165_s15  ;;  %s3367_s15 = sshll.u32 %s3667_s1, 8  ;;  %s3029_s1 = scalar_lea.sflag [#allocation6], %s3827_s10 }
 0x352   : > { %v2915_v2 = vmul.f32 %v2913_v5, %v5183_v0  ;;  %v2285_v21 = vmul.f32 %v2283_v3, %v5172_v14 }
 0x353   : > { %v2423_v12 = vpop.permute.xlu1 %2422  ;;  %v2425_v19 = vpop.permute.xlu0 %2424 }
 0x354   : > { %v2428_v15 = vadd.f32 %v2423_v12, %v2414_v60  ;;  %v2429_v20 = vadd.f32 %v2425_v19, %v2415_v32  ;;  %v2284_v12 = vmul.f32 %v2283_v3, %v5101_v39 }
 0x355   : > { %2868 = vrot.lane.b32.xlu1 %v2864_v16, %s3612_s16  ;;  %2870 = vrot.lane.b32.xlu0 %v2865_v8, %s3612_s16  ;;  %v2927_v8 = vstv %s5177_s11  ;;  %s270_s11 = scalar_lea.vmem [#allocation11], %s3164_s26 }
 0x356   : > { %v2928_v23 = vmul.f32 %v2927_v8, %v5174_v62 }
 0x357   : > { %v2437_v28 = vpop.permute.xlu1 %2436  ;;  %v2439_v24 = vpop.permute.xlu0 %2438 }
 0x358   : > { %v2442_v7 = vadd.f32 %v2437_v28, %v2428_v15  ;;  %v2443_v51 = vadd.f32 %v2439_v24, %v2429_v20  ;;  %v2539_v24 = vstv %s5186_s6  ;;  %s3042_s6 = sshll.u32 %s270_s11, 4  ;;  %s5291_s6 = int_to_ptr.vmem [resolvable:$true] %s3042_s6 }
 0x359   : > { %2882 = vrot.lane.b32.xlu1 %v2878_v26, %s3613_s9  ;;  %2884 = vrot.lane.b32.xlu0 %v2879_v27, %s3613_s9  ;;  %v2297_v26 = vstv %s5188_s24  ;;  %v2540_v27 = vmul.f32 %v2539_v24, %v4973_v9 }
 0x35a   : > { %v2450_v35 = vadd.f32 %v2448_v41, %v2442_v7  ;;  %v2451_v61 = vadd.f32 %v2449_v31, %v2443_v51  ;;  %v2929_v51 = vmul.f32 %v2927_v8, %v5183_v0  ;;  %v2298_v50 = vmul.f32 %v2297_v26, %v5101_v39 }
 0x35b   : > { %v2459_v36 = vpop.permute.xlu1 %2458  ;;  %v2461_v37 = vpop.permute.xlu0 %2460  ;;  %v2299_v1 = vmul.f32 %v2297_v26, %v5172_v14 }
 0x35c   : > { %v2464_v57 = vadd.f32 %v2459_v36, %v2450_v35  ;;  %v2465_v58 = vadd.f32 %v2461_v37, %v2451_v61  ;;  %v2541_v61 = vmul.f32 %v2539_v24, %v4976_v33  ;;  %v2941_v37 = vstv %s5195_s5 }
 0x35d   : > { %2254 = vrot.lane.b32.xlu1 %v4066_v6, %s3614_s30  ;;  %2896 = vrot.lane.b32.xlu0 %v2892_v48, %s3614_s30  ;;  %v2311_v33 = vstv %s5203_s27  ;;  %s5289_s27 = scalar_lea.hbm %s5340_s4, %s3367_s15 }
 0x35e   : > { %v2312_v5 = vmul.f32 %v2311_v33, %v5101_v39 }
 0x35f   : > { %v2473_v4 = vpop.permute.xlu1 %2472  ;;  %v2475_v55 = vpop.permute.xlu0 %2474 }
 0x360   : > { %v2478_v30 = vadd.f32 %v2473_v4, %v2464_v57  ;;  %v2479_v13 = vadd.f32 %v2475_v55, %v2465_v58  ;;  %v2942_v4 = vmul.f32 %v2941_v37, %v5174_v62 }
 0x361   : > { %2898 = vrot.lane.b32.xlu1 %v2893_v47, %s3614_s30  ;;  %2274 = vrot.lane.b32.xlu0 %v2270_v38, %s3609_s14 }
 0x363   : > { %v2487_v6 = vpop.permute.xlu1 %2486  ;;  %v2489_v46 = vpop.permute.xlu0 %2488 }
 0x364   : > { %v2492_v18 = vadd.f32 %v2487_v6, %v2478_v30  ;;  %v2493_v45 = vadd.f32 %v2489_v46, %v2479_v13  ;;  %v2943_v13 = vmul.f32 %v2941_v37, %v5183_v0 }
 0x365   : > { %2276 = vrot.lane.b32.xlu1 %v2271_v25, %s3609_s14  ;;  %2918 = vrot.lane.b32.xlu0 %v2914_v11, %s3609_s14 }
 0x367   : > { %v2501_v60 = vpop.permute.xlu1 %2500  ;;  %v2503_v32 = vpop.permute.xlu0 %2502 }
 0x368   : > { %v2506_v19 = vadd.f32 %v2501_v60, %v2492_v18  ;;  %v2507_v16 = vadd.f32 %v2503_v32, %v2493_v45  ;;  %v2313_v45 = vmul.f32 %v2311_v33, %v5172_v14 }
 0x369   : > { %2920 = vrot.lane.b32.xlu1 %v2915_v2, %s3609_s14  ;;  %2288 = vrot.lane.b32.xlu0 %v2284_v12, %s3610_s8  ;;  %s5212_s14 = sld [smem:[#allocation4 + $0xc1]]  ;;  %v2325_v2 = vstv %s5219_s7  ;;  %s3615_s7 = smov [#allocation11]  }
 0x36a   : > { %v2326_v8 = vmul.f32 %v2325_v2, %v5101_v39 }
 0x36b   : > { %v2515_v15 = vpop.permute.xlu1 %2514  ;;  %v2517_v20 = vpop.permute.xlu0 %2516 }
 0x36c   : > { %v2520_v41 = vadd.f32 %v2515_v15, %v2506_v19  ;;  %v2521_v28 = vadd.f32 %v2517_v20, %v2507_v16 }
 0x36d   : > { %2290 = vrot.lane.b32.xlu1 %v2285_v21, %s3610_s8  ;;  %2932 = vrot.lane.b32.xlu0 %v2928_v23, %s3610_s8 }
 0x36f   : > { %v2529_v7 = vpop.permute.xlu1 %2528  ;;  %v2531_v31 = vpop.permute.xlu0 %2530  ;;  %v2955_v25 = vstv %s5212_s14  ;;  %s3526_s14 = scalar_lea.vmem %s5291_s6, 256 }
 0x370   : > { %v2534_v35 = vadd.f32 %v2529_v7, %v2520_v41  ;;  %v2535_v36 = vadd.f32 %v2531_v31, %v2521_v28  ;;  %v2956_v3 = vmul.f32 %v2955_v25, %v5174_v62  ;;  %v2957_v16 = vmul.f32 %v2955_v25, %v5183_v0  ;;  %p3527_p13 = scmp.ne.s32.totalorder %s5291_s6, %s3526_s14 }
 0x371   : > { %2934 = vrot.lane.b32.xlu1 %v2929_v51, %s3610_s8  ;;  %2302 = vrot.lane.b32.xlu0 %v2298_v50, %s3611_s12  ;;  %s5226_s8 = sld [smem:[#allocation4 + $0xc2]]  ;;  %v2327_v28 = vmul.f32 %v2325_v2, %v5172_v14  ;;  %v2339_v7 = vstv %s5233_s13  ;;  %v2631_v31 = vstv %s3332_s21 }
 0x372   : > { %v2542_v48 = vadd.f32 %v2540_v27, %v2534_v35  ;;  %v2543_v9 = vadd.f32 %v2541_v61, %v2535_v36  ;;  %v2340_v61 = vmul.f32 %v2339_v7, %v5101_v39  ;;  %p3528_p11 = pnand %p3527_p13, %p5354_p3 }
 0x373   : > { %v2551_v57 = vpop.permute.xlu1 %2550  ;;  %v2553_v58 = vpop.permute.xlu0 %2552 }
 0x374   : > { %v2556_v55 = vadd.f32 %v2551_v57, %v2542_v48  ;;  %v2557_v47 = vadd.f32 %v2553_v58, %v2543_v9  ;;  %v2632_v9 = vmul.f32 %v2631_v31, %v5015_v63  ;;  %v2633_v57 = vmul.f32 %v2631_v31, %v5018_v44  ;;  %p3529_p0 = pneg %p3528_p11 }
 0x375   : > { %2304 = vrot.lane.b32.xlu1 %v2299_v1, %s3611_s12  ;;  %2946 = vrot.lane.b32.xlu0 %v2942_v4, %s3611_s12 }
 0x377   : > { %v2565_v38 = vpop.permute.xlu1 %2564  ;;  %v2567_v30 = vpop.permute.xlu0 %2566  ;;  %v2969_v21 = vstv %s5226_s8  ;;  %s3530_s8 = sshll.u32 %s3615_s7, 4  ;;  %s3531_s8 = int_to_ptr.vmem [resolvable:$false] %s3530_s8 }
 0x378   : > { %v2570_v6 = vadd.f32 %v2565_v38, %v2556_v55  ;;  %v2571_v46 = vadd.f32 %v2567_v30, %v2557_v47  ;;  %v2970_v24 = vmul.f32 %v2969_v21, %v5174_v62  ;;  %v2971_v35 = vmul.f32 %v2969_v21, %v5183_v0  ;;  %s3532_s13 = scalar_lea.vmem %s3531_s8, 512  ;;  %p3533_p2 = scmp.lt.s32.totalorder %s5291_s6, %s3531_s8 }
 0x379   : > { %2948 = vrot.lane.b32.xlu1 %v2943_v13, %s3611_s12  ;;  %2316 = vrot.lane.b32.xlu0 %v2312_v5, %s3612_s16  ;;  %s5239_s12 = sld [smem:[#allocation4 + $0xc3]]  ;;  %v2341_v47 = vmul.f32 %v2339_v7, %v5172_v14  ;;  %p3534_p7 = scmp.lt.s32.totalorder %s3532_s13, %s3526_s14 }
 0x37b   : > { %v2579_v11 = vpop.permute.xlu1 %2578  ;;  %v2581_v18 = vpop.permute.xlu0 %2580  ;;  %p3535_p6 = por %p3534_p7, %p3533_p2 }
 0x37c   : > { %v2584_v60 = vadd.f32 %v2579_v11, %v2570_v6  ;;  %v2585_v32 = vadd.f32 %v2581_v18, %v2571_v46 }
 0x37d   : > { %2318 = vrot.lane.b32.xlu1 %v2313_v45, %s3612_s16  ;;  %2960 = vrot.lane.b32.xlu0 %v2956_v3, %s3612_s16  ;;  %p3536_p12 = pnand %p3535_p6, %p3529_p0 }
 0x37f   : > { %v2593_v12 = vpop.permute.xlu1 %2592  ;;  %v2595_v19 = vpop.permute.xlu0 %2594  ;;  %v2983_v36 = vstv %s5239_s12 }
 0x380   : > { %v2598_v15 = vadd.f32 %v2593_v12, %v2584_v60  ;;  %v2599_v20 = vadd.f32 %v2595_v19, %v2585_v32  ;;  %v2984_v33 = vmul.f32 %v2983_v36, %v5174_v62  ;;  %v2985_v30 = vmul.f32 %v2983_v36, %v5183_v0 }
 0x381   : > { %2962 = vrot.lane.b32.xlu1 %v2957_v16, %s3612_s16  ;;  %2330 = vrot.lane.b32.xlu0 %v2326_v8, %s3613_s9  ;;  %s3339_s16 = sld [smem:[#allocation4 + $0xaf]] }
 0x383   : > { %v2607_v23 = vpop.permute.xlu1 %2606  ;;  %v2609_v41 = vpop.permute.xlu0 %2608 }
 0x384   : > { %v2612_v26 = vadd.f32 %v2607_v23, %v2598_v15  ;;  %v2613_v27 = vadd.f32 %v2609_v41, %v2599_v20 }
 0x385   : > { %2332 = vrot.lane.b32.xlu1 %v2327_v28, %s3613_s9  ;;  %2974 = vrot.lane.b32.xlu0 %v2970_v24, %s3613_s9 }
 0x387   : > { %v2621_v51 = vpop.permute.xlu1 %2620  ;;  %v2623_v50 = vpop.permute.xlu0 %2622  ;;  %v2723_v12 = vstv %s3339_s16 }
 0x388   : > { %v2626_v37 = vadd.f32 %v2621_v51, %v2612_v26  ;;  %v2627_v48 = vadd.f32 %v2623_v50, %v2613_v27  ;;  %v2724_v23 = vmul.f32 %v2723_v12, %v5057_v40  ;;  %v2725_v41 = vmul.f32 %v2723_v12, %v5060_v42 }
 0x389   : > { %2976 = vrot.lane.b32.xlu1 %v2971_v35, %s3613_s9  ;;  %2344 = vrot.lane.b32.xlu0 %v2340_v61, %s3614_s30  ;;  %s3346_s9 = sld [smem:[#allocation4 + $0xb6]] }
 0x38a   : > { %v2634_v58 = vadd.f32 %v2632_v9, %v2626_v37  ;;  %v2635_v1 = vadd.f32 %v2633_v57, %v2627_v48 }
 0x38b   : > { %v2643_v4 = vpop.permute.xlu1 %2642  ;;  %v2645_v55 = vpop.permute.xlu0 %2644 }
 0x38c   : > { %v2648_v39 = vadd.f32 %v2643_v4, %v2634_v58  ;;  %v2649_v38 = vadd.f32 %v2645_v55, %v2635_v1 }
 0x38d   : > { %2346 = vrot.lane.b32.xlu1 %v2341_v47, %s3614_s30  ;;  %2988 = vrot.lane.b32.xlu0 %v2984_v33, %s3614_s30 }
 0x38f   : > { %v2657_v63 = vpop.permute.xlu1 %2656  ;;  %v2659_v44 = vpop.permute.xlu0 %2658  ;;  %v2815_v55 = vstv %s3346_s9 }
 0x390   : > { %v2663_v13 = vadd.f32 %v2659_v44, %v2649_v38  ;;  %v2662_v18 = vadd.f32 %v2657_v63, %v2648_v39 }
 0x391   : > { %2990 = vrot.lane.b32.xlu1 %v2985_v30, %s3614_s30  ;;  %v2816_v30 = vmul.f32 %v2815_v55, %v5123_v34  ;;  %s5266_s30 = sld [smem:[#allocation4 + $0xbd]] }
 0x393   : > { %v2671_v5 = vpop.permute.xlu1 %2670  ;;  %v2673_v6 = vpop.permute.xlu0 %2672 }
 0x394   : > { %v2677_v46 = vadd.f32 %v2673_v6, %v2663_v13  ;;  %v2676_v45 = vadd.f32 %v2671_v5, %v2662_v18  ;;  %v2817_v13 = vmul.f32 %v2815_v55, %v5126_v49 }
 0x397   : > { %v2685_v25 = vpop.permute.xlu1 %2684  ;;  %v2687_v11 = vpop.permute.xlu0 %2686 }
 0x398   : > { %v2690_v32 = vadd.f32 %v2685_v25, %v2676_v45  ;;  %v2691_v2 = vadd.f32 %v2687_v11, %v2677_v46 }
 0x39b   : > { %v2699_v3 = vpop.permute.xlu1 %2698  ;;  %v2701_v60 = vpop.permute.xlu0 %2700 }
 0x39c   : > { %v2704_v19 = vadd.f32 %v2699_v3, %v2690_v32  ;;  %v2705_v16 = vadd.f32 %v2701_v60, %v2691_v2  ;;  %v2189_v60 = vadd.f32 %v5066_v53, %v5064_v43 }
 0x39e   : > { %v2203_v34 = vadd.f32 %v5072_v22, %v2189_v60  ;;  %v2265_v22 = vmul.f32 %v2263_v56, %v5172_v14 }
 0x39f   : > { %v2713_v8 = vpop.permute.xlu1 %2712  ;;  %v2715_v15 = vpop.permute.xlu0 %2714 }
 0x3a0   : > { %v2718_v20 = vadd.f32 %v2713_v8, %v2704_v19  ;;  %v2719_v21 = vadd.f32 %v2715_v15, %v2705_v16  ;;  %v2217_v19 = vadd.f32 %v5082_v52, %v2203_v34 }
 0x3a2   : > { %v2726_v28 = vadd.f32 %v2724_v23, %v2718_v20  ;;  %v2727_v24 = vadd.f32 %v2725_v41, %v2719_v21  ;;  %v2231_v21 = vadd.f32 %v5092_v17, %v2217_v19 }
 0x3a3   : > { %v2735_v26 = vpop.permute.xlu1 %2734  ;;  %v2737_v27 = vpop.permute.xlu0 %2736 }
 0x3a4   : > { %v2740_v35 = vadd.f32 %v2735_v26, %v2726_v28  ;;  %v2741_v61 = vadd.f32 %v2737_v27, %v2727_v24  ;;  %v2907_v28 = vstv %s5266_s30  ;;  %v2245_v43 = vadd.f32 %v5104_v59, %v2231_v21 }
 0x3a5   : > { %v2909_v59 = vmul.f32 %v2907_v28, %v5183_v0 }
 0x3a7   : > { %v2749_v7 = vpop.permute.xlu1 %2748  ;;  %v2751_v31 = vpop.permute.xlu0 %2750 }
 0x3a8   : > { %v2754_v48 = vadd.f32 %v2749_v7, %v2740_v35  ;;  %v2755_v9 = vadd.f32 %v2751_v31, %v2741_v61 }
 0x3ab   : > { %v2763_v51 = vpop.permute.xlu1 %2762  ;;  %v2765_v50 = vpop.permute.xlu0 %2764 }
 0x3ac   : > { %v2768_v57 = vadd.f32 %v2763_v51, %v2754_v48  ;;  %v2769_v58 = vadd.f32 %v2765_v50, %v2755_v9  ;;  %v2908_v51 = vmul.f32 %v2907_v28, %v5174_v62 }
 0x3af   : > { %v2777_v36 = vpop.permute.xlu1 %2776  ;;  %v2779_v37 = vpop.permute.xlu0 %2778 }
 0x3b0   : > { %v2782_v42 = vadd.f32 %v2777_v36, %v2768_v57  ;;  %v2783_v4 = vadd.f32 %v2779_v37, %v2769_v58 }
 0x3b3   : > { %v2791_v40 = vpop.permute.xlu1 %2790  ;;  %v2793_v1 = vpop.permute.xlu0 %2792 }
 0x3b4   : > { %v2796_v47 = vadd.f32 %v2791_v40, %v2782_v42  ;;  %v2797_v33 = vadd.f32 %v2793_v1, %v2783_v4 }
 0x3b7   : > { %v2805_v39 = vpop.permute.xlu1 %2804  ;;  %v2807_v38 = vpop.permute.xlu0 %2806 }
 0x3b8   : > { %v2810_v63 = vadd.f32 %v2805_v39, %v2796_v47  ;;  %v2811_v44 = vadd.f32 %v2807_v38, %v2797_v33 }
 0x3ba   : > { %v2818_v5 = vadd.f32 %v2816_v30, %v2810_v63  ;;  %v2819_v6 = vadd.f32 %v2817_v13, %v2811_v44 }
 0x3bb   : > { %v2827_v46 = vpop.permute.xlu1 %2826  ;;  %v2829_v25 = vpop.permute.xlu0 %2828 }
 0x3bc   : > { %v2832_v32 = vadd.f32 %v2827_v46, %v2818_v5  ;;  %v2833_v16 = vadd.f32 %v2829_v25, %v2819_v6 }
 0x3bf   : > { %v2841_v11 = vpop.permute.xlu1 %2840  ;;  %v2843_v18 = vpop.permute.xlu0 %2842 }
 0x3c0   : > { %v2846_v49 = vadd.f32 %v2841_v11, %v2832_v32  ;;  %v2847_v23 = vadd.f32 %v2843_v18, %v2833_v16 }
 0x3c3   : > { %v2855_v45 = vpop.permute.xlu1 %2854  ;;  %v2857_v3 = vpop.permute.xlu0 %2856 }
 0x3c4   : > { %v2860_v8 = vadd.f32 %v2855_v45, %v2846_v49  ;;  %v2861_v53 = vadd.f32 %v2857_v3, %v2847_v23 }
 0x3c7   : > { %v2869_v2 = vpop.permute.xlu1 %2868  ;;  %v2871_v12 = vpop.permute.xlu0 %2870 }
 0x3c8   : > { %v2874_v41 = vadd.f32 %v2869_v2, %v2860_v8  ;;  %v2875_v7 = vadd.f32 %v2871_v12, %v2861_v53  ;;  %v3003_v53 = vstv %s3002_s23 }
 0x3cb   : > { %v2883_v15 = vpop.permute.xlu1 %2882  ;;  %v2885_v20 = vpop.permute.xlu0 %2884 }
 0x3cc   : > { %v2888_v24 = vadd.f32 %v2883_v15, %v2874_v41  ;;  %v2889_v50 = vadd.f32 %v2885_v20, %v2875_v7 }
 0x3cf   : > { %v2255_v26 = vpop.permute.xlu1 %2254  ;;  %v2897_v27 = vpop.permute.xlu0 %2896 }
 0x3d0   : > { %v2259_v52 = vadd.f32 %v2255_v26, %v2245_v43  ;;  %v2902_v31 = vadd.f32 %v2897_v27, %v2888_v24 }
 0x3d2   : > { %v2267_v35 = vadd.f32 %v2265_v22, %v2259_v52  ;;  %v2910_v17 = vadd.f32 %v2908_v51, %v2902_v31 }
 0x3d3   : > { %v2899_v61 = vpop.permute.xlu1 %2898  ;;  %v2275_v36 = vpop.permute.xlu0 %2274 }
 0x3d4   : > { %v2903_v37 = vadd.f32 %v2899_v61, %v2889_v50  ;;  %v2280_v44 = vadd.f32 %v2275_v36, %v5119_v29 }
 0x3d6   : > { %v2911_v48 = vadd.f32 %v2909_v59, %v2903_v37 }
 0x3d7   : > { %v2277_v9 = vpop.permute.xlu1 %2276  ;;  %v2919_v57 = vpop.permute.xlu0 %2918 }
 0x3d8   : > { %v2924_v0 = vadd.f32 %v2919_v57, %v2910_v17  ;;  %v2281_v46 = vadd.f32 %v2277_v9, %v2267_v35 }
 0x3db   : > { %v2921_v58 = vpop.permute.xlu1 %2920  ;;  %v2289_v40 = vpop.permute.xlu0 %2288 }
 0x3dc   : > { %v2294_v5 = vadd.f32 %v2289_v40, %v2280_v44  ;;  %v2925_v25 = vadd.f32 %v2921_v58, %v2911_v48 }
 0x3df   : > { %v2291_v1 = vpop.permute.xlu1 %2290  ;;  %v2933_v56 = vpop.permute.xlu0 %2932 }
 0x3e0   : > { %v2938_v6 = vadd.f32 %v2933_v56, %v2924_v0  ;;  %v2295_v60 = vadd.f32 %v2291_v1, %v2281_v46 }
 0x3e3   : > { %v2935_v14 = vpop.permute.xlu1 %2934  ;;  %v2303_v42 = vpop.permute.xlu0 %2302 }
 0x3e4   : > { %v2308_v11 = vadd.f32 %v2303_v42, %v2294_v5  ;;  %v2939_v32 = vadd.f32 %v2935_v14, %v2925_v25 }
 0x3e7   : > { %v2305_v4 = vpop.permute.xlu1 %2304  ;;  %v2947_v55 = vpop.permute.xlu0 %2946 }
 0x3e8   : > { %v2952_v18 = vadd.f32 %v2947_v55, %v2938_v6  ;;  %v2309_v34 = vadd.f32 %v2305_v4, %v2295_v60 }
 0x3eb   : > { %v2949_v62 = vpop.permute.xlu1 %2948  ;;  %v2317_v47 = vpop.permute.xlu0 %2316 }
 0x3ec   : > { %v2322_v2 = vadd.f32 %v2317_v47, %v2308_v11  ;;  %v2953_v49 = vadd.f32 %v2949_v62, %v2939_v32 }
 0x3ef   : > { %v2319_v33 = vpop.permute.xlu1 %2318  ;;  %v2961_v39 = vpop.permute.xlu0 %2960 }
 0x3f0   : > { %v2966_v12 = vadd.f32 %v2961_v39, %v2952_v18  ;;  %v2323_v15 = vadd.f32 %v2319_v33, %v2309_v34 }
 0x3f3   : > { %v2963_v38 = vpop.permute.xlu1 %2962  ;;  %v2331_v63 = vpop.permute.xlu0 %2330 }
 0x3f4   : > { %v2336_v19 = vadd.f32 %v2331_v63, %v2322_v2  ;;  %v2967_v20 = vadd.f32 %v2963_v38, %v2953_v49 }
 0x3f7   : > { %v2333_v30 = vpop.permute.xlu1 %2332  ;;  %v2975_v13 = vpop.permute.xlu0 %2974 }
 0x3f8   : > { %v2980_v29 = vadd.f32 %v2975_v13, %v2966_v12  ;;  %v2337_v41 = vadd.f32 %v2333_v30, %v2323_v15 }
 0x3fb   : > { %v2977_v45 = vpop.permute.xlu1 %2976  ;;  %v2345_v3 = vpop.permute.xlu0 %2344 }
 0x3fc   : > { %v2350_v21 = vadd.f32 %v2345_v3, %v2336_v19  ;;  %v2981_v28 = vadd.f32 %v2977_v45, %v2967_v20 }
 0x3ff   : > { %v2347_v16 = vpop.permute.xlu1 %2346  ;;  %v2989_v8 = vpop.permute.xlu0 %2988 }
 0x400   : > { %v2994_v23 = vadd.f32 %v2989_v8, %v2980_v29  ;;  %v2351_v26 = vadd.f32 %v2347_v16, %v2337_v41 }
 0x402   : > { %v2998_v43 = vadd.f32 %v2994_v23, %v2350_v21 }
 0x403   : > { %v2991_v24 = vpop.permute.xlu1 %2990 }
 0x404   : > { %v3000_v27 = vadd.f32 %v2998_v43, %v4831_v54  ;;  %v2995_v22 = vadd.f32 %v2991_v24, %v2981_v28 }
 0x406   : > { %v3004_v7 = vadd.f32 %v3003_v53, %v3000_v27  ;;  %v2999_v52 = vadd.f32 %v2995_v22, %v2351_v26 }
 0x408   : > { %v3006_v31 = vand.u32 2147483647, %v3004_v7  ;;  %v3001_v51 = vadd.f32 %v2999_v52, %v4843_v10  ;;  %vm3020_vm5 = vcmp.ge.f32.partialorder %v3004_v7, 0.0 }
 0x40a   : > { %v3008_v50 = vsub.f32 0.0, %v3006_v31  ;;  %v3005_v35 = vadd.f32 %v3003_v53, %v3001_v51 }
 0x40c   : > { %v3010_v17 = vmul.f32 1.442695, %v3008_v50  ;;  %v3007_v61 = vand.u32 2147483647, %v3005_v35  ;;  %vm3021_vm6 = vcmp.ge.f32.partialorder %v3005_v35, 0.0 }
 0x40e   : > { %3442 = vpow2.f32 %v3010_v17  ;;  %v3009_v36 = vsub.f32 0.0, %v3007_v61 }
 0x410   : > { %v3012_v37 = vmul.f32 1.442695, %v3009_v36 }
 0x412   : > { %3444 = vpow2.f32 %v3012_v37 }
 0x418   : > { %v3443_v59 = vpop.eup %3442 }
 0x419   : > { %v3014_v48 = vadd.f32 1.0, %v3443_v59 }
 0x41b   : > { %3446 = vrcp.f32 %v3014_v48 }
 0x41c   : > { %v3445_v54 = vpop.eup %3444 }
 0x41d   : > { %v3015_v9 = vadd.f32 1.0, %v3445_v54 }
 0x41f   : > { %3448 = vrcp.f32 %v3015_v9 }
 0x425   : > { %v3447_v57 = vpop.eup %3446 }
 0x426   : > { %v3022_v58 = vsub.f32 1.0, %v3447_v57 }
 0x428   : > { %v3024_v10 = vsel %vm3020_vm5, %v3447_v57, %v3022_v58 }
 0x429   : > { %v3449_v40 = vpop.eup %3448  ;;  %3026 = vst.msk [vmem:[%s270_s11] sm:$0xff] %vm279_vm0, %v3024_v10 }
 0x42a   : > { %v3023_v1 = vsub.f32 1.0, %v3449_v40 }
 0x42c   : > { %v3025_v56 = vsel %vm3021_vm6, %v3449_v40, %v3023_v1 }
 0x42d   : > { %3027 = vst.msk [vmem:[%s270_s11 + $0x8] sm:$0xff] %vm279_vm0, %v3025_v56 }
 0x42e   : > { %3539 = shalt.err (!%p3536_p12)
}
 0x42f   : > { %s3540_s21 = scalar_lea.hbm %s5289_s27, 256  ;;  %s3544_s9 = scalar_lea.hbm %s5340_s4, 512 }
 0x430   : > { %p3541_p9 = scmp.ne.s32.totalorder %s5289_s27, %s3540_s21  ;;  %p3545_p5 = scmp.lt.u32.totalorder %s5289_s27, %s5340_s4 }
 0x431   : > { %p3546_p8 = scmp.lt.u32.totalorder %s3544_s9, %s3540_s21  ;;  %p3548_p13 = scmp.lt.u32.totalorder %s3540_s21, %s5289_s27 }
 0x432   : > { %p3542_p10 = pnand %p3541_p9, %p5354_p3 }
 0x433   : > { %p3547_p4 = por %p3546_p8, %p3545_p5 }
 0x434   : > { %p3543_p1 = pneg %p3542_p10 }
 0x435   : > { %p3549_p11 = por %p3548_p13, %p3547_p4 }
 0x437   : > { %p3550_p0 = pnand %p3549_p11, %p3543_p1 }
 0x439   : > { %3553 = shalt.err (!%p3550_p0)
}
 0x43a   : > { %s3616_s26 = smov 128   ;;  %s3617_s15 = smov 8  }
 0x43b   : > { %3376 = dma.vmem_to_hbm [thread:$0]  (%p5354_p3), %s5291_s6, 256, %s5289_s27, %s3029_s1, %s3616_s26, %s3616_s26, %s3617_s15  }
 0x43c PF: > { %s3057_s11 = sand.u32 1, %s3588_s17   ;;  %p5355_p2 = scmp.ne.s32.totalorder %s5347_s29, 0 }
 0x43d   : > { %p5356_p7 = scmp.ge.s32.totalorder %s3600_s20, 2  ;;  %s3058_s24 = scalar_lea.sflag [#allocation6], %s3057_s11 }
 0x43f   : > { %p3390_p6 = pnand %p5356_p7, %p5355_p2 }
 0x441   : > { %3583 = dma.done.wait (!%p3390_p6), %s3058_s24, 256  }
 0x442   : > { %3585 = vsyncadd (!%p3390_p6), %s3058_s24, 4294967040  ;;  %p22_p12 = scmp.ge.s32.totalorder %s3671_s22, 4   ;;  %s5357_s17 = smov %s3592_s18 }
 0x443   : > { %s5358_s18 = smov %s3596_s19  ;;  %s5359_s19 = smov %s3683_s25 }
 0x444   : > { %s5360_s20 = smov %s3671_s22  ;;  %24 = sbr.rel (!%p22_p12) target bundleno = 10 (0xa), region = 102 }
 0x44b   :  { %3063 = vsyncpa [#allocation5], 1 }
 0x44c   :  { %3065 = vsyncpa [#allocation5 + $0x1], 1 }
 0x44d   :  { %3066 = vsyncpa [#allocation10], 1 }
 0x44e   :  { %3068 = vsyncpa [#allocation10 + $0x1], 1 }
 0x44f   :  { %3069 = vsyncpa [#allocation6], 1 }
 0x450   :  { %3071 = vsyncpa [#allocation6 + $0x1], 1 }
 0x451   :  { %3072 = vsyncpa [#allocation7], 1 }
 0x452   :  { %3074 = vsyncpa [#allocation7 + $0x1], 1 }

</bundles_post_ra>
